<compile_context>
chip_gen: v5e
topology: v5e:2x2
jax: 0.10.0
libtpu: 0.0.40
codegen_flags: <defaults>
</compile_context>

<pallas_src>
import functools

import jax
import jax.numpy as jnp
from jax.experimental import pallas as pl
from jax.experimental.pallas import tpu as pltpu

_TAPS = [(kh, kw) for kh in range(3) for kw in range(3)]


def _round_up(x, m):
    return ((x + m - 1) // m) * m


def _fold_bn(gamma, beta, mean, var, eps=1e-5):
    scale = gamma / jnp.sqrt(var + eps)
    bias = beta - mean * scale
    return scale, bias


# ------------------------------ Pallas kernel ------------------------------- #
def _basic_block_kernel(planes_ref, w1_ref, w2_ref, s1_ref, b1_ref, s2_ref,
                        b2_ref, *rest, stride, ho, wo, proj):
    """Fused BasicBlock forward for one image (one grid step)."""
    if proj:
        wsc_ref, ssc_ref, bsc_ref, o_ref, act_ref = rest
    else:
        o_ref, act_ref = rest

    wp = wo + 2                 # row pitch of input planes, scratch and output
    m = ho * wp                 # matmul M (includes 2 junk columns per row)
    coutp = o_ref.shape[-1]
    r_act = act_ref.shape[0]
    head = _round_up(wo + 3, 8)      # aligned start of conv1's rows in scratch
    base = head - (wo + 3)           # flat origin of the (ho+2, wo+2) frame

    # ---- conv1 (3x3, stride) : 9 contiguous row-window matmuls, f32 acc ---- #
    acc = None
    for kh, kw in _TAPS:
        if stride == 1:
            p, start = 0, kh * wp + kw
        else:  # stride == 2: pick the parity plane; window stays contiguous.
            p, start = (kh % 2) * 2 + (kw % 2), (kh // 2) * wp + (kw // 2)
        d = jnp.dot(planes_ref[p, start:start + m, :], w1_ref[kh * 3 + kw],
                    preferred_element_type=jnp.float32)
        acc = d if acc is None else acc + d
    y1 = jnp.maximum(acc * s1_ref[...] + b1_ref[...], 0.0)        # bn1 + relu

    # Zero the junk columns so they double as conv2's zero halo once stored.
    col = jax.lax.broadcasted_iota(jnp.int32, (m, 1), 0) % wp
    y1 = jnp.where(col < wo, y1, 0.0)

    # Stage conv1 activation (bf16) as the flat zero-padded conv2 input.  Only
    # the halo head/tail that the y1 store does not cover is zeroed, every
    # step (never gated on program_id: the grid may be sharded across cores).
    act_ref[0:head, :] = jnp.zeros((head, coutp), jnp.bfloat16)
    act_ref[head + m:r_act, :] = jnp.zeros((r_act - head - m, coutp),
                                           jnp.bfloat16)
    act_ref[head:head + m, :] = y1.astype(jnp.bfloat16)           # one cast

    # ---- conv2 (3x3, stride 1) on the staged bf16 activation --------------- #
    acc2 = None
    for kh, kw in _TAPS:
        start = base + kh * wp + kw
        d = jnp.dot(act_ref[start:start + m, :], w2_ref[kh * 3 + kw],
                    preferred_element_type=jnp.float32)
        acc2 = d if acc2 is None else acc2 + d
    y2 = acc2 * s2_ref[...] + b2_ref[...]                          # bn2

    # ---- shortcut ----------------------------------------------------------- #
    if proj:
        if stride == 1:
            xs = planes_ref[0, wo + 3:wo + 3 + m, :]
        else:  # (odd row, odd col) parity plane == x[::2, ::2]
            xs = planes_ref[3, 0:m, :]
        sc = jnp.dot(xs, wsc_ref[...], preferred_element_type=jnp.float32)
        sc = sc * ssc_ref[...] + bsc_ref[...]
    else:  # identity (stride == 1 and cin == planes)
        sc = planes_ref[0, wo + 3:wo + 3 + m, :].astype(jnp.float32)

    # Flat lane-dense bf16 output block (junk columns stripped in the wrapper).
    o_ref[...] = jnp.maximum(y2 + sc, 0.0).astype(o_ref.dtype)


# ------------------------------- JAX wrapper -------------------------------- #
def basic_block_forward(x_nchw, params, stride):
    """Forward pass of BasicBlock (stoch=False). Input/output are NCHW f32."""
    assert stride in (1, 2), "ResNet BasicBlock only uses stride 1 or 2"
    # bf16 HBM I/O; NCHW -> NHWC once at the module boundary.
    x = jnp.transpose(x_nchw, (0, 2, 3, 1)).astype(jnp.bfloat16)
    n, h, w, cin = x.shape
    planes = params["w1"].shape[-1]
    proj = (stride != 1) or (cin != planes)
    if stride == 2:
        assert h % 2 == 0 and w % 2 == 0

    ho = (h - 1) // stride + 1
    wo = (w - 1) // stride + 1
    wp = wo + 2                                   # flat row pitch everywhere
    hp = ho + 2 if stride == 1 else ho + 1        # plane height
    m_out = ho * wp

    # Lane-dense channel padding (multiple of 128).
    cinp = _round_up(cin, 128)
    coutp = _round_up(planes, 128)

    # Flattened-plane row counts (+2 for the last-tap window overhang).
    r_in = _round_up(hp * wp + 2, 8)
    head = _round_up(wo + 3, 8)
    base = head - (wo + 3)
    r_act = _round_up(base + (ho + 2) * wp + 2, 8)

    # Zero-pad spatially (conv pad=1) and pad channels; flatten to 2-D planes.
    xp = jnp.pad(x, ((0, 0), (1, 1), (1, 1), (0, cinp - cin)))
    if stride == 1:
        planes_arr = xp.reshape(n, 1, hp * wp, cinp)
    else:
        # Parity decomposition: every tap of the strided conv becomes a
        # contiguous row window of one plane (no in-kernel strides).
        planes_arr = jnp.stack(
            [xp[:, p::2, q::2, :] for p in (0, 1) for q in (0, 1)], axis=1)
        planes_arr = jnp.pad(planes_arr,            # plane width wo+1 -> wo+2
                             ((0, 0), (0, 0), (0, 0), (0, 1), (0, 0)))
        planes_arr = planes_arr.reshape(n, 4, hp * wp, cinp)
    planes_arr = jnp.pad(planes_arr,
                         ((0, 0), (0, 0), (0, r_in - hp * wp), (0, 0)))
    pcount = planes_arr.shape[1]

    # Weights: HWIO, channel-padded, (9, Cin_p, Cout_p) bf16 for the MXU.
    w1p = jnp.pad(params["w1"],
                  ((0, 0), (0, 0), (0, cinp - cin), (0, coutp - planes)))
    w1p = w1p.reshape(9, cinp, coutp).astype(jnp.bfloat16)
    w2p = jnp.pad(params["w2"],
                  ((0, 0), (0, 0), (0, coutp - planes), (0, coutp - planes)))
    w2p = w2p.reshape(9, coutp, coutp).astype(jnp.bfloat16)

    def fold_pad(bn):
        s, b = _fold_bn(*bn)
        s = jnp.pad(s, (0, coutp - s.shape[0])).reshape(1, coutp)
        b = jnp.pad(b, (0, coutp - b.shape[0])).reshape(1, coutp)
        return s.astype(jnp.float32), b.astype(jnp.float32)

    s1, b1 = fold_pad(params["bn1"])
    s2, b2 = fold_pad(params["bn2"])

    resident2 = lambda i: (0, 0)
    resident3 = lambda i: (0, 0, 0)
    inputs = [planes_arr, w1p, w2p, s1, b1, s2, b2]
    in_specs = [
        pl.BlockSpec((None, pcount, r_in, cinp), lambda i: (i, 0, 0, 0)),
        pl.BlockSpec((9, cinp, coutp), resident3),
        pl.BlockSpec((9, coutp, coutp), resident3),
        pl.BlockSpec((1, coutp), resident2),   # s1
        pl.BlockSpec((1, coutp), resident2),   # b1
        pl.BlockSpec((1, coutp), resident2),   # s2
        pl.BlockSpec((1, coutp), resident2),   # b2
    ]
    if proj:
        wsc = jnp.pad(params["w_sc"],
                      ((0, cinp - cin), (0, coutp - planes))).astype(jnp.bfloat16)
        ssc, bsc = fold_pad(params["bn_sc"])
        inputs += [wsc, ssc, bsc]
        in_specs += [
            pl.BlockSpec((cinp, coutp), resident2),
            pl.BlockSpec((1, coutp), resident2),
            pl.BlockSpec((1, coutp), resident2),
        ]

    kernel = functools.partial(_basic_block_kernel, stride=stride,
                               ho=ho, wo=wo, proj=proj)

    out = pl.pallas_call(
        kernel,
        out_shape=jax.ShapeDtypeStruct((n, m_out, coutp), jnp.bfloat16),
        grid=(n,),
        in_specs=in_specs,
        out_specs=pl.BlockSpec((None, m_out, coutp), lambda i: (i, 0, 0)),
        scratch_shapes=[pltpu.VMEM((r_act, coutp), jnp.bfloat16)],
        compiler_params=pltpu.CompilerParams(
            dimension_semantics=("parallel",),
            vmem_limit_bytes=48 * 1024 * 1024,
        ),
    )(*inputs)

    # Strip junk columns / channel padding; fused with the boundary transpose.
    out = out.reshape(n, ho, wp, coutp)[:, :, :wo, :planes]
    return jnp.transpose(out, (0, 3, 1, 2)).astype(jnp.float32)   # NHWC -> NCHW


# --------------------------- pure-JAX reference ------------------------------ #
def _reference_forward(x_nchw, params, stride):
    """Reference mirroring the kernel's bf16 rounding points (f32 math)."""
    f32 = jnp.float32
    rnd = lambda a: a.astype(jnp.bfloat16).astype(f32)
    x = rnd(jnp.transpose(x_nchw, (0, 2, 3, 1)).astype(f32))
    dn = ("NHWC", "HWIO", "NHWC")
    hi = jax.lax.Precision.HIGHEST

    def conv(inp, w, s, pad):
        return jax.lax.conv_general_dilated(
            rnd(inp), rnd(w), window_strides=(s, s), padding=pad,
            dimension_numbers=dn, precision=hi)

    def bn(inp, p):
        sc, bi = _fold_bn(*p)
        return inp * sc + bi

    out = jax.nn.relu(bn(conv(x, params["w1"], stride, ((1, 1), (1, 1))),
                         params["bn1"]))
    out = bn(conv(out, params["w2"], 1, ((1, 1), (1, 1))), params["bn2"])
    cin = x.shape[-1]
    planes = params["w1"].shape[-1]
    if stride != 1 or cin != planes:
        sc = conv(x, params["w_sc"][None, None], stride, ((0, 0), (0, 0)))
        sc = bn(sc, params["bn_sc"])
    else:
        sc = x
    out = jax.nn.relu(out + sc)
    return jnp.transpose(out, (0, 3, 1, 2))


# ----------------------------------- main ------------------------------------ #
if __name__ == "__main__":
    key = jax.random.PRNGKey(0)
    ks = jax.random.split(key, 16)

    def bn_params(k, c):
        k1, k2, k3, k4 = jax.random.split(k, 4)
        gamma = jax.random.uniform(k1, (c,), minval=0.5, maxval=1.5)
        beta = 0.1 * jax.random.normal(k2, (c,))
        mean = 0.1 * jax.random.normal(k3, (c,))
        var = jax.random.uniform(k4, (c,), minval=0.5, maxval=1.5)
        return (gamma, beta, mean, var)

    # Case 1: projection shortcut (stride=2, channel change).
    N, in_planes, H, W = 2, 4, 16, 16
    planes, stride = 8, 2
    x = jax.random.normal(ks[0], (N, in_planes, H, W), dtype=jnp.float32)
    params = {
        "w1": 0.1 * jax.random.normal(ks[1], (3, 3, in_planes, planes)),
        "w2": 0.1 * jax.random.normal(ks[2], (3, 3, planes, planes)),
        "w_sc": 0.1 * jax.random.normal(ks[3], (in_planes, planes)),
        "bn1": bn_params(ks[4], planes),
        "bn2": bn_params(ks[5], planes),
        "bn_sc": bn_params(ks[6], planes),
    }
    out = jax.block_until_ready(basic_block_forward(x, params, stride))
    ref = jax.block_until_ready(_reference_forward(x, params, stride))
    assert out.shape == (N, planes, H // stride, W // stride), out.shape
    assert jnp.allclose(out, ref, atol=2e-2, rtol=2e-2), "mismatch (projection)"

    # Case 2: identity shortcut (stride=1, same channels).
    c2 = 8
    x2 = jax.random.normal(ks[7], (N, c2, H, W), dtype=jnp.float32)
    params2 = {
        "w1": 0.1 * jax.random.normal(ks[8], (3, 3, c2, c2)),
        "w2": 0.1 * jax.random.normal(ks[9], (3, 3, c2, c2)),
        "bn1": bn_params(ks[10], c2),
        "bn2": bn_params(ks[11], c2),
    }
    out2 = jax.block_until_ready(basic_block_forward(x2, params2, 1))
    ref2 = jax.block_until_ready(_reference_forward(x2, params2, 1))
    assert out2.shape == (N, c2, H, W), out2.shape
    assert jnp.allclose(out2, ref2, atol=2e-2, rtol=2e-2), "mismatch (identity)"

    print("KERNEL_OK")
</pallas_src>

<mosaic_0001>
module attributes {stable_mosaic.version = 11 : i64} {
  func.func @_basic_block_kernel(%arg0: i32, %arg1: memref<1x4x96x128xbf16, #tpu.memory_space<vmem>>, %arg2: memref<9x128x128xbf16, #tpu.memory_space<vmem>>, %arg3: memref<9x128x128xbf16, #tpu.memory_space<vmem>>, %arg4: memref<1x128xf32, #tpu.memory_space<vmem>>, %arg5: memref<1x128xf32, #tpu.memory_space<vmem>>, %arg6: memref<1x128xf32, #tpu.memory_space<vmem>>, %arg7: memref<1x128xf32, #tpu.memory_space<vmem>>, %arg8: memref<128x128xbf16, #tpu.memory_space<vmem>>, %arg9: memref<1x128xf32, #tpu.memory_space<vmem>>, %arg10: memref<1x128xf32, #tpu.memory_space<vmem>>, %arg11: memref<1x80x128xbf16, #tpu.memory_space<vmem>>, %arg12: memref<112x128xbf16, #tpu.memory_space<vmem>>) attributes {dimension_semantics = [#tpu.dimension_semantics<parallel>], iteration_bounds = array<i64: 2>, scalar_prefetch = 0 : i64, scratch_operands = 1 : i64, tpu.core_type = #tpu.core_type<tc>, window_params = [{transform_indices = @transform_0, window_bounds = array<i64: 1, 4, 96, 128>}, {pipeline_mode = #tpu.pipeline_mode<synchronous>, transform_indices = @transform_1, window_bounds = array<i64: 9, 128, 128>}, {pipeline_mode = #tpu.pipeline_mode<synchronous>, transform_indices = @transform_2, window_bounds = array<i64: 9, 128, 128>}, {pipeline_mode = #tpu.pipeline_mode<synchronous>, transform_indices = @transform_3, window_bounds = array<i64: 1, 128>}, {pipeline_mode = #tpu.pipeline_mode<synchronous>, transform_indices = @transform_4, window_bounds = array<i64: 1, 128>}, {pipeline_mode = #tpu.pipeline_mode<synchronous>, transform_indices = @transform_5, window_bounds = array<i64: 1, 128>}, {pipeline_mode = #tpu.pipeline_mode<synchronous>, transform_indices = @transform_6, window_bounds = array<i64: 1, 128>}, {pipeline_mode = #tpu.pipeline_mode<synchronous>, transform_indices = @transform_7, window_bounds = array<i64: 128, 128>}, {pipeline_mode = #tpu.pipeline_mode<synchronous>, transform_indices = @transform_8, window_bounds = array<i64: 1, 128>}, {pipeline_mode = #tpu.pipeline_mode<synchronous>, transform_indices = @transform_9, window_bounds = array<i64: 1, 128>}, {transform_indices = @transform_10, window_bounds = array<i64: 1, 80, 128>}]} {
    %c0 = arith.constant 0 : index
    %c0_0 = arith.constant 0 : index
    %c0_1 = arith.constant 0 : index
    %c0_2 = arith.constant 0 : index
    %0 = vector.load %arg1[%c0, %c0_0, %c0_1, %c0_2] : memref<1x4x96x128xbf16, #tpu.memory_space<vmem>>, vector<1x1x80x128xbf16>
    %1 = vector.shape_cast %0 : vector<1x1x80x128xbf16> to vector<80x128xbf16>
    %c0_3 = arith.constant 0 : index
    %c0_4 = arith.constant 0 : index
    %c0_5 = arith.constant 0 : index
    %2 = vector.load %arg2[%c0_3, %c0_4, %c0_5] : memref<9x128x128xbf16, #tpu.memory_space<vmem>>, vector<1x128x128xbf16>
    %3 = vector.shape_cast %2 : vector<1x128x128xbf16> to vector<128x128xbf16>
    %cst = arith.constant dense<0.000000e+00> : vector<80x128xf32>
    %4 = tpu.matmul %1, %3, %cst {dimension_numbers = #tpu.dot_dimension_numbers<[1], [0], [0], [1], [0, 0, 1, 1], [], []>} : vector<80x128xbf16>, vector<128x128xbf16>, vector<80x128xf32> -> vector<80x128xf32>
    %c0_6 = arith.constant 0 : index
    %c1 = arith.constant 1 : index
    %c0_7 = arith.constant 0 : index
    %c0_8 = arith.constant 0 : index
    %5 = vector.load %arg1[%c0_6, %c1, %c0_7, %c0_8] : memref<1x4x96x128xbf16, #tpu.memory_space<vmem>>, vector<1x1x80x128xbf16>
    %6 = vector.shape_cast %5 : vector<1x1x80x128xbf16> to vector<80x128xbf16>
    %c1_9 = arith.constant 1 : index
    %c0_10 = arith.constant 0 : index
    %c0_11 = arith.constant 0 : index
    %7 = vector.load %arg2[%c1_9, %c0_10, %c0_11] : memref<9x128x128xbf16, #tpu.memory_space<vmem>>, vector<1x128x128xbf16>
    %8 = vector.shape_cast %7 : vector<1x128x128xbf16> to vector<128x128xbf16>
    %cst_12 = arith.constant dense<0.000000e+00> : vector<80x128xf32>
    %9 = tpu.matmul %6, %8, %cst_12 {dimension_numbers = #tpu.dot_dimension_numbers<[1], [0], [0], [1], [0, 0, 1, 1], [], []>} : vector<80x128xbf16>, vector<128x128xbf16>, vector<80x128xf32> -> vector<80x128xf32>
    %10 = arith.addf %4, %9 : vector<80x128xf32>
    %c0_13 = arith.constant 0 : index
    %c0_14 = arith.constant 0 : index
    %c1_15 = arith.constant 1 : index
    %c0_16 = arith.constant 0 : index
    %11 = vector.load %arg1[%c0_13, %c0_14, %c1_15, %c0_16] : memref<1x4x96x128xbf16, #tpu.memory_space<vmem>>, vector<1x1x80x128xbf16>
    %12 = vector.shape_cast %11 : vector<1x1x80x128xbf16> to vector<80x128xbf16>
    %c2 = arith.constant 2 : index
    %c0_17 = arith.constant 0 : index
    %c0_18 = arith.constant 0 : index
    %13 = vector.load %arg2[%c2, %c0_17, %c0_18] : memref<9x128x128xbf16, #tpu.memory_space<vmem>>, vector<1x128x128xbf16>
    %14 = vector.shape_cast %13 : vector<1x128x128xbf16> to vector<128x128xbf16>
    %cst_19 = arith.constant dense<0.000000e+00> : vector<80x128xf32>
    %15 = tpu.matmul %12, %14, %cst_19 {dimension_numbers = #tpu.dot_dimension_numbers<[1], [0], [0], [1], [0, 0, 1, 1], [], []>} : vector<80x128xbf16>, vector<128x128xbf16>, vector<80x128xf32> -> vector<80x128xf32>
    %16 = arith.addf %10, %15 : vector<80x128xf32>
    %c0_20 = arith.constant 0 : index
    %c2_21 = arith.constant 2 : index
    %c0_22 = arith.constant 0 : index
    %c0_23 = arith.constant 0 : index
    %17 = vector.load %arg1[%c0_20, %c2_21, %c0_22, %c0_23] : memref<1x4x96x128xbf16, #tpu.memory_space<vmem>>, vector<1x1x80x128xbf16>
    %18 = vector.shape_cast %17 : vector<1x1x80x128xbf16> to vector<80x128xbf16>
    %c3 = arith.constant 3 : index
    %c0_24 = arith.constant 0 : index
    %c0_25 = arith.constant 0 : index
    %19 = vector.load %arg2[%c3, %c0_24, %c0_25] : memref<9x128x128xbf16, #tpu.memory_space<vmem>>, vector<1x128x128xbf16>
    %20 = vector.shape_cast %19 : vector<1x128x128xbf16> to vector<128x128xbf16>
    %cst_26 = arith.constant dense<0.000000e+00> : vector<80x128xf32>
    %21 = tpu.matmul %18, %20, %cst_26 {dimension_numbers = #tpu.dot_dimension_numbers<[1], [0], [0], [1], [0, 0, 1, 1], [], []>} : vector<80x128xbf16>, vector<128x128xbf16>, vector<80x128xf32> -> vector<80x128xf32>
    %22 = arith.addf %16, %21 : vector<80x128xf32>
    %c0_27 = arith.constant 0 : index
    %c3_28 = arith.constant 3 : index
    %c0_29 = arith.constant 0 : index
    %c0_30 = arith.constant 0 : index
    %23 = vector.load %arg1[%c0_27, %c3_28, %c0_29, %c0_30] : memref<1x4x96x128xbf16, #tpu.memory_space<vmem>>, vector<1x1x80x128xbf16>
    %24 = vector.shape_cast %23 : vector<1x1x80x128xbf16> to vector<80x128xbf16>
    %c4 = arith.constant 4 : index
    %c0_31 = arith.constant 0 : index
    %c0_32 = arith.constant 0 : index
    %25 = vector.load %arg2[%c4, %c0_31, %c0_32] : memref<9x128x128xbf16, #tpu.memory_space<vmem>>, vector<1x128x128xbf16>
    %26 = vector.shape_cast %25 : vector<1x128x128xbf16> to vector<128x128xbf16>
    %cst_33 = arith.constant dense<0.000000e+00> : vector<80x128xf32>
    %27 = tpu.matmul %24, %26, %cst_33 {dimension_numbers = #tpu.dot_dimension_numbers<[1], [0], [0], [1], [0, 0, 1, 1], [], []>} : vector<80x128xbf16>, vector<128x128xbf16>, vector<80x128xf32> -> vector<80x128xf32>
    %28 = arith.addf %22, %27 : vector<80x128xf32>
    %c0_34 = arith.constant 0 : index
    %c2_35 = arith.constant 2 : index
    %c1_36 = arith.constant 1 : index
    %c0_37 = arith.constant 0 : index
    %29 = vector.load %arg1[%c0_34, %c2_35, %c1_36, %c0_37] : memref<1x4x96x128xbf16, #tpu.memory_space<vmem>>, vector<1x1x80x128xbf16>
    %30 = vector.shape_cast %29 : vector<1x1x80x128xbf16> to vector<80x128xbf16>
    %c5 = arith.constant 5 : index
    %c0_38 = arith.constant 0 : index
    %c0_39 = arith.constant 0 : index
    %31 = vector.load %arg2[%c5, %c0_38, %c0_39] : memref<9x128x128xbf16, #tpu.memory_space<vmem>>, vector<1x128x128xbf16>
    %32 = vector.shape_cast %31 : vector<1x128x128xbf16> to vector<128x128xbf16>
    %cst_40 = arith.constant dense<0.000000e+00> : vector<80x128xf32>
    %33 = tpu.matmul %30, %32, %cst_40 {dimension_numbers = #tpu.dot_dimension_numbers<[1], [0], [0], [1], [0, 0, 1, 1], [], []>} : vector<80x128xbf16>, vector<128x128xbf16>, vector<80x128xf32> -> vector<80x128xf32>
    %34 = arith.addf %28, %33 : vector<80x128xf32>
    %c0_41 = arith.constant 0 : index
    %c0_42 = arith.constant 0 : index
    %c10 = arith.constant 10 : index
    %c0_43 = arith.constant 0 : index
    %35 = vector.load %arg1[%c0_41, %c0_42, %c10, %c0_43] : memref<1x4x96x128xbf16, #tpu.memory_space<vmem>>, vector<1x1x80x128xbf16>
    %36 = vector.shape_cast %35 : vector<1x1x80x128xbf16> to vector<80x128xbf16>
    %c6 = arith.constant 6 : index
    %c0_44 = arith.constant 0 : index
    %c0_45 = arith.constant 0 : index
    %37 = vector.load %arg2[%c6, %c0_44, %c0_45] : memref<9x128x128xbf16, #tpu.memory_space<vmem>>, vector<1x128x128xbf16>
    %38 = vector.shape_cast %37 : vector<1x128x128xbf16> to vector<128x128xbf16>
    %cst_46 = arith.constant dense<0.000000e+00> : vector<80x128xf32>
    %39 = tpu.matmul %36, %38, %cst_46 {dimension_numbers = #tpu.dot_dimension_numbers<[1], [0], [0], [1], [0, 0, 1, 1], [], []>} : vector<80x128xbf16>, vector<128x128xbf16>, vector<80x128xf32> -> vector<80x128xf32>
    %40 = arith.addf %34, %39 : vector<80x128xf32>
    %c0_47 = arith.constant 0 : index
    %c1_48 = arith.constant 1 : index
    %c10_49 = arith.constant 10 : index
    %c0_50 = arith.constant 0 : index
    %41 = vector.load %arg1[%c0_47, %c1_48, %c10_49, %c0_50] : memref<1x4x96x128xbf16, #tpu.memory_space<vmem>>, vector<1x1x80x128xbf16>
    %42 = vector.shape_cast %41 : vector<1x1x80x128xbf16> to vector<80x128xbf16>
    %c7 = arith.constant 7 : index
    %c0_51 = arith.constant 0 : index
    %c0_52 = arith.constant 0 : index
    %43 = vector.load %arg2[%c7, %c0_51, %c0_52] : memref<9x128x128xbf16, #tpu.memory_space<vmem>>, vector<1x128x128xbf16>
    %44 = vector.shape_cast %43 : vector<1x128x128xbf16> to vector<128x128xbf16>
    %cst_53 = arith.constant dense<0.000000e+00> : vector<80x128xf32>
    %45 = tpu.matmul %42, %44, %cst_53 {dimension_numbers = #tpu.dot_dimension_numbers<[1], [0], [0], [1], [0, 0, 1, 1], [], []>} : vector<80x128xbf16>, vector<128x128xbf16>, vector<80x128xf32> -> vector<80x128xf32>
    %46 = arith.addf %40, %45 : vector<80x128xf32>
    %c0_54 = arith.constant 0 : index
    %c0_55 = arith.constant 0 : index
    %c11 = arith.constant 11 : index
    %c0_56 = arith.constant 0 : index
    %47 = vector.load %arg1[%c0_54, %c0_55, %c11, %c0_56] : memref<1x4x96x128xbf16, #tpu.memory_space<vmem>>, vector<1x1x80x128xbf16>
    %48 = vector.shape_cast %47 : vector<1x1x80x128xbf16> to vector<80x128xbf16>
    %c8 = arith.constant 8 : index
    %c0_57 = arith.constant 0 : index
    %c0_58 = arith.constant 0 : index
    %49 = vector.load %arg2[%c8, %c0_57, %c0_58] : memref<9x128x128xbf16, #tpu.memory_space<vmem>>, vector<1x128x128xbf16>
    %50 = vector.shape_cast %49 : vector<1x128x128xbf16> to vector<128x128xbf16>
    %cst_59 = arith.constant dense<0.000000e+00> : vector<80x128xf32>
    %51 = tpu.matmul %48, %50, %cst_59 {dimension_numbers = #tpu.dot_dimension_numbers<[1], [0], [0], [1], [0, 0, 1, 1], [], []>} : vector<80x128xbf16>, vector<128x128xbf16>, vector<80x128xf32> -> vector<80x128xf32>
    %52 = arith.addf %46, %51 : vector<80x128xf32>
    %c0_60 = arith.constant 0 : index
    %c0_61 = arith.constant 0 : index
    %53 = vector.load %arg4[%c0_60, %c0_61] : memref<1x128xf32, #tpu.memory_space<vmem>>, vector<1x128xf32>
    %54 = vector.broadcast %53 : vector<1x128xf32> to vector<80x128xf32>
    %55 = arith.mulf %52, %54 : vector<80x128xf32>
    %c0_62 = arith.constant 0 : index
    %c0_63 = arith.constant 0 : index
    %56 = vector.load %arg5[%c0_62, %c0_63] : memref<1x128xf32, #tpu.memory_space<vmem>>, vector<1x128xf32>
    %57 = vector.broadcast %56 : vector<1x128xf32> to vector<80x128xf32>
    %58 = arith.addf %55, %57 : vector<80x128xf32>
    %cst_64 = arith.constant 0.000000e+00 : f32
    %59 = vector.broadcast %cst_64 : f32 to vector<80x128xf32>
    %60 = arith.maximumf %58, %59 : vector<80x128xf32>
    %61 = tpu.iota {dimensions = array<i32: 0>} : vector<80x1xi32>
    %c10_i32 = arith.constant 10 : i32
    %c0_i32 = arith.constant 0 : i32
    %62 = arith.cmpi eq, %c10_i32, %c0_i32 : i32
    %c1_i32 = arith.constant 1 : i32
    %63 = arith.select %62, %c1_i32, %c10_i32 : i32
    %64 = vector.broadcast %63 : i32 to vector<80x1xi32>
    %65 = arith.remsi %61, %64 : vector<80x1xi32>
    %c0_i32_65 = arith.constant 0 : i32
    %66 = vector.broadcast %c0_i32_65 : i32 to vector<80x1xi32>
    %67 = arith.cmpi ne, %65, %66 : vector<80x1xi32>
    %c0_i32_66 = arith.constant 0 : i32
    %68 = vector.broadcast %c0_i32_66 : i32 to vector<80x1xi32>
    %69 = arith.cmpi slt, %65, %68 : vector<80x1xi32>
    %c0_i32_67 = arith.constant 0 : i32
    %70 = arith.cmpi slt, %63, %c0_i32_67 : i32
    %71 = vector.broadcast %70 : i1 to vector<80x1xi1>
    %72 = vector.broadcast %71 : vector<80x1xi1> to vector<80x1xi1>
    %73 = arith.xori %69, %72 : vector<80x1xi1>
    %74 = arith.andi %73, %67 : vector<80x1xi1>
    %75 = vector.broadcast %63 : i32 to vector<80x1xi32>
    %76 = arith.addi %65, %75 : vector<80x1xi32>
    %77 = arith.select %74, %76, %65 : vector<80x1xi1>, vector<80x1xi32>
    %c8_i32 = arith.constant 8 : i32
    %78 = vector.broadcast %c8_i32 : i32 to vector<80x1xi32>
    %79 = arith.cmpi slt, %77, %78 : vector<80x1xi32>
    %cst_68 = arith.constant 0.000000e+00 : f32
    %80 = vector.shape_cast %79 : vector<80x1xi1> to vector<80x1xi1>
    %81 = vector.broadcast %80 : vector<80x1xi1> to vector<80x128xi1>
    %82 = vector.broadcast %cst_68 : f32 to vector<80x128xf32>
    %83 = arith.select %81, %60, %82 : vector<80x128xi1>, vector<80x128xf32>
    %cst_69 = arith.constant 0.000000e+00 : bf16
    %84 = vector.broadcast %cst_69 : bf16 to vector<16x128xbf16>
    %c0_70 = arith.constant 0 : index
    %c0_71 = arith.constant 0 : index
    %85 = vector.load %arg12[%c0_70, %c0_71] : memref<112x128xbf16, #tpu.memory_space<vmem>>, vector<16x128xbf16>
    tpu.vector_store %arg12[%c0_70, %c0_71], %84 {strides = array<i32>} : memref<112x128xbf16, #tpu.memory_space<vmem>>, vector<16x128xbf16>,
    %cst_72 = arith.constant 0.000000e+00 : bf16
    %86 = vector.broadcast %cst_72 : bf16 to vector<16x128xbf16>
    %c96 = arith.constant 96 : index
    %c0_73 = arith.constant 0 : index
    %87 = vector.load %arg12[%c96, %c0_73] : memref<112x128xbf16, #tpu.memory_space<vmem>>, vector<16x128xbf16>
    tpu.vector_store %arg12[%c96, %c0_73], %86 {strides = array<i32>} : memref<112x128xbf16, #tpu.memory_space<vmem>>, vector<16x128xbf16>,
    %88 = arith.truncf %83 : vector<80x128xf32> to vector<80x128xbf16>
    %c16 = arith.constant 16 : index
    %c0_74 = arith.constant 0 : index
    %89 = vector.load %arg12[%c16, %c0_74] : memref<112x128xbf16, #tpu.memory_space<vmem>>, vector<80x128xbf16>
    tpu.vector_store %arg12[%c16, %c0_74], %88 {strides = array<i32>} : memref<112x128xbf16, #tpu.memory_space<vmem>>, vector<80x128xbf16>,
    %c5_75 = arith.constant 5 : index
    %c0_76 = arith.constant 0 : index
    %90 = vector.load %arg12[%c5_75, %c0_76] : memref<112x128xbf16, #tpu.memory_space<vmem>>, vector<80x128xbf16>
    %c0_77 = arith.constant 0 : index
    %c0_78 = arith.constant 0 : index
    %c0_79 = arith.constant 0 : index
    %91 = vector.load %arg3[%c0_77, %c0_78, %c0_79] : memref<9x128x128xbf16, #tpu.memory_space<vmem>>, vector<1x128x128xbf16>
    %92 = vector.shape_cast %91 : vector<1x128x128xbf16> to vector<128x128xbf16>
    %cst_80 = arith.constant dense<0.000000e+00> : vector<80x128xf32>
    %93 = tpu.matmul %90, %92, %cst_80 {dimension_numbers = #tpu.dot_dimension_numbers<[1], [0], [0], [1], [0, 0, 1, 1], [], []>} : vector<80x128xbf16>, vector<128x128xbf16>, vector<80x128xf32> -> vector<80x128xf32>
    %c6_81 = arith.constant 6 : index
    %c0_82 = arith.constant 0 : index
    %94 = vector.load %arg12[%c6_81, %c0_82] : memref<112x128xbf16, #tpu.memory_space<vmem>>, vector<80x128xbf16>
    %c1_83 = arith.constant 1 : index
    %c0_84 = arith.constant 0 : index
    %c0_85 = arith.constant 0 : index
    %95 = vector.load %arg3[%c1_83, %c0_84, %c0_85] : memref<9x128x128xbf16, #tpu.memory_space<vmem>>, vector<1x128x128xbf16>
    %96 = vector.shape_cast %95 : vector<1x128x128xbf16> to vector<128x128xbf16>
    %cst_86 = arith.constant dense<0.000000e+00> : vector<80x128xf32>
    %97 = tpu.matmul %94, %96, %cst_86 {dimension_numbers = #tpu.dot_dimension_numbers<[1], [0], [0], [1], [0, 0, 1, 1], [], []>} : vector<80x128xbf16>, vector<128x128xbf16>, vector<80x128xf32> -> vector<80x128xf32>
    %98 = arith.addf %93, %97 : vector<80x128xf32>
    %c7_87 = arith.constant 7 : index
    %c0_88 = arith.constant 0 : index
    %99 = vector.load %arg12[%c7_87, %c0_88] : memref<112x128xbf16, #tpu.memory_space<vmem>>, vector<80x128xbf16>
    %c2_89 = arith.constant 2 : index
    %c0_90 = arith.constant 0 : index
    %c0_91 = arith.constant 0 : index
    %100 = vector.load %arg3[%c2_89, %c0_90, %c0_91] : memref<9x128x128xbf16, #tpu.memory_space<vmem>>, vector<1x128x128xbf16>
    %101 = vector.shape_cast %100 : vector<1x128x128xbf16> to vector<128x128xbf16>
    %cst_92 = arith.constant dense<0.000000e+00> : vector<80x128xf32>
    %102 = tpu.matmul %99, %101, %cst_92 {dimension_numbers = #tpu.dot_dimension_numbers<[1], [0], [0], [1], [0, 0, 1, 1], [], []>} : vector<80x128xbf16>, vector<128x128xbf16>, vector<80x128xf32> -> vector<80x128xf32>
    %103 = arith.addf %98, %102 : vector<80x128xf32>
    %c15 = arith.constant 15 : index
    %c0_93 = arith.constant 0 : index
    %104 = vector.load %arg12[%c15, %c0_93] : memref<112x128xbf16, #tpu.memory_space<vmem>>, vector<80x128xbf16>
    %c3_94 = arith.constant 3 : index
    %c0_95 = arith.constant 0 : index
    %c0_96 = arith.constant 0 : index
    %105 = vector.load %arg3[%c3_94, %c0_95, %c0_96] : memref<9x128x128xbf16, #tpu.memory_space<vmem>>, vector<1x128x128xbf16>
    %106 = vector.shape_cast %105 : vector<1x128x128xbf16> to vector<128x128xbf16>
    %cst_97 = arith.constant dense<0.000000e+00> : vector<80x128xf32>
    %107 = tpu.matmul %104, %106, %cst_97 {dimension_numbers = #tpu.dot_dimension_numbers<[1], [0], [0], [1], [0, 0, 1, 1], [], []>} : vector<80x128xbf16>, vector<128x128xbf16>, vector<80x128xf32> -> vector<80x128xf32>
    %108 = arith.addf %103, %107 : vector<80x128xf32>
    %c16_98 = arith.constant 16 : index
    %c0_99 = arith.constant 0 : index
    %109 = vector.load %arg12[%c16_98, %c0_99] : memref<112x128xbf16, #tpu.memory_space<vmem>>, vector<80x128xbf16>
    %c4_100 = arith.constant 4 : index
    %c0_101 = arith.constant 0 : index
    %c0_102 = arith.constant 0 : index
    %110 = vector.load %arg3[%c4_100, %c0_101, %c0_102] : memref<9x128x128xbf16, #tpu.memory_space<vmem>>, vector<1x128x128xbf16>
    %111 = vector.shape_cast %110 : vector<1x128x128xbf16> to vector<128x128xbf16>
    %cst_103 = arith.constant dense<0.000000e+00> : vector<80x128xf32>
    %112 = tpu.matmul %109, %111, %cst_103 {dimension_numbers = #tpu.dot_dimension_numbers<[1], [0], [0], [1], [0, 0, 1, 1], [], []>} : vector<80x128xbf16>, vector<128x128xbf16>, vector<80x128xf32> -> vector<80x128xf32>
    %113 = arith.addf %108, %112 : vector<80x128xf32>
    %c17 = arith.constant 17 : index
    %c0_104 = arith.constant 0 : index
    %114 = vector.load %arg12[%c17, %c0_104] : memref<112x128xbf16, #tpu.memory_space<vmem>>, vector<80x128xbf16>
    %c5_105 = arith.constant 5 : index
    %c0_106 = arith.constant 0 : index
    %c0_107 = arith.constant 0 : index
    %115 = vector.load %arg3[%c5_105, %c0_106, %c0_107] : memref<9x128x128xbf16, #tpu.memory_space<vmem>>, vector<1x128x128xbf16>
    %116 = vector.shape_cast %115 : vector<1x128x128xbf16> to vector<128x128xbf16>
    %cst_108 = arith.constant dense<0.000000e+00> : vector<80x128xf32>
    %117 = tpu.matmul %114, %116, %cst_108 {dimension_numbers = #tpu.dot_dimension_numbers<[1], [0], [0], [1], [0, 0, 1, 1], [], []>} : vector<80x128xbf16>, vector<128x128xbf16>, vector<80x128xf32> -> vector<80x128xf32>
    %118 = arith.addf %113, %117 : vector<80x128xf32>
    %c25 = arith.constant 25 : index
    %c0_109 = arith.constant 0 : index
    %119 = vector.load %arg12[%c25, %c0_109] : memref<112x128xbf16, #tpu.memory_space<vmem>>, vector<80x128xbf16>
    %c6_110 = arith.constant 6 : index
    %c0_111 = arith.constant 0 : index
    %c0_112 = arith.constant 0 : index
    %120 = vector.load %arg3[%c6_110, %c0_111, %c0_112] : memref<9x128x128xbf16, #tpu.memory_space<vmem>>, vector<1x128x128xbf16>
    %121 = vector.shape_cast %120 : vector<1x128x128xbf16> to vector<128x128xbf16>
    %cst_113 = arith.constant dense<0.000000e+00> : vector<80x128xf32>
    %122 = tpu.matmul %119, %121, %cst_113 {dimension_numbers = #tpu.dot_dimension_numbers<[1], [0], [0], [1], [0, 0, 1, 1], [], []>} : vector<80x128xbf16>, vector<128x128xbf16>, vector<80x128xf32> -> vector<80x128xf32>
    %123 = arith.addf %118, %122 : vector<80x128xf32>
    %c26 = arith.constant 26 : index
    %c0_114 = arith.constant 0 : index
    %124 = vector.load %arg12[%c26, %c0_114] : memref<112x128xbf16, #tpu.memory_space<vmem>>, vector<80x128xbf16>
    %c7_115 = arith.constant 7 : index
    %c0_116 = arith.constant 0 : index
    %c0_117 = arith.constant 0 : index
    %125 = vector.load %arg3[%c7_115, %c0_116, %c0_117] : memref<9x128x128xbf16, #tpu.memory_space<vmem>>, vector<1x128x128xbf16>
    %126 = vector.shape_cast %125 : vector<1x128x128xbf16> to vector<128x128xbf16>
    %cst_118 = arith.constant dense<0.000000e+00> : vector<80x128xf32>
    %127 = tpu.matmul %124, %126, %cst_118 {dimension_numbers = #tpu.dot_dimension_numbers<[1], [0], [0], [1], [0, 0, 1, 1], [], []>} : vector<80x128xbf16>, vector<128x128xbf16>, vector<80x128xf32> -> vector<80x128xf32>
    %128 = arith.addf %123, %127 : vector<80x128xf32>
    %c27 = arith.constant 27 : index
    %c0_119 = arith.constant 0 : index
    %129 = vector.load %arg12[%c27, %c0_119] : memref<112x128xbf16, #tpu.memory_space<vmem>>, vector<80x128xbf16>
    %c8_120 = arith.constant 8 : index
    %c0_121 = arith.constant 0 : index
    %c0_122 = arith.constant 0 : index
    %130 = vector.load %arg3[%c8_120, %c0_121, %c0_122] : memref<9x128x128xbf16, #tpu.memory_space<vmem>>, vector<1x128x128xbf16>
    %131 = vector.shape_cast %130 : vector<1x128x128xbf16> to vector<128x128xbf16>
    %cst_123 = arith.constant dense<0.000000e+00> : vector<80x128xf32>
    %132 = tpu.matmul %129, %131, %cst_123 {dimension_numbers = #tpu.dot_dimension_numbers<[1], [0], [0], [1], [0, 0, 1, 1], [], []>} : vector<80x128xbf16>, vector<128x128xbf16>, vector<80x128xf32> -> vector<80x128xf32>
    %133 = arith.addf %128, %132 : vector<80x128xf32>
    %c0_124 = arith.constant 0 : index
    %c0_125 = arith.constant 0 : index
    %134 = vector.load %arg6[%c0_124, %c0_125] : memref<1x128xf32, #tpu.memory_space<vmem>>, vector<1x128xf32>
    %135 = vector.broadcast %134 : vector<1x128xf32> to vector<80x128xf32>
    %136 = arith.mulf %133, %135 : vector<80x128xf32>
    %c0_126 = arith.constant 0 : index
    %c0_127 = arith.constant 0 : index
    %137 = vector.load %arg7[%c0_126, %c0_127] : memref<1x128xf32, #tpu.memory_space<vmem>>, vector<1x128xf32>
    %138 = vector.broadcast %137 : vector<1x128xf32> to vector<80x128xf32>
    %139 = arith.addf %136, %138 : vector<80x128xf32>
    %c0_128 = arith.constant 0 : index
    %c3_129 = arith.constant 3 : index
    %c0_130 = arith.constant 0 : index
    %c0_131 = arith.constant 0 : index
    %140 = vector.load %arg1[%c0_128, %c3_129, %c0_130, %c0_131] : memref<1x4x96x128xbf16, #tpu.memory_space<vmem>>, vector<1x1x80x128xbf16>
    %141 = vector.shape_cast %140 : vector<1x1x80x128xbf16> to vector<80x128xbf16>
    %c0_132 = arith.constant 0 : index
    %c0_133 = arith.constant 0 : index
    %142 = vector.load %arg8[%c0_132, %c0_133] : memref<128x128xbf16, #tpu.memory_space<vmem>>, vector<128x128xbf16>
    %cst_134 = arith.constant dense<0.000000e+00> : vector<80x128xf32>
    %143 = tpu.matmul %141, %142, %cst_134 {dimension_numbers = #tpu.dot_dimension_numbers<[1], [0], [0], [1], [0, 0, 1, 1], [], []>} : vector<80x128xbf16>, vector<128x128xbf16>, vector<80x128xf32> -> vector<80x128xf32>
    %c0_135 = arith.constant 0 : index
    %c0_136 = arith.constant 0 : index
    %144 = vector.load %arg9[%c0_135, %c0_136] : memref<1x128xf32, #tpu.memory_space<vmem>>, vector<1x128xf32>
    %145 = vector.broadcast %144 : vector<1x128xf32> to vector<80x128xf32>
    %146 = arith.mulf %143, %145 : vector<80x128xf32>
    %c0_137 = arith.constant 0 : index
    %c0_138 = arith.constant 0 : index
    %147 = vector.load %arg10[%c0_137, %c0_138] : memref<1x128xf32, #tpu.memory_space<vmem>>, vector<1x128xf32>
    %148 = vector.broadcast %147 : vector<1x128xf32> to vector<80x128xf32>
    %149 = arith.addf %146, %148 : vector<80x128xf32>
    %150 = arith.addf %139, %149 : vector<80x128xf32>
    %cst_139 = arith.constant 0.000000e+00 : f32
    %151 = vector.broadcast %cst_139 : f32 to vector<80x128xf32>
    %152 = arith.maximumf %150, %151 : vector<80x128xf32>
    %153 = arith.truncf %152 : vector<80x128xf32> to vector<80x128xbf16>
    %c0_140 = arith.constant 0 : index
    %c0_141 = arith.constant 0 : index
    %c0_142 = arith.constant 0 : index
    %154 = vector.load %arg11[%c0_140, %c0_141, %c0_142] : memref<1x80x128xbf16, #tpu.memory_space<vmem>>, vector<1x80x128xbf16>
    %155 = vector.shape_cast %154 : vector<1x80x128xbf16> to vector<80x128xbf16>
    %156 = vector.shape_cast %153 : vector<80x128xbf16> to vector<1x80x128xbf16>
    tpu.vector_store %arg11[%c0_140, %c0_141, %c0_142], %156 {strides = array<i32>} : memref<1x80x128xbf16, #tpu.memory_space<vmem>>, vector<1x80x128xbf16>,
    return
  }
  func.func @transform_0(%arg0: i32) -> (i32, i32, i32, i32) {
    %c0_i32 = arith.constant 0 : i32
    %c0_i32_0 = arith.constant 0 : i32
    %c0_i32_1 = arith.constant 0 : i32
    %c0_i32_2 = arith.constant 0 : i32
    return %arg0, %c0_i32, %c0_i32_0, %c0_i32_1 : i32, i32, i32, i32
  }
  func.func @transform_1(%arg0: i32) -> (i32, i32, i32) {
    %c0_i32 = arith.constant 0 : i32
    %c0_i32_0 = arith.constant 0 : i32
    %c0_i32_1 = arith.constant 0 : i32
    %c0_i32_2 = arith.constant 0 : i32
    return %c0_i32, %c0_i32_0, %c0_i32_1 : i32, i32, i32
  }
  func.func @transform_2(%arg0: i32) -> (i32, i32, i32) {
    %c0_i32 = arith.constant 0 : i32
    %c0_i32_0 = arith.constant 0 : i32
    %c0_i32_1 = arith.constant 0 : i32
    %c0_i32_2 = arith.constant 0 : i32
    return %c0_i32, %c0_i32_0, %c0_i32_1 : i32, i32, i32
  }
  func.func @transform_3(%arg0: i32) -> (i32, i32) {
    %c0_i32 = arith.constant 0 : i32
    %c0_i32_0 = arith.constant 0 : i32
    %c0_i32_1 = arith.constant 0 : i32
    return %c0_i32, %c0_i32_0 : i32, i32
  }
  func.func @transform_4(%arg0: i32) -> (i32, i32) {
    %c0_i32 = arith.constant 0 : i32
    %c0_i32_0 = arith.constant 0 : i32
    %c0_i32_1 = arith.constant 0 : i32
    return %c0_i32, %c0_i32_0 : i32, i32
  }
  func.func @transform_5(%arg0: i32) -> (i32, i32) {
    %c0_i32 = arith.constant 0 : i32
    %c0_i32_0 = arith.constant 0 : i32
    %c0_i32_1 = arith.constant 0 : i32
    return %c0_i32, %c0_i32_0 : i32, i32
  }
  func.func @transform_6(%arg0: i32) -> (i32, i32) {
    %c0_i32 = arith.constant 0 : i32
    %c0_i32_0 = arith.constant 0 : i32
    %c0_i32_1 = arith.constant 0 : i32
    return %c0_i32, %c0_i32_0 : i32, i32
  }
  func.func @transform_7(%arg0: i32) -> (i32, i32) {
    %c0_i32 = arith.constant 0 : i32
    %c0_i32_0 = arith.constant 0 : i32
    %c0_i32_1 = arith.constant 0 : i32
    return %c0_i32, %c0_i32_0 : i32, i32
  }
  func.func @transform_8(%arg0: i32) -> (i32, i32) {
    %c0_i32 = arith.constant 0 : i32
    %c0_i32_0 = arith.constant 0 : i32
    %c0_i32_1 = arith.constant 0 : i32
    return %c0_i32, %c0_i32_0 : i32, i32
  }
  func.func @transform_9(%arg0: i32) -> (i32, i32) {
    %c0_i32 = arith.constant 0 : i32
    %c0_i32_0 = arith.constant 0 : i32
    %c0_i32_1 = arith.constant 0 : i32
    return %c0_i32, %c0_i32_0 : i32, i32
  }
  func.func @transform_10(%arg0: i32) -> (i32, i32, i32) {
    %c0_i32 = arith.constant 0 : i32
    %c0_i32_0 = arith.constant 0 : i32
    %c0_i32_1 = arith.constant 0 : i32
    return %arg0, %c0_i32, %c0_i32_0 : i32, i32, i32
  }
}

</mosaic_0001>

<bundles_post_ra>
// kernel: tpu_custom_call.1
= control target key start
LH: loop header
LB: loop body
LE: loop exit
PB: predicated region body
PF: predicated region fallthrough
CT: control target
= control target key end

     0   :  { %s7041_s0 = inlined_call_operand.hbm [shape: bf16[2,4,96,128], index: 0, kind: input, shape index: {}]   ;;  %s7042_s1 = inlined_call_operand.hbm [shape: bf16[9,128,128], index: 1, kind: input, shape index: {}]   ;;  %s7043_s2 = inlined_call_operand.hbm [shape: bf16[9,128,128], index: 2, kind: input, shape index: {}]   ;;  %s7044_s3 = inlined_call_operand.vmem [shape: f32[1,128], index: 3, kind: input, shape index: {}]   ;;  %s7045_s4 = inlined_call_operand.vmem [shape: f32[1,128], index: 4, kind: input, shape index: {}]   ;;  %s7046_s5 = inlined_call_operand.vmem [shape: f32[1,128], index: 5, kind: input, shape index: {}]   ;;  %s7047_s6 = inlined_call_operand.vmem [shape: f32[1,128], index: 6, kind: input, shape index: {}]   ;;  %s7048_s7 = inlined_call_operand.hbm [shape: bf16[128,128], index: 7, kind: input, shape index: {}]   ;;  %s7049_s8 = inlined_call_operand.vmem [shape: f32[1,128], index: 8, kind: input, shape index: {}]   ;;  %s7050_s9 = inlined_call_operand.vmem [shape: f32[1,128], index: 9, kind: input, shape index: {}]   ;;  %s7051_s10 = inlined_call_operand.hbm [shape: bf16[2,80,128], index: 10, kind: output, shape index: {}]  }
   0x1   :  { %7057 = sst [smem:[#allocation19_spill]] %s7042_s1 }
   0x2   :  { %7058 = sst [smem:[#allocation20_spill]] %s7043_s2 }
   0x3   :  { %7059 = sst [smem:[#allocation21_spill]] %s7048_s7 }
   0x4   :  { %15 = vsyncpa [#allocation4], 0 }
   0x5   :  { %17 = vsyncpa [#allocation4 + $0x1], 0 }
   0x6   :  { %18 = vsyncpa [#allocation7], 0 }
   0x7   :  { %19 = vsyncpa [#allocation10], 0 }
   0x8   :  { %20 = vsyncpa [#allocation5], 0 }
   0x9   :  { %22 = vsyncpa [#allocation5 + $0x1], 0  ;;  %s5800_s13 = smov 0   ;;  %s5802_s14 = smov 0  }
   0xa   :  { %s5804_s15 = smov 0   ;;  %s5806_s16 = smov 0  }
   0xb LB: > { %7060 = sst [smem:[#allocation16_spill]] %s5731_s15  ;;  %s5821_s17 = sadd.s32 4294967295, %s5735_s16   ;;  %s5735_s16 = sphi %s5806_s16, %s7115_s16   ;;  %s5731_s15 = sphi %s5804_s15, %s7120_s15   ;;  %s5727_s14 = sphi %s5802_s14, %s7119_s14   ;;  %s5723_s13 = sphi %s5800_s13, %s7118_s13  }
   0xc   : > { %s4177_s18 = sadd.s32 4294967294, %s5735_s16   ;;  %p48_p0 = scmp.ne.s32.totalorder %s5727_s14, %s5723_s13 }
   0xd   : > { %p49_p1 = scmp.eq.s32.totalorder %s5821_s17, 0  ;;  %p261_p2 = scmp.eq.s32.totalorder %s5821_s17, 1 }
   0xe   : > { %p267_p3 = scmp.eq.s32.totalorder %s4177_s18, 1  ;;  %p4178_p5 = scmp.ge.s32.totalorder %s5735_s16, 1 }
   0xf   : > { %p5830_p4 = por %p49_p1, %p48_p0  ;;  %p274_p7 = scmp.lt.s32.totalorder %s5735_s16, 3 }
  0x10   : > { %p5835_p6 = por %p267_p3, %p48_p0  ;;  %s7063_s1 = sld [smem:[#allocation19_spill]] }
  0x11   : > { %p5843_p8 = pnand %p4178_p5, %p274_p7  ;;  %s5737_s25 = smov [#allocation6]  }
  0x12   : > { %s287_s26 = sshll.u32 %s5737_s25, 4  ;;  %s7066_s2 = sld [smem:[#allocation20_spill]]  ;;  %s288_s26 = int_to_ptr.vmem [resolvable:$true] %s287_s26 }
  0x13   : > { %p5457_p9 = pneg %p5843_p8  ;;  %s7052_s11 = smov 64  }
  0x14   : > { %s7053_s12 = smov 4   ;;  %s5740_s18 = smov [#allocation8]  }
  0x15   : > { %p5851_p10 = pnand %p5457_p9, %p49_p1  ;;  %s301_s21 = sshll.u32 %s5740_s18, 4  ;;  %s302_s21 = int_to_ptr.vmem [resolvable:$true] %s301_s21 }
  0x16   : > { %s285_s23 = sshll.u32 %s7063_s1, 4  ;;  %s7067_s7 = sld [smem:[#allocation21_spill]]  ;;  %s286_s23 = int_to_ptr.hbm [resolvable:$true] %s285_s23 }
  0x17   : > { %5460 = dma.hbm_to_vmem [thread:$0]  (!%p5851_p10), %s286_s23, 9216, %s288_s26, [#allocation7], %s7052_s11, %s7052_s11, %s7053_s12  }
  0x18   : > { %s299_s30 = sshll.u32 %s7066_s2, 4  ;;  %s5741_s23 = smov [#allocation9]   ;;  %s300_s30 = int_to_ptr.hbm [resolvable:$true] %s299_s30 }
  0x19   : > { %5463 = dma.hbm_to_vmem [thread:$0]  (!%p5851_p10), %s300_s30, 9216, %s302_s21, [#allocation7], %s7052_s11, %s7052_s11, %s7053_s12  }
  0x1a   : > { %s327_s26 = sshll.u32 %s5741_s23, 4  ;;  %s5873_s29 = sadd.s32 1, %s5735_s16   ;;  %s328_s26 = int_to_ptr.vmem [resolvable:$true] %s327_s26 }
  0x1b   : > { %7068 = sst [smem:[#allocation17_spill]] %s5873_s29  ;;  %s32_s18 = ssub.s32 %s5735_s16, %s5873_s29 }
  0x1c   : > { %s325_s28 = sshll.u32 %s7067_s7, 4  ;;  %s35_s22 = sadd.s32 1, %s5731_s15  ;;  %s326_s28 = int_to_ptr.hbm [resolvable:$true] %s325_s28 }
  0x1d   : > { %5466 = dma.hbm_to_vmem [thread:$0]  (!%p5851_p10), %s326_s28, 1024, %s328_s26, [#allocation10], %s7052_s11, %s7052_s11, %s7053_s12  }
  0x1e   : > { %p33_p12 = scmp.eq.s32.totalorder %s32_s18, 0  ;;  %p42_p13 = scmp.ne.s32.totalorder %s5731_s15, %s5727_s14 }
  0x1f   : > { %p43_p0 = scmp.eq.s32.totalorder %s5735_s16, 0  ;;  %p5478_p3 = scmp.lt.s32.totalorder %s5735_s16, 2 }
  0x20   : > { %s5888_s25 = scalar_select %p33_p12, %s5731_s15, %s35_s22  }
  0x21   : > { %p44_p5 = por %p43_p0, %p42_p13  ;;  %p5892_p7 = por %p261_p2, %p42_p13 }
  0x22   : > { %7069 = sst [smem:[#allocation18_spill]] %s5888_s25  ;;  %s347_s27 = sand.u32 1, %s5731_s15  }
  0x23   : > { %s5437_s21 = smul.u32 192, %s5735_s16  ;;  %p5901_p9 = pnand %p5478_p3, %p44_p5 }
  0x24   : > { %s5436_s23 = smul.u32 192, %s347_s27  ;;  %s348_s12 = scalar_lea.sflag [#allocation4], %s347_s27 }
  0x25   : > { %s356_s28 = scalar_lea.hbm %s7041_s0, %s5437_s21  ;;  %p5632_p10 = pneg %p5901_p9 }
  0x26   : > { %s357_s18 = sshll.u32 %s356_s28, 4  ;;  %s351_s22 = scalar_lea.vmem [#allocation3], %s5436_s23  ;;  %s358_s18 = int_to_ptr.hbm [resolvable:$true] %s357_s18 }
  0x27   : > { %s359_s11 = sshll.u32 %s351_s22, 4  ;;  %s5628_s7 = sshra.s32 %s358_s18, 4  ;;  %s360_s11 = int_to_ptr.vmem [resolvable:$true] %s359_s11  ;;  %s5629_s7 = int_to_ptr.hbm [resolvable:$true] %s5628_s7 }
  0x28   : > { %s5630_s25 = scalar_lea.hbm %s5629_s7, 192  ;;  %s5635_s21 = scalar_lea.hbm %s7041_s0, 384 }
  0x29   : > { %p5631_p2 = scmp.ne.s32.totalorder %s5629_s7, %s5630_s25  ;;  %p5636_p0 = scmp.lt.s32.totalorder %s5629_s7, %s7041_s0 }
  0x2a   : > { %p5637_p3 = scmp.lt.s32.totalorder %s5635_s21, %s5630_s25 }
  0x2b   : > { %p5633_p12 = pnand %p5632_p10, %p5631_p2 }
  0x2c   : > { %p5638_p5 = por %p5637_p3, %p5636_p0 }
  0x2d   : > { %p5634_p13 = pneg %p5633_p12 }
  0x2f   : > { %p5639_p11 = pnand %p5638_p5, %p5634_p13 }
  0x31   : > { %5642 = shalt.err (!%p5639_p11)
}
  0x32   : > { %s7072_s27 = smov 4   ;;  %s7073_s23 = smov 64  }
  0x33   : > { %5470 = dma.hbm_to_vmem [thread:$0]  (!%p5901_p9), %s358_s18, 3072, %s360_s11, %s348_s12, %s7073_s23, %s7073_s23, %s7072_s27  }
  0x34   : > { %371 = sbr.rel (%p5843_p8) target bundleno = 773 (0x305), region = 60  ;;  %s5921_s28 = sand.u32 (!%p5843_p8), 1, %s5727_s14  }
  0x35   : > { %s5438_s7 = smul.u32 (!%p5843_p8), 192, %s5921_s28  ;;  %s374_s15 = scalar_lea.sflag (!%p5843_p8), [#allocation4], %s5921_s28 }
  0x37   : > { %s5925_s29 = scalar_lea.vmem (!%p5843_p8), [#allocation3], %s5438_s7 }
  0x39   : > { %5703 = dma.done.wait (%p5830_p4), %s374_s15, 3072  }
  0x3a   : > { %5705 = vsyncadd (%p5830_p4), %s374_s15, 4294964224 }
  0x3b   : > { %5707 = dma.done.wait (%p49_p1), [#allocation7], 18432  }
  0x3c   : > { %5709 = vsyncadd (%p49_p1), [#allocation7], 4294948864 }
  0x3d   : > { %5711 = dma.done.wait (%p49_p1), [#allocation10], 1024  }
  0x3e   : > { %5713 = vsyncadd (%p49_p1), [#allocation10], 4294966272  ;;  %v5118_v0 = vld [vmem:[#allocation6 + $0x78] sm:$0xff]  ;;  %v5117_v3 = vld [vmem:[#allocation6 + $0x70] sm:$0xff]  ;;  %vm765_vm0 = vsmask.f32 7424 }
  0x3f   : > { %v5105_v1 = vld [vmem:[#allocation6 + $0x38] sm:$0xff]  ;;  %5411 = vmatpush.bf16.msra.mxu3 %v5118_v0  ;;  %v5104_v4 = vld [vmem:[#allocation6 + $0x30] sm:$0xff]  ;;  %563 = vmatpush.bf16.msra.mxu0 %v5118_v0  ;;  %v5116_v6 = vld [vmem:[#allocation6 + $0x68] sm:$0xff]  ;;  %vm1460_vm1 = vcmask 1046528   ;;  %vm1754_vm2 = vsmask.f32 6400 }
  0x40   : > { %v5131_v2 = vld [vmem:[#allocation6 + $0xb8] sm:$0xff]  ;;  %675 = vmatpush.bf16.msra.mxu1 %v5105_v1  ;;  %v5130_v5 = vld [vmem:[#allocation6 + $0xb0] sm:$0xff]  ;;  %v5103_v7 = vld [vmem:[#allocation6 + $0x28] sm:$0xff]  ;;  %s5439_s23 = smul.u32 40, %s5921_s28  ;;  %s4060_s12 = scalar_lea.sflag [#allocation5], %s5921_s28 }
  0x41   : > { %863 = vmatpush.bf16.msra.mxu2 %v5131_v2  ;;  %v5129_v8 = vld [vmem:[#allocation6 + $0xa8] sm:$0xff]  ;;  %v5115_v9 = vld [vmem:[#allocation6 + $0x60] sm:$0xff]  ;;  %v5114_v12 = vld [vmem:[#allocation6 + $0x58] sm:$0xff]  ;;  %s5440_s15 = smul.u32 40, %s5821_s17  ;;  %s5678_s1 = scalar_lea.hbm %s7051_s10, 80 }
  0x42   : > { %v5102_v10 = vld [vmem:[#allocation6 + $0x20] sm:$0xff]  ;;  %v5101_v13 = vld [vmem:[#allocation6 + $0x18] sm:$0xff]  ;;  %v5113_v16 = vld [vmem:[#allocation6 + $0x50] sm:$0xff]  ;;  %s6970_s7 = scalar_lea.vmem [#allocation11], %s5439_s23 }
  0x43   : > { %5412 = vmatpush.bf16.msra.mxu3 %v5117_v3  ;;  %564 = vmatpush.bf16.msra.mxu0 %v5117_v3  ;;  %v5128_v11 = vld [vmem:[#allocation6 + $0xa0] sm:$0xff]  ;;  %v5127_v14 = vld [vmem:[#allocation6 + $0x98] sm:$0xff]  ;;  %v5100_v17 = vld [vmem:[#allocation6 + $0x10] sm:$0xff]  ;;  %s4071_s24 = scalar_lea.hbm %s7051_s10, %s5440_s15  ;;  %s4072_s11 = sshll.u32 %s6970_s7, 4  ;;  %s4073_s11 = int_to_ptr.vmem [resolvable:$true] %s4072_s11 }
  0x44   : > { %676 = vmatpush.bf16.msra.mxu1 %v5104_v4  ;;  %v5119_v15 = vld [vmem:[%s5925_s29] sm:$0xff]  ;;  %v5126_v18 = vld [vmem:[#allocation6 + $0x90] sm:$0xff]  ;;  %v5120_v19 = vld [vmem:[%s5925_s29 + $0x8] sm:$0xff]  ;;  %s4074_s17 = sshll.u32 %s4071_s24, 4  ;;  %s4075_s17 = int_to_ptr.hbm [resolvable:$true] %s4074_s17 }
  0x45   : > { %864 = vmatpush.bf16.msra.mxu2 %v5130_v5  ;;  %v769_v20 = vshll.u32 %v5119_v15, 16  ;;  %v5112_v21 = vld [vmem:[#allocation6 + $0x48] sm:$0xff]  ;;  %v767_v24 = vshrl.u32 %v5119_v15, 16  ;;  %v774_v26 = vshll.u32 %v5120_v19, 16  ;;  %v5111_v27 = vld [vmem:[#allocation6 + $0x40] sm:$0xff]  ;;  %v5144_v32 = vld [vmem:[#allocation6 + $0xf8] sm:$0xff] }
  0x46   : > { %v5099_v22 = vld [vmem:[#allocation6 + $0x8] sm:$0xff]  ;;  %v5098_v28 = vld [vmem:[#allocation6] sm:$0xff]  ;;  %v5157_v35 = vld [vmem:[#allocation6 + $0x138] sm:$0xff]  ;;  %v778_v44 = vshrl.u32 %v5120_v19, 16  ;;  %s5672_s25 = sshra.s32 %s4075_s17, 4  ;;  %s5673_s25 = int_to_ptr.hbm [resolvable:$true] %s5672_s25 }
  0x47   : > { %5413 = vmatpush.bf16.msra.mxu3 %v5116_v6  ;;  %565 = vmatpush.bf16.msra.mxu0 %v5116_v6  ;;  %v5125_v23 = vld [vmem:[#allocation6 + $0x88] sm:$0xff]  ;;  %v771_v25 = vrot.slane %v769_v20, 1  ;;  %v5124_v29 = vld [vmem:[#allocation6 + $0x80] sm:$0xff]  ;;  %v776_v31 = vrot.slane %v774_v26, 1  ;;  %v5143_v37 = vld [vmem:[#allocation6 + $0xf0] sm:$0xff]  ;;  %s5674_s26 = scalar_lea.hbm %s5673_s25, 40  ;;  %p5679_p11 = scmp.lt.s32.totalorder %s5673_s25, %s7051_s10 }
  0x48   : > { %677 = vmatpush.bf16.msra.mxu1 %v5103_v7  ;;  %v5108_v33 = vld [vmem:[%s5925_s29 + $0x40] sm:$0xff]  ;;  %v5106_v38 = vld [vmem:[%s5925_s29 + $0x30] sm:$0xff]  ;;  %v5142_v40 = vld [vmem:[#allocation6 + $0xe8] sm:$0xff]  ;;  %p5675_p1 = scmp.ne.s32.totalorder %s5673_s25, %s5674_s26  ;;  %p5680_p9 = scmp.lt.s32.totalorder %s5678_s1, %s5674_s26 }
  0x49   : > { %865 = vmatpush.bf16.msra.mxu2 %v5129_v8  ;;  %v772_v30 = vor.u32 %v771_v25, %v767_v24  ;;  %v5093_v34 = vld [vmem:[%s5925_s29] sm:$0xff]  ;;  %v5156_v39 = vld [vmem:[#allocation6 + $0x130] sm:$0xff]  ;;  %v5183_v42 = vld [vmem:[#allocation6 + $0x1b8] sm:$0xff]  ;;  %v780_v48 = vor.u32 %v778_v44, %v776_v31 }
  0x4a   : > { %v5121_v41 = vld [vmem:[%s5925_s29 + $0x10] sm:$0xff]  ;;  %v5155_v43 = vld [vmem:[#allocation6 + $0x128] sm:$0xff]  ;;  %v5141_v46 = vld [vmem:[#allocation6 + $0xe0] sm:$0xff]  ;;  %p5676_p4 = pnand %p5675_p1, %p5892_p7  ;;  %p5681_p2 = por %p5680_p9, %p5679_p11 }
  0x4b   : > { %5414 = vmatpush.bf16.msra.mxu3 %v5115_v9  ;;  %566 = vmatpush.bf16.msra.mxu0 %v5115_v9  ;;  %v777_v36 = vsel %vm765_vm0, %v772_v30, %v776_v31  ;;  %v782_v45 = vshll.u32 %v5121_v41, 16  ;;  %v5154_v47 = vld [vmem:[#allocation6 + $0x120] sm:$0xff]  ;;  %v5140_v50 = vld [vmem:[#allocation6 + $0xd8] sm:$0xff]  ;;  %v5109_v51 = vld [vmem:[%s5925_s29 + $0x48] sm:$0xff]  ;;  %v786_v1 = vshrl.u32 %v5121_v41, 16 }
  0x4c   : > { %678 = vmatpush.bf16.msra.mxu1 %v5102_v10  ;;  %v5094_v52 = vld [vmem:[%s5925_s29 + $0x8] sm:$0xff]  ;;  %v5153_v53 = vld [vmem:[#allocation6 + $0x118] sm:$0xff]  ;;  %v5139_v55 = vld [vmem:[#allocation6 + $0xd0] sm:$0xff]  ;;  %p5677_p8 = pneg %p5676_p4 }
  0x4d   : > { %866 = vmatpush.bf16.msra.mxu2 %v5128_v11  ;;  %v784_v49 = vrot.slane %v782_v45, 1  ;;  %v5107_v56 = vld [vmem:[%s5925_s29 + $0x38] sm:$0xff]  ;;  %v5152_v58 = vld [vmem:[#allocation6 + $0x110] sm:$0xff]  ;;  %v5138_v61 = vld [vmem:[#allocation6 + $0xc8] sm:$0xff] }
  0x4e   : > { %v5170_v57 = vld [vmem:[#allocation6 + $0x178] sm:$0xff]  ;;  %v5182_v59 = vld [vmem:[#allocation6 + $0x1b0] sm:$0xff]  ;;  %v5181_v63 = vld [vmem:[#allocation6 + $0x1a8] sm:$0xff]  ;;  %p5682_p10 = pnand %p5681_p2, %p5677_p8 }
  0x4f   : > { %5415 = vmatpush.bf16.msra.mxu3 %v5114_v12  ;;  %567 = vmatpush.bf16.msra.mxu0 %v5114_v12  ;;  %v785_v54 = vsel %vm765_vm0, %v780_v48, %v784_v49  ;;  %v5122_v60 = vld [vmem:[%s5925_s29 + $0x18] sm:$0xff]  ;;  %v5169_v62 = vld [vmem:[#allocation6 + $0x170] sm:$0xff]  ;;  %v5151_v0 = vld [vmem:[#allocation6 + $0x108] sm:$0xff]  ;;  %v788_v8 = vor.u32 %v786_v1, %v784_v49 }
  0x50   : > { %679 = vmatpush.bf16.msra.mxu1 %v5101_v13  ;;  %v790_v2 = vshll.u32 %v5122_v60, 16  ;;  %v5137_v3 = vld [vmem:[#allocation6 + $0xc0] sm:$0xff]  ;;  %v5196_v4 = vld [vmem:[#allocation6 + $0x1f8] sm:$0xff]  ;;  %v5168_v5 = vld [vmem:[#allocation6 + $0x168] sm:$0xff]  ;;  %v794_v26 = vshrl.u32 %v5122_v60, 16 }
  0x51   : > { %867 = vmatpush.bf16.msra.mxu2 %v5127_v14  ;;  %v5180_v6 = vld [vmem:[#allocation6 + $0x1a0] sm:$0xff]  ;;  %v5204_v10 = vld [vmem:[#allocation6 + $0x238] sm:$0xff]  ;;  %v5195_v11 = vld [vmem:[#allocation6 + $0x1f0] sm:$0xff] }
  0x52   : > { %v5150_v7 = vld [vmem:[#allocation6 + $0x100] sm:$0xff]  ;;  %v792_v9 = vrot.slane %v790_v2, 1  ;;  %v5110_v13 = vld [vmem:[%s5925_s29 + $0x50] sm:$0xff]  ;;  %v5194_v20 = vld [vmem:[#allocation6 + $0x1e8] sm:$0xff] }
  0x53   : > { %5416 = vmatpush.bf16.msra.mxu3 %v5113_v16  ;;  %568 = vmatpush.bf16.msra.mxu0 %v5113_v16  ;;  %v5167_v12 = vld [vmem:[#allocation6 + $0x160] sm:$0xff]  ;;  %v5095_v14 = vld [vmem:[%s5925_s29 + $0x10] sm:$0xff]  ;;  %v5202_v24 = vld [vmem:[#allocation6 + $0x228] sm:$0xff] }
  0x54   : > { %680 = vmatpush.bf16.msra.mxu1 %v5100_v17  ;;  %v793_v15 = vsel %vm765_vm0, %v788_v8, %v792_v9  ;;  %v5145_v16 = vld [vmem:[%s5925_s29 + $0x90] sm:$0xff]  ;;  %v5166_v17 = vld [vmem:[#allocation6 + $0x158] sm:$0xff]  ;;  %v5193_v25 = vld [vmem:[#allocation6 + $0x1e0] sm:$0xff]  ;;  %v796_v30 = vor.u32 %v794_v26, %v792_v9 }
  0x55   : > { %868 = vmatpush.bf16.msra.mxu2 %v5126_v18  ;;  %v5179_v18 = vld [vmem:[#allocation6 + $0x198] sm:$0xff]  ;;  %v5203_v19 = vld [vmem:[#allocation6 + $0x230] sm:$0xff]  ;;  %v5133_v48 = vld [vmem:[%s5925_s29 + $0x68] sm:$0xff] }
  0x56   : > { %v5192_v41 = vld [vmem:[#allocation6 + $0x1d8] sm:$0xff]  ;;  %v5158_v49 = vld [vmem:[%s5925_s29 + $0x60] sm:$0xff]  ;;  %v5148_v8 = vld [vmem:[%s5925_s29 + $0xa8] sm:$0xff] }
  0x57   : > { %5417 = vmatpush.bf16.msra.mxu3 %v5112_v21  ;;  %569 = vmatpush.bf16.msra.mxu0 %v5112_v21  ;;  %v5123_v21 = vld [vmem:[%s5925_s29 + $0x20] sm:$0xff]  ;;  %v1264_v60 = vshrl.u32 %v5158_v49, 16  ;;  %v5160_v9 = vld [vmem:[%s5925_s29 + $0x70] sm:$0xff] }
  0x58   : > { %681 = vmatpush.bf16.msra.mxu1 %v5099_v22  ;;  %v5178_v22 = vld [vmem:[#allocation6 + $0x190] sm:$0xff] }
  0x59   : > { %869 = vmatpush.bf16.msra.mxu2 %v5125_v23  ;;  %v5165_v23 = vld [vmem:[#allocation6 + $0x150] sm:$0xff] }
  0x5b   : > { %5418 = vmatpush.bf16.msra.mxu3 %v5111_v27  ;;  %570 = vmatpush.bf16.msra.mxu0 %v5111_v27  ;;  %v798_v27 = vshll.u32 %v5123_v21, 16 }
  0x5c   : > { %682 = vmatpush.bf16.msra.mxu1 %v5098_v28  ;;  %v5177_v28 = vld [vmem:[#allocation6 + $0x188] sm:$0xff] }
  0x5d   : > { %870 = vmatpush.bf16.msra.mxu2 %v5124_v29  ;;  %v5164_v29 = vld [vmem:[#allocation6 + $0x148] sm:$0xff]  ;;  %v800_v31 = vrot.slane %v798_v27, 1 }
  0x5e   : > { %581 = vmatmul.bf16.vlgmr.msra.gmra.mxu3 %v5108_v33  ;;  %571 = vmatmul.bf16.vlgmr.msra.gmra.mxu0 %v5106_v38  ;;  %v719_v33 = vld [vmem:[%s5925_s29 + $0x28] sm:$0x1] }
  0x5f   : > { %1013 = vmatpush.bf16.msrb.mxu3 %v5144_v32  ;;  %683 = vmatmul.bf16.vlgmr.msra.gmra.mxu1 %v5093_v34  ;;  %v5176_v32 = vld [vmem:[#allocation6 + $0x180] sm:$0xff]  ;;  %v758_v38 = vunpack.c.l.b16 %v719_v33 }
  0x60   : > { %871 = vmatmul.bf16.vlgmr.msra.gmra.mxu2 %v777_v36  ;;  %1163 = vmatpush.bf16.msrb.mxu0 %v5157_v35  ;;  %v5163_v34 = vld [vmem:[#allocation6 + $0x140] sm:$0xff]  ;;  %v5096_v35 = vld [vmem:[%s5925_s29 + $0x18] sm:$0xff] }
  0x61   : > { %1525 = vmatpush.bf16.msrb.mxu2 %v5183_v42  ;;  %1360 = vmatpush.bf16.msrb.mxu1 %v5170_v57  ;;  %v5132_v36 = vld [vmem:[%s5925_s29 + $0x60] sm:$0xff]  ;;  %v764_v42 = vpack.c.b16 %v758_v38, %v758_v38  ;;  %v5171_v57 = vld [vmem:[%s5925_s29 + $0x4] sm:$0xf0] }
  0x63   : > { %1014 = vmatpush.bf16.msrb.mxu3 %v5143_v37  ;;  %v801_v37 = vsel %vm765_vm0, %v796_v30, %v800_v31  ;;  %v806_v44 = vshll.u32 %v764_v42, 16  ;;  %v5982_v30 = vld [vmem:[%s5925_s29 + $0x1c] sm:$0xff] }
  0x64   : > { %1164 = vmatpush.bf16.msrb.mxu0 %v5156_v39  ;;  %v5146_v39 = vld [vmem:[%s5925_s29 + $0x98] sm:$0xff] }
  0x65   : > { %1526 = vmatpush.bf16.msrb.mxu2 %v5182_v59  ;;  %1361 = vmatpush.bf16.msrb.mxu1 %v5169_v62  ;;  %v5190_v59 = vld [vmem:[#allocation6 + $0x1c8] sm:$0xff] }
  0x67   : > { %1015 = vmatpush.bf16.msrb.mxu3 %v5142_v40  ;;  %v5201_v40 = vld [vmem:[#allocation6 + $0x220] sm:$0xff] }
  0x68   : > { %1165 = vmatpush.bf16.msrb.mxu0 %v5155_v43  ;;  %v802_v43 = vshrl.u32 %v5123_v21, 16 }
  0x69   : > { %1527 = vmatpush.bf16.msrb.mxu2 %v5181_v63  ;;  %1362 = vmatpush.bf16.msrb.mxu1 %v5168_v5  ;;  %v5172_v63 = vld [vmem:[%s5925_s29 + $0xc] sm:$0xff] }
  0x6a   : > { %v804_v45 = vor.u32 %v802_v43, %v800_v31  ;;  %v5134_v5 = vld [vmem:[%s5925_s29 + $0x70] sm:$0xff]  ;;  %v1764_v26 = vshrl.u32 %v5172_v63, 16  ;;  %v1767_v27 = vshll.u32 %v5172_v63, 16 }
  0x6b   : > { %1016 = vmatpush.bf16.msrb.mxu3 %v5141_v46  ;;  %v808_v46 = vrot.slane %v806_v44, 1  ;;  %v5162_v44 = vld [vmem:[%s5925_s29 + $0x80] sm:$0xff] }
  0x6c   : > { %1166 = vmatpush.bf16.msrb.mxu0 %v5154_v47  ;;  %v5097_v47 = vld [vmem:[%s5925_s29 + $0x20] sm:$0xff]  ;;  %v1766_v33 = vrot.slane %v1764_v26, 1 }
  0x6d   : > { %1528 = vmatpush.bf16.msrb.mxu2 %v5180_v6  ;;  %1363 = vmatpush.bf16.msrb.mxu1 %v5167_v12 }
  0x6e   : > { %586 = vmatmul.bf16.gmra.mxu3 %v5109_v51  ;;  %576 = vmatmul.bf16.gmra.mxu0 %v5107_v56  ;;  %v5147_v51 = vld [vmem:[%s5925_s29 + $0xa0] sm:$0xff] }
  0x6f   : > { %1017 = vmatpush.bf16.msrb.mxu3 %v5140_v50  ;;  %688 = vmatmul.bf16.gmra.mxu1 %v5094_v52  ;;  %v809_v50 = vsel %vm765_vm0, %v804_v45, %v808_v46  ;;  %v5159_v52 = vld [vmem:[%s5925_s29 + $0x68] sm:$0xff]  ;;  %v4543_v56 = vld [vmem:[%s5925_s29 + $0x4] sm:$0xe]  ;;  %v4606_v45 = vld [vmem:[%s5925_s29 + $0x34] sm:$0xe] }
  0x70   : > { %876 = vmatmul.bf16.gmra.mxu2 %v785_v54  ;;  %1167 = vmatpush.bf16.msrb.mxu0 %v5153_v53  ;;  %v1266_v53 = vshll.u32 %v5158_v49, 16  ;;  %v5200_v54 = vld [vmem:[#allocation6 + $0x218] sm:$0xff]  ;;  %v1271_v62 = vshll.u32 %v5159_v52, 16  ;;  %v1275_v12 = vshrl.u32 %v5159_v52, 16 }
  0x71   : > { %1529 = vmatpush.bf16.msrb.mxu2 %v5179_v18  ;;  %1364 = vmatpush.bf16.msrb.mxu1 %v5166_v17  ;;  %v5135_v18 = vld [vmem:[%s5925_s29 + $0x78] sm:$0xff] }
  0x72   : > { %v1273_v2 = vrot.slane %v1271_v62, 1  ;;  %v5184_v46 = vld [vmem:[%s5925_s29 + $0x34] sm:$0xf0] }
  0x73   : > { %1018 = vmatpush.bf16.msrb.mxu3 %v5139_v55  ;;  %v5191_v55 = vld [vmem:[#allocation6 + $0x1d0] sm:$0xff]  ;;  %v4607_v52 = vor.u32 %v5184_v46, %v4606_v45 }
  0x74   : > { %1168 = vmatpush.bf16.msrb.mxu0 %v5152_v58  ;;  %v5199_v58 = vld [vmem:[#allocation6 + $0x210] sm:$0xff] }
  0x75   : > { %1530 = vmatpush.bf16.msrb.mxu2 %v5178_v22  ;;  %1365 = vmatpush.bf16.msrb.mxu1 %v5165_v23  ;;  %v5149_v22 = vld [vmem:[%s5925_s29 + $0xb0] sm:$0xff]  ;;  %v5161_v23 = vld [vmem:[%s5925_s29 + $0x78] sm:$0xff] }
  0x76   : > { %v1291_v49 = vshrl.u32 %v5161_v23, 16 }
  0x77   : > { %1019 = vmatpush.bf16.msrb.mxu3 %v5138_v61  ;;  %v1268_v61 = vrot.slane %v1266_v53, 1  ;;  %v5994_v53 = vld [vmem:[%s5925_s29 + $0x24] sm:$0xff] }
  0x78   : > { %1169 = vmatpush.bf16.msrb.mxu0 %v5151_v0  ;;  %v4544_v0 = vor.u32 %v5171_v57, %v4543_v56 }
  0x79   : > { %1531 = vmatpush.bf16.msrb.mxu2 %v5177_v28  ;;  %1366 = vmatpush.bf16.msrb.mxu1 %v5164_v29  ;;  %v1269_v1 = vor.u32 %v1268_v61, %v1264_v60  ;;  %v1283_v28 = vshrl.u32 %v5160_v9, 16  ;;  %v1287_v29 = vshll.u32 %v5161_v23, 16  ;;  %v1468_v60 = vrot.slane %v5994_v53, 1  ;;  %v4488_v61 = vld [vmem:[%s5925_s29 + $0x88] sm:$0x1] }
  0x7b   : > { %1020 = vmatpush.bf16.msrb.mxu3 %v5137_v3  ;;  %v1461_v3 = vrot.slane %v4544_v0, 1  ;;  %v1274_v6 = vsel %vm765_vm0, %v1269_v1, %v1273_v2 }
  0x7c   : > { %1170 = vmatpush.bf16.msrb.mxu0 %v5150_v7 }
  0x7d   : > { %1532 = vmatpush.bf16.msrb.mxu2 %v5176_v32  ;;  %1367 = vmatpush.bf16.msrb.mxu1 %v5163_v34  ;;  %v1769_v34 = vrot.slane %v1767_v27, 2 }
  0x7e   : > { %591 = vmatmul.bf16.gmra.mxu3 %v5110_v13  ;;  %v1279_v13 = vshll.u32 %v5160_v9, 16 }
  0x7f   : > { %1689 = vmatpush.bf16.msra.mxu3 %v5196_v4  ;;  %693 = vmatmul.bf16.gmra.mxu1 %v5095_v14  ;;  %v1462_v4 = vrot.slane %v5172_v63, 1  ;;  %v5173_v14 = vld [vmem:[%s5925_s29 + $0x14] sm:$0xff] }
  0x80   : > { %1861 = vmatpush.bf16.msra.mxu0 %v5204_v10  ;;  %881 = vmatmul.bf16.gmra.mxu2 %v793_v15  ;;  %v5198_v10 = vld [vmem:[#allocation6 + $0x208] sm:$0xff]  ;;  %v1277_v15 = vor.u32 %v1275_v12, %v1273_v2  ;;  %v1464_v17 = vrot.slane %v5173_v14, 1  ;;  %v1256_v2 = vunpack.c.l.b16 %v4488_v61  ;;  %v1785_v12 = vshll.u32 %v5982_v30, 16 }
  0x81   : > { %1171 = vmatmul.bf16.vlgmr.msrb.gmra.mxu0 %v5145_v16  ;;  %v1463_v7 = vsel %vm1460_vm1, %v1461_v3, %v1462_v4  ;;  %v1281_v16 = vrot.slane %v1279_v13, 1 }
  0x82   : > { %v1465_v21 = vsel %vm1460_vm1, %v1462_v4, %v1464_v17 }
  0x83   : > { %1690 = vmatpush.bf16.msra.mxu3 %v5195_v11  ;;  %v5189_v11 = vld [vmem:[#allocation6 + $0x1c0] sm:$0xff] }
  0x84   : > { %1862 = vmatpush.bf16.msra.mxu0 %v5203_v19  ;;  %v5197_v19 = vld [vmem:[#allocation6 + $0x200] sm:$0xff] }
  0x87   : > { %1691 = vmatpush.bf16.msra.mxu3 %v5194_v20  ;;  %v1282_v20 = vsel %vm765_vm0, %v1277_v15, %v1281_v16  ;;  %v1299_v15 = vshrl.u32 %v5162_v44, 16 }
  0x88   : > { %1863 = vmatpush.bf16.msra.mxu0 %v5202_v24  ;;  %v1756_v24 = vshrl.u32 %v4544_v0, 16 }
  0x8a   : > { %v1758_v31 = vrot.slane %v1756_v24, 1 }
  0x8b   : > { %1692 = vmatpush.bf16.msra.mxu3 %v5193_v25  ;;  %v1759_v25 = vshll.u32 %v4544_v0, 16 }
  0x8c   : > { %1864 = vmatpush.bf16.msra.mxu0 %v5201_v40  ;;  %v5136_v40 = vld [vmem:[%s5925_s29 + $0x80] sm:$0xff] }
  0x8d   : > { %v1761_v32 = vrot.slane %v1759_v25, 2 }
  0x8e   : > { %1021 = vmatmul.bf16.vlgmr.msrb.gmra.mxu3 %v5132_v36  ;;  %v1289_v36 = vrot.slane %v1287_v29, 1 }
  0x8f   : > { %698 = vmatmul.bf16.gmra.mxu1 %v5096_v35  ;;  %1693 = vmatpush.bf16.msra.mxu3 %v5192_v41  ;;  %v1285_v35 = vor.u32 %v1283_v28, %v1281_v16  ;;  %v1762_v38 = vor.u32 %v1761_v32, %v1758_v31 }
  0x90   : > { %886 = vmatmul.bf16.gmra.mxu2 %v801_v37  ;;  %1865 = vmatpush.bf16.msra.mxu0 %v5200_v54  ;;  %v1466_v37 = vrot.slane %v5982_v30, 1  ;;  %v1293_v56 = vor.u32 %v1291_v49, %v1289_v36 }
  0x91   : > { %1176 = vmatmul.bf16.gmra.mxu0 %v5146_v39  ;;  %v1770_v39 = vor.u32 %v1769_v34, %v1766_v33  ;;  %v1290_v41 = vsel %vm765_vm0, %v1285_v35, %v1289_v36 }
  0x92   : > { %v1467_v42 = vsel %vm1460_vm1, %v1464_v17, %v1466_v37  ;;  %v1469_v3 = vsel %vm1460_vm1, %v1466_v37, %v1468_v60  ;;  %v5186_v17 = vld [vmem:[%s5925_s29 + $0x44] sm:$0xff] }
  0x93   : > { %1694 = vmatpush.bf16.msra.mxu3 %v5191_v55  ;;  %v1771_v43 = vsel %vm1754_vm2, %v1762_v38, %v1770_v39  ;;  %v1628_v25 = vrot.slane %v5186_v17, 1  ;;  %v1791_v38 = vshrl.u32 %v5994_v53, 16 }
  0x94   : > { %1866 = vmatpush.bf16.msra.mxu0 %v5199_v58  ;;  %v1625_v58 = vrot.slane %v4607_v52, 1 }
  0x95   : > { %v1793_v45 = vrot.slane %v1791_v38, 1 }
  0x97   : > { %1695 = vmatpush.bf16.msra.mxu3 %v5190_v59 }
  0x98   : > { %1867 = vmatpush.bf16.msra.mxu0 %v5198_v10 }
  0x9b   : > { %1696 = vmatpush.bf16.msra.mxu3 %v5189_v11  ;;  %v1782_v11 = vshrl.u32 %v5982_v30, 16 }
  0x9c   : > { %1868 = vmatpush.bf16.msra.mxu0 %v5197_v19 }
  0x9e   : > { %1026 = vmatmul.bf16.gmra.mxu3 %v5133_v48  ;;  %v1776_v48 = vshll.u32 %v5173_v14, 16 }
  0x9f   : > { %703 = vmatmul.bf16.gmra.mxu1 %v5097_v47  ;;  %v1773_v47 = vshrl.u32 %v5173_v14, 16 }
  0xa0   : > { %891 = vmatmul.bf16.gmra.mxu2 %v809_v50  ;;  %v1295_v50 = vshll.u32 %v5162_v44, 16  ;;  %v1778_v55 = vrot.slane %v1776_v48, 2 }
  0xa1   : > { %1181 = vmatmul.bf16.gmra.mxu0 %v5147_v51  ;;  %v5185_v51 = vld [vmem:[%s5925_s29 + $0x3c] sm:$0xff]  ;;  %v1775_v54 = vrot.slane %v1773_v47, 1  ;;  %v1733_v47 = vld [vmem:[%s5925_s29 + $0x2c] sm:$0x3] }
  0xa2   : > { %v1297_v57 = vrot.slane %v1295_v50, 1  ;;  %v1626_v59 = vrot.slane %v5185_v51, 1  ;;  %v1752_v51 = vunpack.c.l.b16 %v1733_v47 }
  0xa3   : > { %v1779_v62 = vor.u32 %v1778_v55, %v1775_v54 }
  0xa4   : > { %v1298_v0 = vsel %vm765_vm0, %v1293_v56, %v1297_v57  ;;  %v1627_v1 = vsel %vm1460_vm1, %v1625_v58, %v1626_v59  ;;  %v1301_v23 = vor.u32 %v1299_v15, %v1297_v57  ;;  %v1629_v32 = vsel %vm1460_vm1, %v1626_v59, %v1628_v25 }
  0xa5   : > { %v1753_v58 = vpack.c.b16 %v1752_v51, %v1752_v51  ;;  %v5224_v51 = vld [vmem:[#allocation8 + $0x78] sm:$0xff] }
  0xa6   : > { %2496 = vmatpush.bf16.msra.mxu1 %v5224_v51 }
  0xa7   : > { %v1803_v61 = vshll.u32 %v1753_v58, 16 }
  0xae   : > { %1031 = vmatmul.bf16.gmra.mxu3 %v5134_v5  ;;  %v1414_v5 = vld [vmem:[%s5925_s29 + $0x2c] sm:$0x1] }
  0xaf   : > { %1368 = vmatmul.bf16.vlgmr.msrb.gmra.mxu1 %v1274_v6  ;;  %v1780_v6 = vsel %vm1754_vm2, %v1770_v39, %v1779_v62  ;;  %v1453_v9 = vunpack.c.l.b16 %v1414_v5  ;;  %v1794_v39 = vshll.u32 %v5994_v53, 16 }
  0xb0   : > { %1533 = vmatmul.bf16.vlgmr.msrb.gmra.mxu2 %v1463_v7 }
  0xb1   : > { %1186 = vmatmul.bf16.gmra.mxu0 %v5148_v8  ;;  %v1262_v8 = vpack.c.b16 %v1256_v2, %v1256_v2  ;;  %v1459_v19 = vpack.c.b16 %v1453_v9, %v1453_v9  ;;  %v1796_v46 = vrot.slane %v1794_v39, 2 }
  0xb3   : > { %v1303_v16 = vshll.u32 %v1262_v8, 16  ;;  %v1470_v26 = vrot.slane %v1459_v19, 1  ;;  %v1797_v50 = vor.u32 %v1796_v46, %v1793_v45  ;;  %v5215_v45 = vld [vmem:[#allocation8 + $0x30] sm:$0xff] }
  0xb5   : > { %v1305_v24 = vrot.slane %v1303_v16, 1  ;;  %v1471_v33 = vsel %vm1460_vm1, %v1468_v60, %v1470_v26  ;;  %v1800_v60 = vshrl.u32 %v1753_v58, 16 }
  0xb7   : > { %v1306_v31 = vsel %vm765_vm0, %v1301_v23, %v1305_v24 }
  0xbe   : > { %1036 = vmatmul.bf16.gmra.mxu3 %v5135_v18 }
  0xbf   : > { %1373 = vmatmul.bf16.gmra.mxu1 %v1282_v20 }
  0xc0   : > { %1538 = vmatmul.bf16.gmra.mxu2 %v1465_v21  ;;  %v1784_v21 = vrot.slane %v1782_v11, 1 }
  0xc1   : > { %1191 = vmatmul.bf16.gmra.mxu0 %v5149_v22  ;;  %v1787_v22 = vrot.slane %v1785_v12, 2  ;;  %v4603_v12 = vld [vmem:[%s5925_s29 + $0x5c] sm:$0x1] }
  0xc2   : > { %v1618_v16 = vunpack.c.l.b16 %v4603_v12 }
  0xc3   : > { %v1788_v28 = vor.u32 %v1787_v22, %v1784_v21 }
  0xc4   : > { %v1624_v24 = vpack.c.b16 %v1618_v16, %v1618_v16 }
  0xc5   : > { %v1789_v35 = vsel %vm1754_vm2, %v1779_v62, %v1788_v28  ;;  %v1798_v57 = vsel %vm1754_vm2, %v1788_v28, %v1797_v50 }
  0xc6   : > { %v1634_v28 = vrot.slane %v1624_v24, 1 }
  0xce   : > { %1041 = vmatmul.bf16.gmra.mxu3 %v5136_v40 }
  0xcf   : > { %1378 = vmatmul.bf16.gmra.mxu1 %v1290_v41 }
  0xd0   : > { %1543 = vmatmul.bf16.gmra.mxu2 %v1467_v42  ;;  %v5187_v42 = vld [vmem:[%s5925_s29 + $0x4c] sm:$0xff] }
  0xd1   : > { %1869 = vmatmul.bf16.vlgmr.msra.gmra.mxu0 %v1771_v43  ;;  %v1630_v48 = vrot.slane %v5187_v42, 1 }
  0xd3   : > { %v1631_v53 = vsel %vm1460_vm1, %v1628_v25, %v1630_v48 }
  0xdb   : > { %v572_v4 = vpop.f32.mrf.mxu0 }
  0xdc   : > { %v684_v63 = vpop.f32.mrf.mxu1 }
  0xdd   : > { %v685_v7 = vadd.f32 %v684_v63, %v572_v4  ;;  %v1805_v4 = vrot.slane %v1803_v61, 2 }
  0xde   : > { %1697 = vmatmul.bf16.vlgmr.msra.gmra.mxu3 %v1627_v1  ;;  %v5188_v1 = vld [vmem:[%s5925_s29 + $0x54] sm:$0xff] }
  0xdf   : > { %1383 = vmatmul.bf16.gmra.mxu1 %v1298_v0  ;;  %v1632_v5 = vrot.slane %v5188_v1, 1  ;;  %v5213_v1 = vld [vmem:[#allocation8 + $0x20] sm:$0xff] }
  0xe0   : > { %1548 = vmatmul.bf16.gmra.mxu2 %v1469_v3  ;;  %v1802_v3 = vrot.slane %v1800_v60, 1 }
  0xe1   : > { %1874 = vmatmul.bf16.gmra.mxu0 %v1780_v6  ;;  %v582_v10 = vpop.f32.mrf.mxu3 }
  0xe3   : > { %v872_v13 = vpop.f32.mrf.mxu2  ;;  %v6010_v20 = vpop.f32.mrf.mxu0 }
  0xe4   : > { %v6005_v14 = vpop.f32.mrf.mxu1  ;;  %v6008_v18 = vadd.f32 %v872_v13, %v685_v7  ;;  %v1806_v7 = vor.u32 %v1805_v4, %v1802_v3 }
  0xe6   : > { %v1807_v15 = vsel %vm1754_vm2, %v1797_v50, %v1806_v7 }
  0xe9   : > { %v6012_v27 = vpop.f32.mrf.mxu3 }
  0xeb   : > { %v6014_v29 = vpop.f32.mrf.mxu2  ;;  %v577_v34 = vpop.f32.mrf.mxu0 }
  0xec   : > { %v689_v30 = vpop.f32.mrf.mxu1 }
  0xed   : > { %v690_v36 = vadd.f32 %v689_v30, %v577_v34  ;;  %v5216_v34 = vld [vmem:[#allocation8 + $0x38] sm:$0xff] }
  0xee   : > { %1702 = vmatmul.bf16.gmra.mxu3 %v1629_v32  ;;  %2640 = vmatpush.bf16.msra.mxu2 %v5216_v34 }
  0xef   : > { %1388 = vmatmul.bf16.gmra.mxu1 %v1306_v31 }
  0xf0   : > { %1553 = vmatmul.bf16.gmra.mxu2 %v1471_v33  ;;  %v1635_v33 = vsel %vm1460_vm1, %v1632_v5, %v1634_v28 }
  0xf1   : > { %1879 = vmatmul.bf16.gmra.mxu0 %v1789_v35  ;;  %v587_v37 = vpop.f32.mrf.mxu3 }
  0xf2   : > { %2641 = vmatpush.bf16.msra.mxu2 %v5215_v45 }
  0xf3   : > { %v877_v40 = vpop.f32.mrf.mxu2  ;;  %v6025_v44 = vpop.f32.mrf.mxu0 }
  0xf4   : > { %v6022_v41 = vpop.f32.mrf.mxu1  ;;  %v899_v43 = vadd.f32 %v877_v40, %v690_v36 }
  0xf9   : > { %v6028_v49 = vpop.f32.mrf.mxu3 }
  0xfb   : > { %v6030_v52 = vpop.f32.mrf.mxu2 }
  0xfc   : > { %v694_v54 = vpop.f32.mrf.mxu1 }
  0xfd   : > { %v695_v55 = vadd.f32 %v694_v54, %v582_v10  ;;  %v1633_v10 = vsel %vm1460_vm1, %v1630_v48, %v1632_v5  ;;  %v5214_v54 = vld [vmem:[#allocation8 + $0x28] sm:$0xff] }
  0xfe   : > { %v1172_v56 = vpop.f32.mrf.mxu0  ;;  %1707 = vmatmul.bf16.gmra.mxu3 %v1631_v53  ;;  %2642 = vmatpush.bf16.msra.mxu2 %v5214_v54 }
 0x101   : > { %1884 = vmatmul.bf16.gmra.mxu0 %v1798_v57  ;;  %v592_v59 = vpop.f32.mrf.mxu3 }
 0x102   : > { %2643 = vmatpush.bf16.msra.mxu2 %v5213_v1 }
 0x103   : > { %v882_v62 = vpop.f32.mrf.mxu2 }
 0x104   : > { %v901_v63 = vadd.f32 %v882_v62, %v695_v55  ;;  %v6034_v0 = vpop.f32.mrf.mxu1  ;;  %v5223_v62 = vld [vmem:[#allocation8 + $0x70] sm:$0xff] }
 0x105   : > { %2497 = vmatpush.bf16.msra.mxu1 %v5223_v62  ;;  %v687_v62 = vadd.f32 %v6005_v14, %v6010_v20 }
 0x106   : > { %v6037_v2 = vpop.f32.mrf.mxu0 }
 0x109   : > { %v6039_v6 = vpop.f32.mrf.mxu3 }
 0x10b   : > { %v6041_v8 = vpop.f32.mrf.mxu2 }
 0x10c   : > { %v699_v9 = vpop.f32.mrf.mxu1 }
 0x10d   : > { %v700_v11 = vadd.f32 %v699_v9, %v587_v37 }
 0x10e   : > { %v1177_v13 = vpop.f32.mrf.mxu0  ;;  %1712 = vmatmul.bf16.gmra.mxu3 %v1633_v10 }
 0x111   : > { %1889 = vmatmul.bf16.gmra.mxu0 %v1807_v15  ;;  %v1022_v17 = vpop.f32.mrf.mxu3  ;;  %v5742_v15 = vmov 0  }
 0x112   : > { %v1047_v21 = vadd.f32 %v1022_v17, %v6008_v18  ;;  %2334 = vst [vmem:[#allocation2] sm:$0xf] %v5742_v15 }
 0x113   : > { %v887_v19 = vpop.f32.mrf.mxu2  ;;  %2335 = vst [vmem:[#allocation2 + $0x4] sm:$0xf] %v5742_v15 }
 0x114   : > { %v6047_v22 = vadd.f32 %v887_v19, %v700_v11  ;;  %v6049_v23 = vpop.f32.mrf.mxu1  ;;  %v6051_v25 = vadd.f32 %v1172_v56, %v1047_v21  ;;  %2336 = vst [vmem:[#allocation2 + $0x30] sm:$0xf] %v5742_v15 }
 0x115   : > { %2337 = vst [vmem:[#allocation2 + $0x34] sm:$0xf] %v5742_v15 }
 0x116   : > { %v6053_v26 = vpop.f32.mrf.mxu0 }
 0x119   : > { %v6055_v30 = vpop.f32.mrf.mxu3 }
 0x11b   : > { %v6057_v31 = vpop.f32.mrf.mxu2 }
 0x11c   : > { %v704_v32 = vpop.f32.mrf.mxu1 }
 0x11d   : > { %v705_v35 = vadd.f32 %v704_v32, %v592_v59 }
 0x11e   : > { %v1182_v18 = vpop.f32.mrf.mxu0  ;;  %1717 = vmatmul.bf16.gmra.mxu3 %v1635_v33 }
 0x121   : > { %v1027_v36 = vpop.f32.mrf.mxu3 }
 0x122   : > { %v1049_v38 = vadd.f32 %v1027_v36, %v899_v43  ;;  %v1943_v43 = vlaneseq }
 0x123   : > { %v892_v37 = vpop.f32.mrf.mxu2 }
 0x124   : > { %v6060_v39 = vadd.f32 %v892_v37, %v705_v35  ;;  %v6062_v40 = vpop.f32.mrf.mxu1  ;;  %v6064_v42 = vadd.f32 %v1177_v13, %v1049_v38  ;;  %v6074_v56 = vshrl.u32 %v1943_v43, 7 }
 0x126   : > { %v6066_v46 = vpop.f32.mrf.mxu0  ;;  %v1957_v60 = vand.u32 65535, %v6074_v56  ;;  %v1958_v4 = vshrl.u32 %v6074_v56, 16  ;;  %v6093_v19 = vadd.s32 8, %v6074_v56 }
 0x128   : > { %v1961_v5 = vmul.u32 52428, %v1957_v60  ;;  %v1960_v7 = vmul.u32 52429, %v1957_v60  ;;  %v1962_v9 = vmul.u32 52429, %v1958_v4  ;;  %v1963_v11 = vmul.u32 52428, %v1958_v4 }
 0x129   : > { %v6068_v47 = vpop.f32.mrf.mxu3  ;;  %v1986_v28 = vand.u32 65535, %v6093_v19  ;;  %v1987_v35 = vshrl.u32 %v6093_v19, 16  ;;  %v6106_v60 = vadd.s32 16, %v6074_v56 }
 0x12a   : > { %v1966_v12 = vshll.u32 %v1962_v9, 16  ;;  %v1965_v33 = vshrl.u32 %v1961_v5, 16  ;;  %v1967_v45 = vshrl.u32 %v1962_v9, 16 }
 0x12b   : > { %v6070_v48 = vpop.f32.mrf.mxu2  ;;  %v1990_v36 = vmul.u32 52428, %v1986_v28  ;;  %v1989_v37 = vmul.u32 52429, %v1986_v28  ;;  %v1991_v38 = vmul.u32 52429, %v1987_v35  ;;  %v2016_v20 = vshrl.u32 %v6106_v60, 16 }
 0x12c   : > { %v6072_v50 = vpop.f32.mrf.mxu1  ;;  %v898_v28 = vadd.f32 %v6014_v29, %v687_v62  ;;  %v5222_v62 = vld [vmem:[#allocation8 + $0x68] sm:$0xff] }
 0x12d   : > { %v1993_v54 = vshll.u32 %v1990_v36, 16  ;;  %v1994_v14 = vshrl.u32 %v1990_v36, 16  ;;  %2498 = vmatpush.bf16.msra.mxu1 %v5222_v62 }
 0x12e   : > { %v1187_v53 = vpop.f32.mrf.mxu0  ;;  %v1048_v36 = vadd.f32 %v6055_v30, %v898_v28  ;;  %v6146_v30 = vadd.s32 24, %v6074_v56  ;;  %v5230_v28 = vld [vmem:[#allocation8 + $0xa8] sm:$0xff] }
 0x12f   : > { %vm1997_vm5 = vc.u32 %v1989_v37, %v1993_v54 }
 0x130   : > { %v1998_v9 = vsel %vm1997_vm5, 1, %v5742_v15 }
 0x131   : > { %v1032_v55 = vpop.f32.mrf.mxu3 }
 0x132   : > { %v1051_v57 = vadd.f32 %v1032_v55, %v901_v63  ;;  %v1964_v63 = vshll.u32 %v1961_v5, 16  ;;  %v1992_v55 = vmul.u32 52428, %v1987_v35  ;;  %v1999_v5 = vadd.s32 %v1993_v54, %v1989_v37 }
 0x133   : > { %v6076_v58 = vpop.f32.mrf.mxu2  ;;  %v2021_v54 = vmul.u32 52428, %v2016_v20 }
 0x134   : > { %v6078_v59 = vpop.f32.mrf.mxu1  ;;  %v6081_v61 = vadd.f32 %v1182_v18, %v1051_v57  ;;  %vm1968_vm3 = vc.u32 %v1960_v7, %v1964_v63  ;;  %v1970_v17 = vadd.s32 %v1964_v63, %v1960_v7  ;;  %v1995_v57 = vshll.u32 %v1991_v38, 16 }
 0x135   : > { %v1969_v16 = vsel %vm1968_vm3, 1, %v5742_v15  ;;  %v2015_v63 = vand.u32 65535, %v6106_v60 }
 0x136   : > { %v6083_v3 = vpop.f32.mrf.mxu0  ;;  %v1971_v24 = vadd.s32 %v1969_v16, %v1963_v11  ;;  %vm1972_vm4 = vc.u32 %v1970_v17, %v1966_v12  ;;  %v692_v11 = vadd.f32 %v6022_v41, %v6025_v44  ;;  %v2000_v17 = vadd.s32 %v1998_v9, %v1992_v55 }
 0x137   : > { %v1973_v34 = vsel %vm1972_vm4, 1, %v5742_v15  ;;  %vm2001_vm6 = vc.u32 %v1999_v5, %v1995_v57  ;;  %v1996_v41 = vshrl.u32 %v1991_v38, 16  ;;  %v2018_v35 = vmul.u32 52429, %v2015_v63  ;;  %v5231_v5 = vld [vmem:[#allocation8 + $0xb0] sm:$0xff] }
 0x138   : > { %v1975_v18 = vadd.s32 %v1973_v34, %v1971_v24  ;;  %v697_v24 = vadd.f32 %v6034_v0, %v6012_v27  ;;  %v900_v37 = vadd.f32 %v6030_v52, %v692_v11  ;;  %v702_v38 = vadd.f32 %v6049_v23, %v6028_v49 }
 0x139   : > { %v6086_v10 = vpop.f32.mrf.mxu3  ;;  %v1198_v23 = vadd.f32 %v6037_v2, %v1048_v36 }
 0x13a   : > { %v1976_v51 = vadd.s32 %v1975_v18, %v1965_v33  ;;  %v2002_v33 = vsel %vm2001_vm6, 1, %v5742_v15  ;;  %v6130_v18 = vmul.u32 52429, %v2016_v20  ;;  %v902_v27 = vadd.f32 %v6041_v8, %v697_v24  ;;  %v5221_v24 = vld [vmem:[#allocation8 + $0x60] sm:$0xff] }
 0x13b   : > { %v6088_v13 = vpop.f32.mrf.mxu2  ;;  %v2004_v44 = vadd.s32 %v2002_v33, %v2000_v17  ;;  %v1050_v8 = vadd.f32 %v6068_v47, %v900_v37  ;;  %v6152_v49 = vadd.f32 %v6057_v31, %v702_v38  ;;  %v1394_v47 = vadd.f32 %v6072_v50, %v6051_v25  ;;  %2499 = vmatpush.bf16.msra.mxu1 %v5221_v24 }
 0x13c   : > { %v6095_v21 = vpop.f32.mrf.mxu1  ;;  %v1977_v16 = vadd.s32 %v1976_v51, %v1967_v45  ;;  %v2024_v52 = vshll.u32 %v6130_v18, 16  ;;  %v1052_v2 = vadd.f32 %v6086_v10, %v902_v27  ;;  %v2025_v25 = vshrl.u32 %v6130_v18, 16 }
 0x13d   : > { %v2005_v51 = vadd.s32 %v2004_v44, %v1994_v14  ;;  %v2045_v14 = vshrl.u32 %v6146_v30, 16  ;;  %v1200_v20 = vadd.f32 %v6053_v26, %v1050_v8  ;;  %v1396_v38 = vadd.f32 %v6095_v21, %v6064_v42 }
 0x13e   : > { %v6100_v32 = vpop.f32.mrf.mxu0  ;;  %v1978_v29 = vshrl.u32 %v1977_v16, 3  ;;  %v6195_v8 = vadd.f32 %v6066_v46, %v1052_v2 }
 0x13f   : > { %v2050_v18 = vmul.u32 52428, %v2045_v14 }
 0x140   : > { %v1979_v11 = vmul.u32 10, %v1978_v29 }
 0x141   : > { %v1037_v43 = vpop.f32.mrf.mxu3 }
 0x142   : > { %v1053_v1 = vadd.f32 %v1037_v43, %v6047_v22  ;;  %v6122_v22 = vmul.u32 52428, %v2015_v63  ;;  %v707_v43 = vadd.f32 %v6062_v40, %v6039_v6  ;;  %v5212_v40 = vld [vmem:[#allocation8 + $0x18] sm:$0xff]  ;;  %v6176_v10 = vsub.s32 %v6074_v56, %v1979_v11 }
 0x143   : > { %v6111_v4 = vpop.f32.mrf.mxu2  ;;  %2644 = vmatpush.bf16.msra.mxu2 %v5212_v40 }
 0x144   : > { %v6113_v7 = vpop.f32.mrf.mxu1  ;;  %v6119_v12 = vadd.f32 %v1187_v53, %v1053_v1  ;;  %v5232_v53 = vld [vmem:[#allocation8 + $0xb8] sm:$0xff]  ;;  %v2022_v45 = vshll.u32 %v6122_v22, 16  ;;  %v2006_v1 = vadd.s32 %v2005_v51, %v1996_v41  ;;  %v6155_v6 = vadd.f32 %v6070_v48, %v707_v43 }
 0x145   : > { %2782 = vmatpush.bf16.msrb.mxu3 %v5232_v53  ;;  %v2023_v31 = vshrl.u32 %v6122_v22, 16  ;;  %v2044_v48 = vand.u32 65535, %v6146_v30  ;;  %v6170_v22 = vmul.u32 52429, %v2045_v14  ;;  %v1395_v53 = vadd.f32 %v6078_v59, %v1198_v23  ;;  %v5220_v43 = vld [vmem:[#allocation8 + $0x58] sm:$0xff] }
 0x146   : > { %v6128_v34 = vpop.f32.mrf.mxu0  ;;  %vm2026_vm7 = vc.u32 %v2018_v35, %v2022_v45  ;;  %v2028_v9 = vadd.s32 %v2022_v45, %v2018_v35  ;;  %v2007_v16 = vshrl.u32 %v2006_v1, 3  ;;  %v6183_v51 = vadd.s32 32, %v6074_v56  ;;  %2500 = vmatpush.bf16.msra.mxu1 %v5220_v43 }
 0x147   : > { %v2027_v63 = vsel %vm2026_vm7, 1, %v5742_v15  ;;  %v2047_v41 = vmul.u32 52429, %v2044_v48  ;;  %v6168_v44 = vmul.u32 52428, %v2044_v48  ;;  %v6186_v59 = vadd.f32 %v6076_v58, %v1394_v47 }
 0x148   : > { %v2029_v17 = vadd.s32 %v2027_v63, %v2021_v54  ;;  %vm2030_vm8 = vc.u32 %v2028_v9, %v2024_v52  ;;  %v2008_v26 = vmul.u32 10, %v2007_v16  ;;  %v6189_v54 = vadd.f32 %v6088_v13, %v1395_v53  ;;  %v5229_v52 = vld [vmem:[#allocation8 + $0xa0] sm:$0xff]  ;;  %v5211_v9 = vld [vmem:[#allocation8 + $0x10] sm:$0xff]  ;;  %v5228_v63 = vld [vmem:[#allocation8 + $0x98] sm:$0xff] }
 0x149   : > { %v6136_v0 = vpop.f32.mrf.mxu3  ;;  %2783 = vmatpush.bf16.msrb.mxu3 %v5231_v5  ;;  %v2031_v50 = vsel %vm2030_vm8, 1, %v5742_v15  ;;  %v2051_v29 = vshll.u32 %v6168_v44, 16  ;;  %v1397_v13 = vadd.f32 %v6113_v7, %v1200_v20  ;;  %vm2244_vm10 = vcmp.ne.s32.totalorder %v6176_v10, 0  ;;  %v5219_v7 = vld [vmem:[#allocation8 + $0x50] sm:$0xff]  ;;  %2645 = vmatpush.bf16.msra.mxu2 %v5211_v9  ;;  %v5238_v9 = vld [vmem:[#allocation8 + $0xe8] sm:$0xff] }
 0x14a   : > { %v2033_v33 = vadd.s32 %v2031_v50, %v2029_v17  ;;  %vm2254_vm11 = vcmp.lt.s32.totalorder %v6176_v10, 0  ;;  %v6207_v46 = vsub.s32 %v6093_v19, %v2008_v26  ;;  %v2052_v40 = vshrl.u32 %v6168_v44, 16  ;;  %v5240_v17 = vld [vmem:[#allocation8 + $0xf8] sm:$0xff]  ;;  %2501 = vmatpush.bf16.msra.mxu1 %v5219_v7  ;;  %v5227_v44 = vld [vmem:[#allocation8 + $0x90] sm:$0xff]  ;;  %v5209_v50 = vld [vmem:[#allocation8] sm:$0xff] }
 0x14b   : > { %v6142_v55 = vpop.f32.mrf.mxu2  ;;  %vm2055_vm9 = vc.u32 %v2047_v41, %v2051_v29  ;;  %v2057_v21 = vadd.s32 %v2051_v29, %v2047_v41  ;;  %v2074_v47 = vshrl.u32 %v6183_v51, 16  ;;  %v1054_v11 = vadd.f32 %v6136_v0, %v6152_v49  ;;  %vm6235_vm13 = vmand %vm2254_vm11, %vm2244_vm10  ;;  %2988 = vmatpush.bf16.msrb.mxu0 %v5240_v17  ;;  %v5218_v41 = vld [vmem:[#allocation8 + $0x48] sm:$0xff] }
 0x14c   : > { %v6149_v57 = vpop.f32.mrf.mxu1  ;;  %v2034_v27 = vadd.s32 %v2033_v33, %v2023_v31  ;;  %v2056_v42 = vsel %vm2055_vm9, 1, %v5742_v15  ;;  %v6215_v16 = vadd.s32 10, %v6176_v10  ;;  %v2054_v14 = vshrl.u32 %v6170_v22, 16 }
 0x14d   : > { %2784 = vmatpush.bf16.msrb.mxu3 %v5230_v28  ;;  %v2058_v5 = vadd.s32 %v2056_v42, %v2050_v18  ;;  %v6221_v24 = vmul.u32 52429, %v2074_v47  ;;  %v6227_v0 = vadd.f32 %v6142_v55, %v1397_v13  ;;  %vm2245_vm14 = vcmp.ne.s32.totalorder %v6207_v46, 0  ;;  %v5210_v18 = vld [vmem:[#allocation8 + $0x8] sm:$0xff] }
 0x14e   : > { %v6173_v36 = vpop.f32.mrf.mxu0  ;;  %v2035_v58 = vadd.s32 %v2034_v27, %v2025_v25  ;;  %v6224_v25 = vadd.f32 %v6111_v4, %v1396_v38  ;;  %vm2255_vm15 = vcmp.lt.s32.totalorder %v6207_v46, 0  ;;  %v2079_v53 = vmul.u32 52428, %v2074_v47  ;;  %2502 = vmatpush.bf16.msra.mxu1 %v5218_v41  ;;  %2646 = vmatpush.bf16.msra.mxu2 %v5210_v18 }
 0x14f   : > { %v6247_v26 = vadd.s32 10, %v6207_v46  ;;  %v6251_v27 = vadd.s32 40, %v6074_v56  ;;  %v2284_v29 = vsel %vm6235_vm13, %v6215_v16, %v6176_v10  ;;  %v6258_v38 = vadd.f32 %v6083_v3, %v1054_v11  ;;  %vm6269_vm4 = vmand %vm2255_vm15, %vm2245_vm14 }
 0x150   : > { %v2036_v23 = vshrl.u32 %v2035_v58, 3  ;;  %vm6308_vm8 = vcmp.lt.s32.totalorder %v2284_v29, 8 }
 0x151   : > { %v1042_v35 = vpop.f32.mrf.mxu3  ;;  %2785 = vmatpush.bf16.msrb.mxu3 %v5229_v52  ;;  %v2358_v52 = vld [vmem:[#allocation2] sm:$0xc]  ;;  %v2285_v47 = vsel %vm6269_vm4, %v6247_v26, %v6207_v46  ;;  %v2102_v16 = vand.u32 65535, %v6251_v27 }
 0x152   : > { %v1055_v37 = vadd.f32 %v1042_v35, %v6060_v39  ;;  %v2053_v39 = vshll.u32 %v6170_v22, 16  ;;  %v2037_v55 = vmul.u32 10, %v2036_v23  ;;  %v5239_v22 = vld [vmem:[#allocation8 + $0xf0] sm:$0xff]  ;;  %v1398_v35 = vadd.f32 %v6149_v57, %v6081_v61  ;;  %v2359_v61 = vld [vmem:[#allocation2 + $0x4] sm:$0xf]  ;;  %2647 = vmatpush.bf16.msra.mxu2 %v5209_v50 }
 0x153   : > { %v6179_v45 = vpop.f32.mrf.mxu2  ;;  %v2385_v57 = vld [vmem:[#allocation2] sm:$0x8]  ;;  %2989 = vmatpush.bf16.msrb.mxu0 %v5239_v22  ;;  %v2531_v7 = vunpack.c.l.b16 %v2358_v52  ;;  %v6316_v22 = vmul.u32 52428, %v2102_v16  ;;  %v5236_v52 = vld [vmem:[#allocation8 + $0xd8] sm:$0xff]  ;;  %vm6349_vm13 = vcmp.lt.s32.totalorder %v2285_v47, 8 }
 0x154   : > { %v6197_v62 = vpop.f32.mrf.mxu1  ;;  %v6200_v1 = vadd.f32 %v6100_v32, %v1055_v37  ;;  %v2073_v32 = vand.u32 65535, %v6183_v51  ;;  %vm2059_vm12 = vc.u32 %v2057_v21, %v2053_v39  ;;  %v2082_v37 = vshll.u32 %v6221_v24, 16 }
 0x155   : > { %v2060_v19 = vsel %vm2059_vm12, 1, %v5742_v15  ;;  %2786 = vmatpush.bf16.msrb.mxu3 %v5228_v63  ;;  %v6261_v39 = vadd.f32 %v6179_v45, %v1398_v35  ;;  %v1399_v58 = vadd.f32 %v6197_v62, %v6195_v8  ;;  %v6275_v45 = vsub.s32 %v6106_v60, %v2037_v55 }
 0x156   : > { %v6218_v31 = vmul.u32 52428, %v2073_v32  ;;  %v2062_v2 = vadd.s32 %v2060_v19, %v2058_v5  ;;  %v2076_v20 = vmul.u32 52429, %v2073_v32  ;;  %v6241_v28 = vpop.f32.mrf.mxu0  ;;  %v5217_v5 = vld [vmem:[#allocation8 + $0x40] sm:$0xff]  ;;  %v5226_v32 = vld [vmem:[#allocation8 + $0x88] sm:$0xff]  ;;  %v2414_v23 = vunpack.c.l.b16 %v2385_v57 }
 0x157   : > { %2503 = vmatpush.bf16.msra.mxu1 %v5217_v5  ;;  %vm2246_vm6 = vcmp.ne.s32.totalorder %v6275_v45, 0  ;;  %2990 = vmatpush.bf16.msrb.mxu0 %v5238_v9  ;;  %vm2256_vm7 = vcmp.lt.s32.totalorder %v6275_v45, 0  ;;  %v6320_v35 = vadd.s32 10, %v6275_v45 }
 0x158   : > { %v2080_v4 = vshll.u32 %v6218_v31, 16  ;;  %v2063_v33 = vadd.s32 %v2062_v2, %v2052_v40  ;;  %v2081_v8 = vshrl.u32 %v6218_v31, 16  ;;  %v2415_v40 = vunpack.c.l.b16 %v2359_v61  ;;  %vm6330_vm11 = vmand %vm2256_vm7, %vm2246_vm6 }
 0x159   : > { %v1044_v48 = vpop.f32.mrf.mxu3  ;;  %2787 = vmatpush.bf16.msrb.mxu3 %v5227_v44  ;;  %v2083_v2 = vshrl.u32 %v6221_v24, 16  ;;  %v6303_v24 = vld [vmem:[%s7045_s4] ss:$0 sm:$0xff]  ;;  %vm2431_vm6 = vcmask 1044480  }
 0x15a   : > { %v2064_v43 = vadd.s32 %v2063_v33, %v2054_v14  ;;  %vm2084_vm3 = vc.u32 %v2076_v20, %v2080_v4  ;;  %v2086_v42 = vadd.s32 %v2080_v4, %v2076_v20  ;;  %v6285_v19 = vadd.f32 %v1044_v48, %v6155_v6  ;;  %v6291_v14 = vld [vmem:[%s7044_s3] ss:$0 sm:$0xff]  ;;  %v5225_v6 = vld [vmem:[#allocation8 + $0x80] sm:$0xff] }
 0x15b   : > { %v6229_v49 = vpop.f32.mrf.mxu2  ;;  %v2085_v10 = vsel %vm2084_vm3, 1, %v5742_v15  ;;  %v5237_v48 = vld [vmem:[#allocation8 + $0xe0] sm:$0xff]  ;;  %v2532_v4 = vpack.c.b16 %v2415_v40, %v2531_v7  ;;  %v6306_v41 = vpack.c.b16 %v2415_v40, %v2414_v23  ;;  %v2286_v40 = vsel %vm6330_vm11, %v6320_v35, %v6275_v45 }
 0x15c   : > { %v1384_v13 = vpop.f32.mrf.mxu1  ;;  %v2065_v21 = vshrl.u32 %v2064_v43, 3  ;;  %v2087_v62 = vadd.s32 %v2085_v10, %v2079_v53  ;;  %vm2088_vm5 = vc.u32 %v2086_v42, %v2082_v37  ;;  %v6323_v37 = vadd.f32 %v6229_v49, %v1399_v58  ;;  %2991 = vmatpush.bf16.msrb.mxu0 %v5237_v48 }
 0x15d   : > { %v2089_v11 = vsel %vm2088_vm5, 1, %v5742_v15  ;;  %2788 = vmatpush.bf16.msrb.mxu3 %v5226_v32  ;;  %v2538_v18 = vshll.u32 %v2532_v4, 16  ;;  %v1400_v29 = vadd.f32 %v1384_v13, %v6119_v12  ;;  %v2697_v3 = vshrl.u32 %v6306_v41, 16 }
 0x15e   : > { %v2066_v60 = vmul.u32 10, %v2065_v21  ;;  %v2091_v46 = vadd.s32 %v2089_v11, %v2087_v62  ;;  %v6312_v44 = vpop.f32.mrf.mxu0  ;;  %v2105_v10 = vmul.u32 52429, %v2102_v16  ;;  %v2700_v5 = vshll.u32 %v6306_v41, 16  ;;  %v5261_v21 = vld [vmem:[#allocation8 + $0x178] sm:$0xff] }
 0x15f   : > { %v6355_v62 = vrot.slane %v2538_v18, 3  ;;  %v2109_v32 = vshll.u32 %v6316_v22, 16  ;;  %v2432_v11 = vrot.slane %v6306_v41, 3  ;;  %vm6406_vm3 = vcmp.lt.s32.totalorder %v2286_v40, 8  ;;  %3304 = vmatpush.bf16.msrb.mxu2 %v5261_v21 }
 0x160   : > { %v6296_v20 = vsub.s32 %v6146_v30, %v2066_v60  ;;  %v2092_v33 = vadd.s32 %v2091_v46, %v2081_v8  ;;  %2992 = vmatpush.bf16.msrb.mxu0 %v5236_v52  ;;  %v6378_v46 = vrot.slane %v2700_v5, 4  ;;  %vm2533_vm11 = vsmask.f32 5376 }
 0x161   : > { %v1698_v63 = vpop.f32.mrf.mxu3  ;;  %2789 = vmatpush.bf16.msrb.mxu3 %v5225_v6  ;;  %vm2113_vm14 = vc.u32 %v2105_v10, %v2109_v32  ;;  %v2115_v50 = vadd.s32 %v2109_v32, %v2105_v10 }
 0x162   : > { %v1723_v31 = vadd.f32 %v1698_v63, %v6186_v59  ;;  %v2103_v59 = vshrl.u32 %v6251_v27, 16  ;;  %vm2247_vm9 = vcmp.ne.s32.totalorder %v6296_v20, 0  ;;  %vm2257_vm10 = vcmp.lt.s32.totalorder %v6296_v20, 0 }
 0x163   : > { %v1549_v17 = vpop.f32.mrf.mxu2  ;;  %v2093_v26 = vadd.s32 %v2092_v33, %v2083_v2  ;;  %v6335_v61 = vadd.s32 10, %v6296_v20  ;;  %vm6344_vm12 = vmand %vm2257_vm10, %vm2247_vm9  ;;  %v6374_v2 = vrot.slane %v2697_v3, 3  ;;  %v6391_v33 = vadd.s32 48, %v6074_v56 }
 0x164   : > { %v1895_v55 = vadd.f32 %v6173_v36, %v1723_v31  ;;  %v2535_v36 = vshrl.u32 %v2532_v4, 16  ;;  %v6337_v57 = vmul.u32 52429, %v2103_v59  ;;  %v1386_v58 = vpop.f32.mrf.mxu1  ;;  %v6359_v9 = vadd.f32 %v1549_v17, %v1400_v29 }
 0x165   : > { %v2094_v13 = vshrl.u32 %v2093_v26, 3  ;;  %v1401_v63 = vadd.f32 %v1386_v58, %v6258_v38  ;;  %v2287_v60 = vsel %vm6344_vm12, %v6335_v61, %v6296_v20  ;;  %v2108_v45 = vmul.u32 52428, %v2103_v59 }
 0x166   : > { %v1909_v53 = vmul.f32 %v6291_v14, %v1895_v55  ;;  %v6353_v8 = vrot.slane %v2535_v36, 2  ;;  %v2111_v16 = vshll.u32 %v6337_v57, 16  ;;  %v2110_v55 = vshrl.u32 %v6316_v22, 16  ;;  %v5234_v36 = vld [vmem:[#allocation8 + $0xc8] sm:$0xff] }
 0x167   : > { %v2095_v7 = vmul.u32 10, %v2094_v13  ;;  %v2114_v59 = vsel %vm2113_vm14, 1, %v5742_v15  ;;  %v2703_v29 = vor.u32 %v6378_v46, %v6374_v2  ;;  %v2112_v43 = vshrl.u32 %v6337_v57, 16  ;;  %v5233_v57 = vld [vmem:[#allocation8 + $0xc0] sm:$0xff] }
 0x168   : > { %v1923_v49 = vadd.f32 %v6303_v24, %v1909_v53  ;;  %v2541_v38 = vor.u32 %v6355_v62, %v6353_v8  ;;  %vm2117_vm15 = vc.u32 %v2115_v50, %v2111_v16  ;;  %v6394_v53 = vadd.s32 56, %v6074_v56 }
 0x169   : > { %v1700_v42 = vpop.f32.mrf.mxu3  ;;  %v6384_v4 = vsub.s32 %v6183_v51, %v2095_v7  ;;  %v2116_v26 = vadd.s32 %v2114_v59, %v2108_v45  ;;  %v2118_v22 = vsel %vm2117_vm15, 1, %v5742_v15  ;;  %v2131_v52 = vand.u32 65535, %v6391_v33 }
 0x16a   : > { %v1724_v23 = vadd.f32 %v1700_v42, %v6189_v54  ;;  %v5235_v54 = vld [vmem:[#allocation8 + $0xd0] sm:$0xff]  ;;  %v1933_v17 = vmax.f32 %v1923_v49, 0.0  ;;  %v2132_v49 = vshrl.u32 %v6391_v33, 16  ;;  %v2160_v32 = vand.u32 65535, %v6394_v53 }
 0x16b   : > { %v1551_v47 = vpop.f32.mrf.mxu2  ;;  %2993 = vmatpush.bf16.msrb.mxu0 %v5235_v54  ;;  %vm2248_vm4 = vcmp.ne.s32.totalorder %v6384_v4, 0  ;;  %v2120_v3 = vadd.s32 %v2118_v22, %v2116_v26  ;;  %v2134_v10 = vmul.u32 52429, %v2131_v52  ;;  %v2135_v42 = vmul.u32 52428, %v2131_v52 }
 0x16c   : > { %v1896_v31 = vadd.f32 %v6241_v28, %v1724_v23  ;;  %v6380_v6 = vadd.f32 %v1551_v47, %v1401_v63  ;;  %v6387_v28 = vpop.f32.mrf.mxu0  ;;  %v2324_v35 = vsel %vm6308_vm8, %v1933_v17, 0.0  ;;  %v6411_v5 = vmul.u32 52429, %v2132_v49 }
 0x16d   : > { %v2121_v40 = vadd.s32 %v2120_v3, %v2110_v55  ;;  %v2161_v7 = vshrl.u32 %v6394_v53, 16  ;;  %vm2258_vm5 = vcmp.lt.s32.totalorder %v6384_v4, 0  ;;  %v2137_v47 = vmul.u32 52428, %v2132_v49 }
 0x16e   : > { %v1910_v48 = vmul.f32 %v6291_v14, %v1896_v31  ;;  %v2138_v16 = vshll.u32 %v2135_v42, 16  ;;  %v2278_v17 = vadd.s32 10, %v6384_v4  ;;  %v2140_v45 = vshll.u32 %v6411_v5, 16  ;;  %vm6429_vm8 = vmand %vm2258_vm5, %vm2248_vm4 }
 0x16f   : > { %2994 = vmatpush.bf16.msrb.mxu0 %v5234_v36  ;;  %v2122_v31 = vadd.s32 %v2121_v40, %v2112_v43  ;;  %v2139_v50 = vshrl.u32 %v2135_v42, 16  ;;  %vm6441_vm9 = vcmp.lt.s32.totalorder %v2287_v60, 8  ;;  %v2163_v52 = vmul.u32 52429, %v2160_v32 }
 0x170   : > { %v1924_v51 = vadd.f32 %v6303_v24, %v1910_v48  ;;  %vm2142_vm7 = vc.u32 %v2134_v10, %v2138_v16  ;;  %v6422_v48 = vmul.u32 52428, %v2160_v32  ;;  %v2288_v20 = vsel %vm6429_vm8, %v2278_v17, %v6384_v4  ;;  %v5260_v32 = vld [vmem:[#allocation8 + $0x170] sm:$0xff] }
 0x171   : > { %v1703_v18 = vpop.f32.mrf.mxu3  ;;  %v2123_v36 = vshrl.u32 %v2122_v31, 3  ;;  %v2141_v61 = vshrl.u32 %v6411_v5, 16  ;;  %vm2695_vm12 = vsmask.f32 4352  ;;  %3305 = vmatpush.bf16.msrb.mxu2 %v5260_v32  ;;  %vm6478_vm4 = vcmp.lt.s32.totalorder %v2288_v20, 8 }
 0x172   : > { %v1934_v58 = vmax.f32 %v1924_v51, 0.0  ;;  %v1725_v13 = vadd.f32 %v1703_v18, %v6224_v25  ;;  %v6434_v51 = vmul.u32 52429, %v2161_v7  ;;  %v2167_v49 = vshll.u32 %v6422_v48, 16 }
 0x173   : > { %2995 = vmatpush.bf16.msrb.mxu0 %v5233_v57  ;;  %v2124_v3 = vmul.u32 10, %v2123_v36 }
 0x174   : > { %v2325_v23 = vsel %vm6349_vm13, %v1934_v58, 0.0  ;;  %v1897_v25 = vadd.f32 %v6312_v44, %v1725_v13  ;;  %v2144_v44 = vadd.s32 %v2138_v16, %v2134_v10  ;;  %v1880_v18 = vpop.f32.mrf.mxu0  ;;  %v2166_v10 = vmul.u32 52428, %v2161_v7 }
 0x175   : > { %v5306_v63 = vpack.c.bf16 %v2325_v23, %v2324_v35  ;;  %v2143_v35 = vsel %vm2142_vm7, 1, %v5742_v15  ;;  %v6454_v57 = vsub.s32 %v6251_v27, %v2124_v3  ;;  %v2168_v23 = vshrl.u32 %v6422_v48, 16 }
 0x176   : > { %v1911_v54 = vmul.f32 %v6291_v14, %v1897_v25  ;;  %v2145_v43 = vadd.s32 %v2143_v35, %v2137_v47  ;;  %vm2146_vm10 = vc.u32 %v2144_v44, %v2140_v45  ;;  %v2169_v25 = vshll.u32 %v6434_v51, 16 }
 0x177   : > { %5373 = vst [vmem:[#allocation2 + $0x8] sm:$0xff] %v5306_v63   ;;  %v2147_v12 = vsel %vm2146_vm10, 1, %v5742_v15  ;;  %vm2171_vm13 = vc.u32 %v2163_v52, %v2167_v49  ;;  %v2173_v5 = vadd.s32 %v2167_v49, %v2163_v52  ;;  %vm2249_vm14 = vcmp.ne.s32.totalorder %v6454_v57, 0 }
 0x178   : > { %v1925_v55 = vadd.f32 %v6303_v24, %v1911_v54  ;;  %v2149_v60 = vadd.s32 %v2147_v12, %v2145_v43  ;;  %vm2259_vm15 = vcmp.lt.s32.totalorder %v6454_v57, 0  ;;  %v6466_v63 = vadd.s32 64, %v6074_v56 }
 0x179   : > { %v1705_v26 = vpop.f32.mrf.mxu3  ;;  %v2279_v47 = vadd.s32 10, %v6454_v57  ;;  %v2172_v54 = vsel %vm2171_vm13, 1, %v5742_v15  ;;  %vm6482_vm5 = vc.u32 %v2173_v5, %v2169_v25 }
 0x17a   : > { %v1935_v58 = vmax.f32 %v1925_v55, 0.0  ;;  %v1726_v13 = vadd.f32 %v1705_v26, %v6227_v0  ;;  %v5389_v0 = vld [vmem:[#allocation2 + $0x4] sm:$0x8]  ;;  %v2150_v40 = vadd.s32 %v2149_v60, %v2139_v50  ;;  %v2176_v22 = vsel %vm6482_vm5, 1, %v5742_v15  ;;  %v5247_v26 = vld [vmem:[#allocation8 + $0x130] sm:$0xff] }
 0x17c   : > { %v1898_v42 = vadd.f32 %v6387_v28, %v1726_v13  ;;  %v2326_v4 = vsel %vm6406_vm3, %v1935_v58, 0.0  ;;  %v2151_v30 = vadd.s32 %v2150_v40, %v2141_v61  ;;  %vm6474_vm3 = vmand %vm2259_vm15, %vm2249_vm14  ;;  %v1882_v13 = vpop.f32.mrf.mxu0 }
 0x17d   : > { %v2289_v61 = vsel %vm6474_vm3, %v2279_v47, %v6454_v57  ;;  %v2174_v57 = vadd.s32 %v2172_v54, %v2166_v10  ;;  %v5248_v10 = vld [vmem:[#allocation8 + $0x138] sm:$0xff] }
 0x17e   : > { %v1912_v7 = vmul.f32 %v6291_v14, %v1898_v42  ;;  %v6461_v28 = vld [vmem:[#allocation2 + $0x8] sm:$0xff]  ;;  %v2152_v59 = vshrl.u32 %v2151_v30, 3  ;;  %3107 = vmatpush.bf16.msrb.mxu1 %v5248_v10 }
 0x17f   : > { %v5428_v27 = vld [vmem:[#allocation2 + $0x4] sm:$0xf0]   ;;  %v2433_v31 = vrot.slane %v6461_v28, 3  ;;  %v2543_v45 = vshrl.u32 %v6461_v28, 16  ;;  %v2546_v21 = vshll.u32 %v6461_v28, 16 }
 0x180   : > { %v5390_v16 = vor.u32 %v5428_v27, %v5389_v0  ;;  %v1926_v17 = vadd.f32 %v6303_v24, %v1912_v7  ;;  %v2153_v42 = vmul.u32 10, %v2152_v59  ;;  %v5259_v7 = vld [vmem:[#allocation8 + $0x168] sm:$0xff]  ;;  %v2189_v27 = vand.u32 65535, %v6466_v63 }
 0x181   : > { %v1708_v44 = vpop.f32.mrf.mxu3  ;;  %v2434_v49 = vsel %vm2431_vm6, %v2432_v11, %v2433_v31  ;;  %v2545_v58 = vrot.slane %v2543_v45, 2  ;;  %v2548_v3 = vrot.slane %v2546_v21, 3  ;;  %v2704_v12 = vrot.slane %v2543_v45, 3  ;;  %3306 = vmatpush.bf16.msrb.mxu2 %v5259_v7 }
 0x182   : > { %v2883_v36 = vshrl.u32 %v5390_v16, 16  ;;  %v2886_v35 = vshll.u32 %v5390_v16, 16  ;;  %v1936_v43 = vmax.f32 %v1926_v17, 0.0  ;;  %v1727_v52 = vadd.f32 %v1708_v44, %v6261_v39  ;;  %2504 = vmatmul.bf16.vlgmr.msra.gmra.mxu1 %v2434_v49 }
 0x183   : > { %v2705_v20 = vrot.slane %v2546_v21, 4  ;;  %v6499_v0 = vor.u32 %v2548_v3, %v2545_v58  ;;  %v6507_v5 = vsub.s32 %v6391_v33, %v2153_v42  ;;  %v2170_v33 = vshrl.u32 %v6434_v51, 16  ;;  %3108 = vmatpush.bf16.msrb.mxu1 %v5247_v26 }
 0x184   : > { %v2327_v60 = vsel %vm6441_vm9, %v1936_v43, 0.0  ;;  %v1899_v39 = vadd.f32 %v1880_v18, %v1727_v52  ;;  %v6497_v32 = vrot.slane %v2883_v36, 3  ;;  %v6503_v25 = vrot.slane %v2886_v35, 4  ;;  %v5258_v43 = vld [vmem:[#allocation8 + $0x160] sm:$0xff]  ;;  %v1885_v52 = vpop.f32.mrf.mxu0 }
 0x185   : > { %v5311_v41 = vpack.c.bf16 %v2327_v60, %v2326_v4  ;;  %v6501_v11 = vor.u32 %v2705_v20, %v2704_v12  ;;  %v2550_v18 = vsel %vm2533_vm11, %v2541_v38, %v6499_v0  ;;  %vm2250_vm7 = vcmp.ne.s32.totalorder %v6507_v5, 0  ;;  %3307 = vmatpush.bf16.msrb.mxu2 %v5258_v43 }
 0x186   : > { %v1913_v40 = vmul.f32 %v6291_v14, %v1899_v39  ;;  %2648 = vmatmul.bf16.vlgmr.msra.gmra.mxu2 %v2550_v18  ;;  %vm2260_vm8 = vcmp.lt.s32.totalorder %v6507_v5, 0  ;;  %v6530_v8 = vadd.s32 10, %v6507_v5  ;;  %vm6532_vm9 = vcmp.lt.s32.totalorder %v2289_v61, 8 }
 0x187   : > { %5374 = vst [vmem:[#allocation2 + $0x10] sm:$0xff] %v5311_v41   ;;  %v2707_v4 = vsel %vm2695_vm12, %v2703_v29, %v6501_v11  ;;  %vm6536_vm10 = vmand %vm2260_vm8, %vm2250_vm7  ;;  %v2889_v46 = vor.u32 %v6503_v25, %v6497_v32  ;;  %v2178_v29 = vadd.s32 %v2176_v22, %v2174_v57  ;;  %v2190_v51 = vshrl.u32 %v6466_v63, 16 }
 0x188   : > { %v6525_v47 = vadd.f32 %v6303_v24, %v1913_v40  ;;  %2790 = vmatmul.bf16.vlgmr.msrb.gmra.mxu3 %v2707_v4  ;;  %v6543_v30 = vmul.u32 52428, %v2189_v27  ;;  %v2192_v17 = vmul.u32 52429, %v2189_v27  ;;  %v6548_v45 = vadd.s32 72, %v6074_v56  ;;  %v1389_v4 = vpop.f32.mrf.mxu1 }
 0x189   : > { %v1710_v62 = vpop.f32.mrf.mxu3  ;;  %v2290_v21 = vsel %vm6536_vm10, %v6530_v8, %v6507_v5  ;;  %v2179_v50 = vadd.s32 %v2178_v29, %v2168_v23  ;;  %v6556_v44 = vmul.u32 52429, %v2190_v51  ;;  %v2195_v59 = vmul.u32 52428, %v2190_v51  ;;  %v5273_v5 = vld [vmem:[#allocation8 + $0x1b8] sm:$0xff]  ;;  %v5245_v8 = vld [vmem:[#allocation8 + $0x120] sm:$0xff] }
 0x18a   : > { %v1937_v16 = vmax.f32 %v6525_v47, 0.0  ;;  %v1728_v54 = vadd.f32 %v1710_v62, %v6323_v37  ;;  %v2196_v56 = vshll.u32 %v6543_v30, 16  ;;  %v2197_v35 = vshrl.u32 %v6543_v30, 16  ;;  %3501 = vmatpush.bf16.msra.mxu3 %v5273_v5 }
 0x18b   : > { %v2180_v49 = vadd.s32 %v2179_v50, %v2170_v33  ;;  %v2198_v48 = vshll.u32 %v6556_v44, 16  ;;  %v2199_v23 = vshrl.u32 %v6556_v44, 16  ;;  %v2218_v58 = vand.u32 65535, %v6548_v45 }
 0x18c   : > { %v2328_v37 = vsel %vm6478_vm4, %v1937_v16, 0.0  ;;  %v1900_v36 = vadd.f32 %v1882_v13, %v1728_v54  ;;  %vm2200_vm13 = vc.u32 %v2192_v17, %v2196_v56  ;;  %v2202_v13 = vadd.s32 %v2196_v56, %v2192_v17 }
 0x18d   : > { %v2219_v61 = vshrl.u32 %v6548_v45, 16  ;;  %v2181_v60 = vshrl.u32 %v2180_v49, 3  ;;  %v2201_v39 = vsel %vm2200_vm13, 1, %v5742_v15  ;;  %v6572_v42 = vmul.u32 52429, %v2218_v58 }
 0x18e   : > { %v1914_v3 = vmul.f32 %v6291_v14, %v1900_v36  ;;  %v6568_v12 = vld [vmem:[#allocation2 + $0x10] sm:$0xff]  ;;  %v6574_v41 = vmul.u32 52428, %v2218_v58  ;;  %v2203_v62 = vadd.s32 %v2201_v39, %v2195_v59  ;;  %vm2204_vm14 = vc.u32 %v2202_v13, %v2198_v48 }
 0x18f   : > { %v5430_v20 = vld [vmem:[#allocation2 + $0xc] sm:$0xff]   ;;  %v2435_v57 = vrot.slane %v6568_v12, 3  ;;  %v2552_v22 = vshrl.u32 %v6568_v12, 16  ;;  %v2555_v18 = vshll.u32 %v6568_v12, 16  ;;  %v2182_v27 = vmul.u32 10, %v2181_v60  ;;  %v5246_v60 = vld [vmem:[#allocation8 + $0x128] sm:$0xff] }
 0x190   : > { %v6577_v40 = vadd.f32 %v6303_v24, %v1914_v3  ;;  %v2891_v10 = vshrl.u32 %v5430_v20, 16  ;;  %v2894_v7 = vshll.u32 %v5430_v20, 16  ;;  %v2205_v13 = vsel %vm2204_vm14, 1, %v5742_v15  ;;  %v5257_v39 = vld [vmem:[#allocation8 + $0x158] sm:$0xff]  ;;  %3109 = vmatpush.bf16.msrb.mxu1 %v5246_v60 }
 0x191   : > { %v1713_v33 = vpop.f32.mrf.mxu3  ;;  %v2436_v54 = vsel %vm2431_vm6, %v2433_v31, %v2435_v57  ;;  %v2554_v17 = vrot.slane %v2552_v22, 2  ;;  %v2557_v50 = vrot.slane %v2555_v18, 3  ;;  %v2708_v36 = vrot.slane %v2552_v22, 3  ;;  %3308 = vmatpush.bf16.msrb.mxu2 %v5257_v39 }
 0x192   : > { %v1938_v29 = vmax.f32 %v6577_v40, 0.0  ;;  %v1729_v51 = vadd.f32 %v1713_v33, %v6359_v9  ;;  %2509 = vmatmul.bf16.gmra.mxu1 %v2436_v54  ;;  %v2709_v56 = vrot.slane %v2555_v18, 4  ;;  %v2893_v26 = vrot.slane %v2891_v10, 3 }
 0x193   : > { %v2896_v49 = vrot.slane %v2894_v7, 4  ;;  %v6594_v9 = vsub.s32 %v6394_v53, %v2182_v27  ;;  %v6596_v28 = vor.u32 %v2557_v50, %v2554_v17  ;;  %v2207_v18 = vadd.s32 %v2205_v13, %v2203_v62  ;;  %v1391_v62 = vpop.f32.mrf.mxu1 }
 0x194   : > { %v2329_v59 = vsel %vm6532_vm9, %v1938_v29, 0.0  ;;  %v1901_v43 = vadd.f32 %v1885_v52, %v1729_v51  ;;  %v6598_v31 = vor.u32 %v2709_v56, %v2708_v36  ;;  %v1887_v52 = vpop.f32.mrf.mxu0  ;;  %v6621_v33 = vmul.u32 52429, %v2219_v61  ;;  %3110 = vmatpush.bf16.msrb.mxu1 %v5245_v8 }
 0x195   : > { %v5316_v58 = vpack.c.bf16 %v2329_v59, %v2328_v37  ;;  %v6601_v20 = vor.u32 %v2896_v49, %v2893_v26  ;;  %vm2251_vm15 = vcmp.ne.s32.totalorder %v6594_v9, 0  ;;  %vm2261_vm3 = vcmp.lt.s32.totalorder %v6594_v9, 0 }
 0x196   : > { %v1915_v3 = vmul.f32 %v6291_v14, %v1901_v43  ;;  %v2559_v53 = vsel %vm2533_vm11, %v6499_v0, %v6596_v28  ;;  %v2711_v37 = vsel %vm2695_vm12, %v6501_v11, %v6598_v31  ;;  %v2281_v48 = vadd.s32 10, %v6594_v9  ;;  %vm6629_vm5 = vmand %vm2261_vm3, %vm2251_vm15 }
 0x197   : > { %5375 = vst [vmem:[#allocation2 + $0x18] sm:$0xff] %v5316_v58   ;;  %2653 = vmatmul.bf16.gmra.mxu2 %v2559_v53  ;;  %v2898_v0 = vsel %vm2695_vm12, %v2889_v46, %v6601_v20  ;;  %v1206_v11 = vadd.f32 %v6128_v34, %v6285_v19  ;;  %v2224_v27 = vmul.u32 52428, %v2219_v61  ;;  %v2225_v32 = vshll.u32 %v6574_v41, 16  ;;  %v1554_v46 = vpop.f32.mrf.mxu2 }
 0x198   : > { %v6614_v22 = vadd.f32 %v6303_v24, %v1915_v3  ;;  %2795 = vmatmul.bf16.gmra.mxu3 %v2711_v37  ;;  %2996 = vmatmul.bf16.vlgmr.msrb.gmra.mxu0 %v2898_v0  ;;  %v1402_v25 = vadd.f32 %v1389_v4, %v6200_v1  ;;  %vm6640_vm7 = vcmp.lt.s32.totalorder %v2290_v21, 8  ;;  %v2208_v61 = vadd.s32 %v2207_v18, %v2197_v35  ;;  %v5256_v21 = vld [vmem:[#allocation8 + $0x150] sm:$0xff]  ;;  %v5271_v0 = vld [vmem:[#allocation8 + $0x1a8] sm:$0xff] }
 0x199   : > { %v1715_v10 = vpop.f32.mrf.mxu3  ;;  %v2227_v1 = vshll.u32 %v6621_v33, 16  ;;  %vm2229_vm8 = vc.u32 %v6572_v42, %v2225_v32  ;;  %v2231_v38 = vadd.s32 %v2225_v32, %v6572_v42  ;;  %v2226_v17 = vshrl.u32 %v6574_v41, 16  ;;  %v5272_v42 = vld [vmem:[#allocation8 + $0x1b0] sm:$0xff]  ;;  %3309 = vmatpush.bf16.msrb.mxu2 %v5256_v21 }
 0x19a   : > { %v1730_v19 = vadd.f32 %v1715_v10, %v6380_v6  ;;  %v1939_v51 = vmax.f32 %v6614_v22, 0.0  ;;  %v2291_v6 = vsel %vm6629_vm5, %v2281_v48, %v6594_v9  ;;  %v2209_v30 = vadd.s32 %v2208_v61, %v2199_v23  ;;  %3502 = vmatpush.bf16.msra.mxu3 %v5272_v42 }
 0x19b   : > { %v2230_v35 = vsel %vm2229_vm8, 1, %v5742_v15  ;;  %v1567_v54 = vadd.f32 %v1554_v46, %v1402_v25  ;;  %vm2233_vm10 = vc.u32 %v2231_v38, %v2227_v1  ;;  %v1403_v36 = vadd.f32 %v1391_v62, %v1206_v11 }
 0x19c   : > { %v1902_v4 = vadd.f32 %v1887_v52, %v1730_v19  ;;  %v2232_v50 = vadd.s32 %v2230_v35, %v2224_v27  ;;  %v2210_v26 = vshrl.u32 %v2209_v30, 3  ;;  %v2234_v44 = vsel %vm2233_vm10, 1, %v5742_v15  ;;  %v1890_v53 = vpop.f32.mrf.mxu0  ;;  %v5270_v30 = vld [vmem:[#allocation8 + $0x1a0] sm:$0xff] }
 0x19d   : > { %v2330_v23 = vsel %vm6640_vm7, %v1939_v51, 0.0  ;;  %vm6666_vm13 = vcmp.lt.s32.totalorder %v2291_v6, 8  ;;  %v2228_v49 = vshrl.u32 %v6621_v33, 16  ;;  %v5255_v6 = vld [vmem:[#allocation8 + $0x148] sm:$0xff] }
 0x19e   : > { %v1916_v56 = vmul.f32 %v6291_v14, %v1902_v4  ;;  %v6659_v59 = vld [vmem:[#allocation2 + $0x18] sm:$0xff]  ;;  %v2236_v9 = vadd.s32 %v2234_v44, %v2232_v50  ;;  %v2211_v3 = vmul.u32 10, %v2210_v26  ;;  %3503 = vmatpush.bf16.msra.mxu3 %v5271_v0  ;;  %v5244_v4 = vld [vmem:[#allocation8 + $0x118] sm:$0xff]  ;;  %3310 = vmatpush.bf16.msrb.mxu2 %v5255_v6  ;;  %v5242_v0 = vld [vmem:[#allocation8 + $0x108] sm:$0xff] }
 0x19f   : > { %v5432_v43 = vld [vmem:[#allocation2 + $0x14] sm:$0xff]   ;;  %v2437_v52 = vrot.slane %v6659_v59, 3  ;;  %v2561_v15 = vshrl.u32 %v6659_v59, 16  ;;  %v2564_v48 = vshll.u32 %v6659_v59, 16  ;;  %3111 = vmatpush.bf16.msrb.mxu1 %v5244_v4  ;;  %v5267_v4 = vld [vmem:[#allocation8 + $0x188] sm:$0xff] }
 0x1a0   : > { %v6672_v58 = vadd.f32 %v6303_v24, %v1916_v56  ;;  %v2900_v13 = vshrl.u32 %v5432_v43, 16  ;;  %v2903_v60 = vshll.u32 %v5432_v43, 16  ;;  %v2237_v39 = vadd.s32 %v2236_v9, %v2226_v17 }
 0x1a1   : > { %v1718_v37 = vpop.f32.mrf.mxu3  ;;  %v2212_v11 = vsub.s32 %v6466_v63, %v2211_v3  ;;  %v2438_v10 = vsel %vm2431_vm6, %v2435_v57, %v2437_v52  ;;  %v2563_v7 = vrot.slane %v2561_v15, 2  ;;  %v2566_v27 = vrot.slane %v2564_v48, 3  ;;  %v1556_v63 = vpop.f32.mrf.mxu2  ;;  %v5243_v3 = vld [vmem:[#allocation8 + $0x110] sm:$0xff] }
 0x1a2   : > { %v1940_v18 = vmax.f32 %v6672_v58, 0.0  ;;  %v1731_v33 = vadd.f32 %v1718_v37, %v1567_v54  ;;  %2514 = vmatmul.bf16.gmra.mxu1 %v2438_v10  ;;  %v2712_v32 = vrot.slane %v2561_v15, 3  ;;  %v2713_v25 = vrot.slane %v2564_v48, 4  ;;  %3504 = vmatpush.bf16.msra.mxu3 %v5270_v30  ;;  %v5269_v15 = vld [vmem:[#allocation8 + $0x198] sm:$0xff] }
 0x1a3   : > { %vm2252_vm14 = vcmp.ne.s32.totalorder %v2212_v11, 0  ;;  %vm2262_vm15 = vcmp.lt.s32.totalorder %v2212_v11, 0  ;;  %v2282_v12 = vadd.s32 10, %v2212_v11  ;;  %v6692_v57 = vor.u32 %v2566_v27, %v2563_v7  ;;  %3112 = vmatpush.bf16.msrb.mxu1 %v5243_v3  ;;  %v5268_v27 = vld [vmem:[#allocation8 + $0x190] sm:$0xff]  ;;  %v3358_v58 = vld [vmem:[#allocation2 + $0x34] sm:$0x1] }
 0x1a4   : > { %v2331_v46 = vsel %vm6666_vm13, %v1940_v18, 0.0  ;;  %v1903_v19 = vadd.f32 %v1890_v53, %v1731_v33  ;;  %vm6688_vm3 = vmand %vm2262_vm15, %vm2252_vm14  ;;  %v6694_v1 = vor.u32 %v2713_v25, %v2712_v32  ;;  %v2902_v5 = vrot.slane %v2900_v13, 3  ;;  %v1892_v9 = vpop.f32.mrf.mxu0  ;;  %v5280_v13 = vld [vmem:[#allocation8 + $0x1f0] sm:$0xff] }
 0x1a5   : > { %v5321_v61 = vpack.c.bf16 %v2331_v46, %v2330_v23  ;;  %v2905_v8 = vrot.slane %v2903_v60, 4  ;;  %v2238_v21 = vadd.s32 %v2237_v39, %v2228_v49  ;;  %v2292_v35 = vsel %vm6688_vm3, %v2282_v12, %v2212_v11  ;;  %v5281_v49 = vld [vmem:[#allocation8 + $0x1f8] sm:$0xff]  ;;  %v5254_v60 = vld [vmem:[#allocation8 + $0x140] sm:$0xff] }
 0x1a6   : > { %v1917_v38 = vmul.f32 %v6291_v14, %v1903_v19  ;;  %v2568_v54 = vsel %vm2533_vm11, %v6596_v28, %v6692_v57  ;;  %v2715_v17 = vsel %vm2695_vm12, %v6598_v31, %v6694_v1  ;;  %v1568_v50 = vadd.f32 %v1556_v63, %v1403_v36  ;;  %3630 = vmatpush.bf16.msra.mxu0 %v5281_v49  ;;  %v5718_v39 = vld [vmem:[#allocation2 + $0xc] sm:$0xf0]  ;;  %v5719_v19 = vld [vmem:[#allocation2 + $0xc] sm:$0xe] }
 0x1a7   : > { %5376 = vst [vmem:[#allocation2 + $0x20] sm:$0xff] %v5321_v61   ;;  %2658 = vmatmul.bf16.gmra.mxu2 %v2568_v54  ;;  %v6708_v56 = vor.u32 %v2905_v8, %v2902_v5  ;;  %v2239_v26 = vshrl.u32 %v2238_v21, 3  ;;  %vm6710_vm5 = vcmp.lt.s32.totalorder %v2292_v35, 8  ;;  %3505 = vmatpush.bf16.msra.mxu3 %v5269_v15 }
 0x1a8   : > { %v6706_v42 = vadd.f32 %v6303_v24, %v1917_v38  ;;  %2800 = vmatmul.bf16.gmra.mxu3 %v2715_v17  ;;  %3311 = vmatpush.bf16.msrb.mxu2 %v5254_v60  ;;  %v5241_v38 = vld [vmem:[#allocation8 + $0x100] sm:$0xff] }
 0x1a9   : > { %v1720_v44 = vpop.f32.mrf.mxu3  ;;  %v2907_v31 = vsel %vm2695_vm12, %v6601_v20, %v6708_v56  ;;  %v2240_v23 = vmul.u32 10, %v2239_v26  ;;  %v6723_v20 = vld [vmem:[#allocation2 + $0xc] sm:$0xff]   ;;  %3113 = vmatpush.bf16.msrb.mxu1 %v5242_v0 }
 0x1aa   : > { %v1941_v28 = vmax.f32 %v6706_v42, 0.0  ;;  %v1732_v36 = vadd.f32 %v1720_v44, %v1568_v50  ;;  %3001 = vmatmul.bf16.gmra.mxu0 %v2907_v31  ;;  %v6748_v50 = vld [vmem:[#allocation2 + $0x14] sm:$0xff] }
 0x1ab   : > { %v2241_v48 = vsub.s32 %v6548_v45, %v2240_v23  ;;  %3631 = vmatpush.bf16.msra.mxu0 %v5280_v13  ;;  %3506 = vmatpush.bf16.msra.mxu3 %v5268_v27  ;;  %v5278_v31 = vld [vmem:[#allocation8 + $0x1e0] sm:$0xff]  ;;  %v6756_v23 = vor.u32 %v5719_v19, %v5718_v39  ;;  %v3412_v15 = vshll.u32 %v6748_v50, 16  ;;  %v5301_v39 = vld [vmem:[#allocation9 + $0x30] sm:$0xff] }
 0x1ac   : > { %v2332_v53 = vsel %vm6710_vm5, %v1941_v28, 0.0  ;;  %v1904_v37 = vadd.f32 %v1892_v9, %v1732_v36  ;;  %v5266_v36 = vld [vmem:[#allocation8 + $0x180] sm:$0xff] }
 0x1ad   : > { %vm2253_vm8 = vcmp.ne.s32.totalorder %v2241_v48, 0  ;;  %vm2263_vm10 = vcmp.lt.s32.totalorder %v2241_v48, 0  ;;  %v2283_v11 = vadd.s32 10, %v2241_v48  ;;  %3114 = vmatpush.bf16.msrb.mxu1 %v5241_v38  ;;  %v3699_v60 = vshll.u32 %v6756_v23, 16  ;;  %v5275_v38 = vld [vmem:[#allocation8 + $0x1c8] sm:$0xff] }
 0x1ae   : > { %v1918_v33 = vmul.f32 %v6291_v14, %v1904_v37  ;;  %v6726_v10 = vld [vmem:[#allocation2 + $0x20] sm:$0xff]  ;;  %vm2273_vm14 = vmand %vm2263_vm10, %vm2253_vm8  ;;  %v5277_v37 = vld [vmem:[#allocation8 + $0x1d8] sm:$0xff] }
 0x1af   : > { %v5434_v7 = vld [vmem:[#allocation2 + $0x1c] sm:$0xff]   ;;  %v2293_v32 = vsel %vm2273_vm14, %v2283_v11, %v2241_v48  ;;  %v2439_v25 = vrot.slane %v6726_v10, 3  ;;  %v2570_v46 = vshrl.u32 %v6726_v10, 16  ;;  %v2573_v61 = vshll.u32 %v6726_v10, 16  ;;  %3507 = vmatpush.bf16.msra.mxu3 %v5267_v4 }
 0x1b0   : > { %v6729_v45 = vadd.f32 %v6303_v24, %v1918_v33  ;;  %v5279_v14 = vld [vmem:[#allocation8 + $0x1e8] sm:$0xff]  ;;  %vm6733_vm15 = vcmp.lt.s32.totalorder %v2293_v32, 8  ;;  %v2909_v62 = vshrl.u32 %v5434_v7, 16  ;;  %v2912_v12 = vshll.u32 %v5434_v7, 16 }
 0x1b1   : > { %v2440_v5 = vsel %vm2431_vm6, %v2437_v52, %v2439_v25  ;;  %v2572_v8 = vrot.slane %v2570_v46, 2  ;;  %v2716_v21 = vrot.slane %v2570_v46, 3  ;;  %v2575_v6 = vrot.slane %v2573_v61, 3  ;;  %3632 = vmatpush.bf16.msra.mxu0 %v5279_v14 }
 0x1b2   : > { %v1942_v24 = vmax.f32 %v6729_v45, 0.0  ;;  %2519 = vmatmul.bf16.gmra.mxu1 %v2440_v5  ;;  %v2717_v30 = vrot.slane %v2573_v61, 4  ;;  %v2911_v35 = vrot.slane %v2909_v62, 3  ;;  %v2914_v54 = vrot.slane %v2912_v12, 4 }
 0x1b3   : > { %v6752_v52 = vor.u32 %v2575_v6, %v2572_v8  ;;  %3508 = vmatpush.bf16.msra.mxu3 %v5266_v36  ;;  %v3696_v48 = vshrl.u32 %v6756_v23, 16  ;;  %v3701_v61 = vrot.slane %v3699_v60, 2 }
 0x1b4   : > { %v2333_v17 = vsel %vm6733_vm15, %v1942_v24, 0.0  ;;  %v6754_v26 = vor.u32 %v2717_v30, %v2716_v21  ;;  %v2915_v44 = vor.u32 %v2914_v54, %v2911_v35 }
 0x1b5   : > { %v6750_v59 = vpack.c.bf16 %v2333_v17, %v2332_v53  ;;  %v2577_v49 = vsel %vm2533_vm11, %v6692_v57, %v6752_v52  ;;  %v3416_v53 = vshrl.u32 %v6748_v50, 16  ;;  %3633 = vmatpush.bf16.msra.mxu0 %v5278_v31  ;;  %v5302_v57 = vld [vmem:[#allocation9 + $0x38] sm:$0xff]  ;;  %v3698_v7 = vrot.slane %v3696_v48, 1 }
 0x1b6   : > { %v2719_v9 = vsel %vm2695_vm12, %v6694_v1, %v6754_v26  ;;  %v2916_v3 = vsel %vm2695_vm12, %v6708_v56, %v2915_v44  ;;  %v3704_v1 = vrot.slane %v3412_v15, 2  ;;  %3957 = vmatpush.bf16.msra.mxu2 %v5302_v57  ;;  %v5276_v56 = vld [vmem:[#allocation8 + $0x1d0] sm:$0xff] }
 0x1b7   : > { %5377 = vst [vmem:[#allocation2 + $0x28] sm:$0xff] %v6750_v59   ;;  %2663 = vmatmul.bf16.gmra.mxu2 %v2577_v49  ;;  %v3703_v13 = vrot.slane %v3416_v53, 1  ;;  %v3702_v21 = vor.u32 %v3701_v61, %v3698_v7  ;;  %v5347_v60 = vunpack.c.h.b16 %v6750_v59  ;;  %v5378_v61 = vld [vmem:[#allocation2 + $0x8] sm:$0xff]  }
 0x1b8   : > { %2805 = vmatmul.bf16.gmra.mxu3 %v2719_v9 }
 0x1b9   : > { %3634 = vmatpush.bf16.msra.mxu0 %v5277_v37  ;;  %v6775_v19 = vor.u32 %v3704_v1, %v3703_v13  ;;  %v5274_v37 = vld [vmem:[#allocation8 + $0x1c0] sm:$0xff] }
 0x1ba   : > { %3006 = vmatmul.bf16.gmra.mxu0 %v2916_v3  ;;  %3958 = vmatpush.bf16.msra.mxu2 %v5301_v39  ;;  %v5289_v39 = vld [vmem:[#allocation8 + $0x238] sm:$0xff] }
 0x1bb   : > { %v6779_v31 = vsel %vm1754_vm2, %v3702_v21, %v6775_v19  ;;  %5419 = vmatpush.bf16.msra.mxu1 %v5289_v39 }
 0x1bd   : > { %3635 = vmatpush.bf16.msra.mxu0 %v5276_v56 }
 0x1be   : > { %v2368_v0 = vld [vmem:[#allocation2 + $0x28] sm:$0x7] }
 0x1bf   : > { %v5435_v33 = vld [vmem:[#allocation2 + $0x24] sm:$0xff]   ;;  %v2424_v27 = vunpack.c.l.b16 %v2368_v0 }
 0x1c0   : > { %v2674_v11 = vld [vmem:[#allocation2 + $0x28] sm:$0xf]  ;;  %v2918_v46 = vshrl.u32 %v5435_v33, 16  ;;  %v2921_v14 = vshll.u32 %v5435_v33, 16  ;;  %v5300_v0 = vld [vmem:[#allocation9 + $0x28] sm:$0xff]  ;;  %v2881_v33 = vpack.c.b16 %v5347_v60, %v5347_v60 }
 0x1c1   : > { %v2693_v32 = vunpack.c.l.b16 %v2674_v11  ;;  %v2430_v62 = vpack.c.b16 %v2424_v27, %v2424_v27  ;;  %3636 = vmatpush.bf16.msra.mxu0 %v5275_v38  ;;  %v5250_v11 = vld [vmem:[#allocation2 + $0x10] sm:$0xff]  ;;  %3959 = vmatpush.bf16.msra.mxu2 %v5300_v0  ;;  %v3405_v38 = vshrl.u32 %v6723_v20, 16  ;;  %v5253_v40 = vld [vmem:[#allocation2 + $0x28] sm:$0xff] }
 0x1c2   : > { %v2920_v5 = vrot.slane %v2918_v46, 3  ;;  %v2923_v8 = vrot.slane %v2921_v14, 4  ;;  %v2927_v59 = vshrl.u32 %v2881_v33, 16  ;;  %v2930_v7 = vshll.u32 %v2881_v33, 16  ;;  %v5252_v33 = vld [vmem:[#allocation2 + $0x20] sm:$0xff] }
 0x1c3   : > { %v2694_v12 = vpack.c.b16 %v2693_v32, %v2693_v32  ;;  %v2441_v4 = vrot.slane %v2430_v62, 3  ;;  %v2579_v6 = vshrl.u32 %v2430_v62, 16  ;;  %v2582_v30 = vshll.u32 %v2430_v62, 16 }
 0x1c4   : > { %v2924_v54 = vor.u32 %v2923_v8, %v2920_v5  ;;  %v3215_v27 = vshll.u32 %v5250_v11, 16  ;;  %v2929_v46 = vrot.slane %v2927_v59, 3  ;;  %v2932_v14 = vrot.slane %v2930_v7, 4  ;;  %v5297_v59 = vld [vmem:[#allocation9 + $0x10] sm:$0xff] }
 0x1c5   : > { %v2721_v35 = vshrl.u32 %v2694_v12, 16  ;;  %v2724_v17 = vshll.u32 %v2694_v12, 16  ;;  %v2442_v36 = vsel %vm2431_vm6, %v2439_v25, %v2441_v4  ;;  %v2581_v49 = vrot.slane %v2579_v6, 2  ;;  %3637 = vmatpush.bf16.msra.mxu0 %v5274_v37  ;;  %v5249_v25 = vld [vmem:[#allocation2 + $0x8] sm:$0xff]  ;;  %vm5529_vm6 = vmpackc.low %vm6532_vm9, %vm6478_vm4 }
 0x1c6   : > { %v2584_v9 = vrot.slane %v2582_v30, 3  ;;  %2524 = vmatmul.bf16.gmra.mxu1 %v2442_v36  ;;  %v2925_v13 = vsel %vm2695_vm12, %v2915_v44, %v2924_v54  ;;  %v3210_v44 = vshll.u32 %v5249_v25, 16  ;;  %v3208_v62 = vshrl.u32 %v5249_v25, 16  ;;  %v5299_v36 = vld [vmem:[#allocation9 + $0x20] sm:$0xff] }
 0x1c7   : > { %v2723_v3 = vrot.slane %v2721_v35, 3  ;;  %v2726_v48 = vrot.slane %v2724_v17, 4  ;;  %v3217_v12 = vrot.slane %v3215_v27, 1  ;;  %v3414_v5 = vrot.slane %v3412_v15, 1  ;;  %v5288_v17 = vld [vmem:[#allocation8 + $0x230] sm:$0xff]  ;;  %3960 = vmatpush.bf16.msra.mxu2 %v5299_v36  ;;  %v5287_v15 = vld [vmem:[#allocation8 + $0x228] sm:$0xff] }
 0x1c8   : > { %v2585_v57 = vor.u32 %v2584_v9, %v2581_v49  ;;  %v3212_v32 = vrot.slane %v3210_v44, 1  ;;  %v2933_v21 = vor.u32 %v2932_v14, %v2929_v46  ;;  %v5251_v49 = vld [vmem:[#allocation2 + $0x18] sm:$0xff]  ;;  %5420 = vmatpush.bf16.msra.mxu1 %v5288_v17  ;;  %v5298_v9 = vld [vmem:[#allocation9 + $0x18] sm:$0xff] }
 0x1c9   : > { %v2727_v1 = vor.u32 %v2726_v48, %v2723_v3  ;;  %3781 = vmatpush.bf16.msrb.mxu0 %v5289_v39  ;;  %v3223_v3 = vshll.u32 %v5251_v49, 16  ;;  %v3219_v48 = vshrl.u32 %v5250_v11, 16  ;;  %v6809_v11 = vld [vmem:[#allocation2 + $0x24] sm:$0xff]  ;;  %v5286_v44 = vld [vmem:[#allocation8 + $0x220] sm:$0xff] }
 0x1ca   : > { %v2586_v56 = vsel %vm2533_vm11, %v6752_v52, %v2585_v57  ;;  %3011 = vmatmul.bf16.gmra.mxu0 %v2925_v13  ;;  %v3407_v52 = vshll.u32 %v6723_v20, 16  ;;  %v3213_v8 = vor.u32 %v3212_v32, %v3208_v62  ;;  %v2934_v30 = vsel %vm2695_vm12, %v2924_v54, %v2933_v21  ;;  %v6797_v20 = vld [vmem:[#allocation2 + $0x1c] sm:$0xff]  ;;  %v5379_v54 = vld [vmem:[#allocation2 + $0x10] sm:$0xff]   ;;  %vm5532_vm11 = vmpackc.low %vm6666_vm13, %vm6640_vm7 }
 0x1cb   : > { %2668 = vmatmul.bf16.gmra.mxu2 %v2586_v56  ;;  %v2728_v10 = vsel %vm2695_vm12, %v6754_v26, %v2727_v1  ;;  %v3420_v37 = vshll.u32 %v6797_v20, 16  ;;  %v3225_v57 = vrot.slane %v3223_v3, 1  ;;  %v3567_v13 = vrot.slane %v6748_v50, 1  ;;  %v5295_v62 = vld [vmem:[#allocation9] sm:$0xff]  ;;  %vm5535_vm12 = vmpackc.low %vm6733_vm15, %vm6710_vm5 }
 0x1cc   : > { %2810 = vmatmul.bf16.gmra.mxu3 %v2728_v10  ;;  %v3409_v26 = vrot.slane %v3407_v52, 1  ;;  %v3218_v6 = vsel %vm765_vm0, %v3213_v8, %v3217_v12  ;;  %5421 = vmatpush.bf16.msra.mxu1 %v5287_v15  ;;  %v3221_v60 = vor.u32 %v3219_v48, %v3217_v12  ;;  %v3566_v56 = vrot.slane %v6756_v23, 1 }
 0x1cd   : > { %3782 = vmatpush.bf16.msrb.mxu0 %v5288_v17  ;;  %3961 = vmatpush.bf16.msra.mxu2 %v5298_v9  ;;  %v3422_v1 = vrot.slane %v3420_v37, 1  ;;  %v3418_v10 = vor.u32 %v3416_v53, %v3414_v5  ;;  %v3231_v23 = vshll.u32 %v5252_v33, 16  ;;  %v3428_v50 = vshll.u32 %v6809_v11, 16 }
 0x1ce   : > { %v3410_v4 = vor.u32 %v3409_v26, %v3405_v38  ;;  %v3226_v25 = vsel %vm765_vm0, %v3221_v60, %v3225_v57  ;;  %v3568_v39 = vsel %vm1460_vm1, %v3566_v56, %v3567_v13  ;;  %v3227_v53 = vshrl.u32 %v5251_v49, 16  ;;  %v5285_v26 = vld [vmem:[#allocation8 + $0x218] sm:$0xff] }
 0x1cf   : > { %v3423_v0 = vsel %vm765_vm0, %v3418_v10, %v3422_v1  ;;  %v3233_v7 = vrot.slane %v3231_v23, 1  ;;  %v5530_v52 = vpack.c.bf16 %v1938_v29, %v1937_v16  ;;  %v3569_v27 = vrot.slane %v6797_v20, 1  ;;  %v5284_v29 = vld [vmem:[#allocation8 + $0x210] sm:$0xff]  ;;  %v3161_v49 = vld [vmem:[#allocation2 + $0x30] sm:$0x1] }
 0x1d0   : > { %v3415_v35 = vsel %vm765_vm0, %v3410_v4, %v3414_v5  ;;  %5422 = vmatpush.bf16.msra.mxu1 %v5286_v44  ;;  %v3424_v32 = vshrl.u32 %v6797_v20, 16  ;;  %v3430_v46 = vrot.slane %v3428_v50, 1  ;;  %v3229_v14 = vor.u32 %v3227_v53, %v3225_v57  ;;  %v6829_v38 = vld [vmem:[#allocation2 + $0x2c] sm:$0xff]  ;;  %v5283_v5 = vld [vmem:[#allocation8 + $0x208] sm:$0xff] }
 0x1d1   : > { %3783 = vmatpush.bf16.msrb.mxu0 %v5287_v15  ;;  %3962 = vmatpush.bf16.msra.mxu2 %v5297_v59  ;;  %v3570_v47 = vsel %vm1460_vm1, %v3567_v13, %v3569_v27  ;;  %v3239_v8 = vshll.u32 %v5253_v40, 16  ;;  %v3432_v21 = vshrl.u32 %v6809_v11, 16  ;;  %v3436_v4 = vshll.u32 %v6829_v38, 16  ;;  %v5282_v15 = vld [vmem:[#allocation8 + $0x200] sm:$0xff] }
 0x1d2   : > { %v3426_v55 = vor.u32 %v3424_v32, %v3422_v1  ;;  %v3234_v2 = vsel %vm765_vm0, %v3229_v14, %v3233_v7  ;;  %v3571_v17 = vrot.slane %v6809_v11, 1  ;;  %v3200_v41 = vunpack.c.l.b16 %v3161_v49  ;;  %v5290_v49 = vld [vmem:[%s5925_s29 + $0x90] sm:$0xff] }
 0x1d3   : > { %v3434_v36 = vor.u32 %v3432_v21, %v3430_v46  ;;  %v3438_v34 = vrot.slane %v3436_v4, 1  ;;  %v3397_v13 = vunpack.c.l.b16 %v3358_v58  ;;  %v3440_v23 = vshrl.u32 %v6829_v38, 16 }
 0x1d4   : > { %5423 = vmatpush.bf16.msra.mxu1 %v5285_v26  ;;  %v3431_v16 = vsel %vm765_vm0, %v3426_v55, %v3430_v46  ;;  %v3206_v1 = vpack.c.b16 %v3200_v41, %v3200_v41  ;;  %v5536_v46 = vpack.c.bf16 %v1942_v24, %v1941_v28  ;;  %v3573_v14 = vrot.slane %v6829_v38, 1 }
 0x1d5   : > { %3784 = vmatpush.bf16.msrb.mxu0 %v5286_v44  ;;  %v3403_v10 = vpack.c.b16 %v3397_v13, %v3397_v13  ;;  %v3243_v44 = vshrl.u32 %v5253_v40, 16 }
 0x1d6   : > { %3115 = vmatmul.bf16.vlgmr.msrb.gmra.mxu1 %v5378_v61  ;;  %v5296_v61 = vld [vmem:[#allocation9 + $0x8] sm:$0xff]  ;;  %v3574_v63 = vsel %vm1460_vm1, %v3571_v17, %v3573_v14 }
 0x1d7   : > { %3963 = vmatpush.bf16.msra.mxu2 %v5296_v61 }
 0x1d8   : > { %5424 = vmatpush.bf16.msra.mxu1 %v5284_v29 }
 0x1d9   : > { %3785 = vmatpush.bf16.msrb.mxu0 %v5285_v26  ;;  %v3442_v26 = vor.u32 %v3440_v23, %v3438_v34 }
 0x1da   : > { %3016 = vmatmul.bf16.gmra.mxu0 %v2934_v30  ;;  %v3241_v30 = vrot.slane %v3239_v8, 1 }
 0x1db   : > { %3312 = vmatmul.bf16.vlgmr.msrb.gmra.mxu2 %v3218_v6  ;;  %v3235_v6 = vshrl.u32 %v5252_v33, 16 }
 0x1dc   : > { %3509 = vmatmul.bf16.vlgmr.msra.gmra.mxu3 %v3415_v35  ;;  %3964 = vmatpush.bf16.msra.mxu2 %v5295_v62  ;;  %v5533_v35 = vpack.c.bf16 %v1940_v18, %v1939_v51  ;;  %v3572_v51 = vsel %vm1460_vm1, %v3569_v27, %v3571_v17  ;;  %v3439_v18 = vsel %vm765_vm0, %v3434_v36, %v3438_v34  ;;  %v3575_v36 = vrot.slane %v3403_v10, 1 }
 0x1dd   : > { %3786 = vmatpush.bf16.msrb.mxu0 %v5284_v29  ;;  %5425 = vmatpush.bf16.msra.mxu1 %v5283_v5  ;;  %v3237_v9 = vor.u32 %v3235_v6, %v3233_v7  ;;  %v3245_v53 = vor.u32 %v3243_v44, %v3241_v30 }
 0x1df   : > { %v3242_v22 = vsel %vm765_vm0, %v3237_v9, %v3241_v30 }
 0x1e1   : > { %3787 = vmatpush.bf16.msrb.mxu0 %v5283_v5  ;;  %5426 = vmatpush.bf16.msra.mxu1 %v5282_v15 }
 0x1e5   : > { %3788 = vmatpush.bf16.msrb.mxu0 %v5282_v15 }
 0x1e6   : > { %3120 = vmatmul.bf16.gmra.mxu1 %v5379_v54 }
 0x1ea   : > { %3638 = vmatmul.bf16.vlgmr.msra.gmra.mxu0 %v3568_v39  ;;  %v3444_v39 = vshll.u32 %v3403_v10, 16 }
 0x1eb   : > { %3317 = vmatmul.bf16.gmra.mxu2 %v3226_v25  ;;  %v3247_v25 = vshll.u32 %v3206_v1, 16 }
 0x1ec   : > { %3514 = vmatmul.bf16.gmra.mxu3 %v3423_v0  ;;  %v3446_v61 = vrot.slane %v3444_v39, 1 }
 0x1ed   : > { %v3249_v7 = vrot.slane %v3247_v25, 1 }
 0x1ee   : > { %v3447_v42 = vsel %vm765_vm0, %v3442_v26, %v3446_v61 }
 0x1ef   : > { %v3250_v43 = vsel %vm765_vm0, %v3245_v53, %v3249_v7 }
 0x1f6   : > { %5531 = vmatmul.msk.bf16.gmra.mxu1 %vm5529_vm6, %v5530_v52 }
 0x1fa   : > { %3643 = vmatmul.bf16.gmra.mxu0 %v3570_v47  ;;  %v3708_v47 = vrot.slane %v3420_v37, 2 }
 0x1fb   : > { %3322 = vmatmul.bf16.gmra.mxu2 %v3234_v2 }
 0x1fc   : > { %3519 = vmatmul.bf16.gmra.mxu3 %v3431_v16  ;;  %v3707_v16 = vrot.slane %v3424_v32, 1  ;;  %v3576_v32 = vsel %vm1460_vm1, %v3573_v14, %v3575_v36 }
 0x1fe   : > { %v3709_v5 = vor.u32 %v3708_v47, %v3707_v16 }
 0x1ff   : > { %v2505_v12 = vpop.f32.mrf.mxu1 }
 0x206   : > { %5534 = vmatmul.msk.bf16.gmra.mxu1 %vm5532_vm11, %v5533_v35  ;;  %v3710_v35 = vsel %vm1754_vm2, %v6775_v19, %v3709_v5  ;;  %v3712_v19 = vrot.slane %v3428_v50, 2 }
 0x207   : > { %v2507_v3 = vpop.f32.mrf.mxu1 }
 0x209   : > { %v2649_v54 = vpop.f32.mrf.mxu2 }
 0x20a   : > { %3648 = vmatmul.bf16.gmra.mxu0 %v3572_v51  ;;  %v2650_v57 = vadd.f32 %v2649_v54, %v2505_v12 }
 0x20b   : > { %3327 = vmatmul.bf16.gmra.mxu2 %v3242_v22  ;;  %v2791_v48 = vpop.f32.mrf.mxu3  ;;  %v3711_v22 = vrot.slane %v3432_v21, 1 }
 0x20c   : > { %3524 = vmatmul.bf16.gmra.mxu3 %v3439_v18  ;;  %v2816_v60 = vadd.f32 %v2791_v48, %v2650_v57 }
 0x20d   : > { %v3713_v54 = vor.u32 %v3712_v19, %v3711_v22 }
 0x20f   : > { %v2510_v56 = vpop.f32.mrf.mxu1  ;;  %v3714_v1 = vsel %vm1754_vm2, %v3709_v5, %v3713_v54 }
 0x211   : > { %v2651_v0 = vpop.f32.mrf.mxu2 }
 0x212   : > { %v2652_v59 = vadd.f32 %v2651_v0, %v2507_v3  ;;  %v3715_v0 = vrot.slane %v3440_v23, 1  ;;  %v5292_v23 = vld [vmem:[%s5925_s29 + $0xa0] sm:$0xff] }
 0x213   : > { %v2793_v33 = vpop.f32.mrf.mxu3 }
 0x214   : > { %v2817_v52 = vadd.f32 %v2793_v33, %v2652_v59  ;;  %v3716_v33 = vrot.slane %v3436_v4, 2  ;;  %v3674_v59 = vld [vmem:[#allocation2 + $0x34] sm:$0x3] }
 0x215   : > { %v2997_v27 = vpop.f32.mrf.mxu0 }
 0x216   : > { %5537 = vmatmul.msk.bf16.gmra.mxu1 %vm5535_vm12, %v5536_v46  ;;  %v6861_v55 = vadd.f32 %v2997_v27, %v2816_v60  ;;  %v3693_v27 = vunpack.c.l.b16 %v3674_v59 }
 0x217   : > { %v2512_v2 = vpop.f32.mrf.mxu1 }
 0x21a   : > { %3653 = vmatmul.bf16.gmra.mxu0 %v3574_v63  ;;  %v2654_v28 = vpop.f32.mrf.mxu2 }
 0x21b   : > { %3332 = vmatmul.bf16.gmra.mxu2 %v3250_v43  ;;  %v2796_v45 = vpop.f32.mrf.mxu3  ;;  %v2655_v24 = vadd.f32 %v2654_v28, %v2510_v56  ;;  %v5291_v56 = vld [vmem:[%s5925_s29 + $0x98] sm:$0xff] }
 0x21c   : > { %3529 = vmatmul.bf16.gmra.mxu3 %v3447_v42 }
 0x21d   : > { %v2818_v40 = vadd.f32 %v2796_v45, %v2655_v24  ;;  %v2999_v29 = vpop.f32.mrf.mxu0 }
 0x21e   : > { %v6870_v62 = vadd.f32 %v2999_v29, %v2817_v52  ;;  %v3717_v52 = vor.u32 %v3716_v33, %v3715_v0 }
 0x21f   : > { %v2515_v12 = vpop.f32.mrf.mxu1 }
 0x220   : > { %v3718_v61 = vsel %vm1754_vm2, %v3713_v54, %v3717_v52 }
 0x222   : > { %v2656_v8 = vpop.f32.mrf.mxu2 }
 0x223   : > { %v2798_v6 = vpop.f32.mrf.mxu3  ;;  %v2657_v30 = vadd.f32 %v2656_v8, %v2512_v2  ;;  %v3694_v2 = vpack.c.b16 %v3693_v27, %v3693_v27 }
 0x225   : > { %v2819_v17 = vadd.f32 %v2798_v6, %v2657_v30  ;;  %v3720_v4 = vshrl.u32 %v3694_v2, 16  ;;  %v3723_v42 = vshll.u32 %v3694_v2, 16 }
 0x226   : > { %3794 = vmatmul.bf16.vlgmr.msra.gmra.mxu1 %v3710_v35 }
 0x227   : > { %v3002_v37 = vpop.f32.mrf.mxu0  ;;  %v2517_v15 = vpop.f32.mrf.mxu1  ;;  %v3722_v24 = vrot.slane %v3720_v4, 1  ;;  %v3725_v47 = vrot.slane %v3723_v42, 2 }
 0x228   : > { %v6875_v20 = vadd.f32 %v3002_v37, %v2818_v40  ;;  %v5293_v37 = vld [vmem:[%s5925_s29 + $0xa8] sm:$0xff] }
 0x229   : > { %v3726_v8 = vor.u32 %v3725_v47, %v3722_v24 }
 0x22a   : > { %3658 = vmatmul.bf16.gmra.mxu0 %v3576_v32  ;;  %v2659_v9 = vpop.f32.mrf.mxu2 }
 0x22b   : > { %3965 = vmatmul.bf16.vlgmr.msra.gmra.mxu2 %v5290_v49  ;;  %v2801_v3 = vpop.f32.mrf.mxu3  ;;  %v2660_v34 = vadd.f32 %v2659_v9, %v2515_v12 }
 0x22d   : > { %v2820_v41 = vadd.f32 %v2801_v3, %v2660_v34 }
 0x22f   : > { %v3004_v58 = vpop.f32.mrf.mxu0  ;;  %v2520_v51 = vpop.f32.mrf.mxu1 }
 0x230   : > { %v6882_v18 = vadd.f32 %v3004_v58, %v2819_v17  ;;  %v3727_v17 = vsel %vm1754_vm2, %v3717_v52, %v3726_v8 }
 0x232   : > { %v2661_v48 = vpop.f32.mrf.mxu2 }
 0x233   : > { %v2803_v57 = vpop.f32.mrf.mxu3  ;;  %v2662_v13 = vadd.f32 %v2661_v48, %v2517_v15 }
 0x235   : > { %v2821_v60 = vadd.f32 %v2803_v57, %v2662_v13 }
 0x236   : > { %3799 = vmatmul.bf16.gmra.mxu1 %v3714_v1  ;;  %v5294_v1 = vld [vmem:[%s5925_s29 + $0xb0] sm:$0xff] }
 0x237   : > { %v3007_v10 = vpop.f32.mrf.mxu0  ;;  %v2522_v21 = vpop.f32.mrf.mxu1 }
 0x238   : > { %v6886_v25 = vadd.f32 %v3007_v10, %v2820_v41 }
 0x23a   : > { %3789 = vmatmul.bf16.vlgmr.msrb.gmra.mxu0 %v6779_v31  ;;  %v2664_v11 = vpop.f32.mrf.mxu2 }
 0x23b   : > { %3970 = vmatmul.bf16.gmra.mxu2 %v5291_v56  ;;  %v2806_v50 = vpop.f32.mrf.mxu3  ;;  %v2665_v39 = vadd.f32 %v2664_v11, %v2520_v51 }
 0x23d   : > { %v2822_v44 = vadd.f32 %v2806_v50, %v2665_v39 }
 0x23f   : > { %v3009_v53 = vpop.f32.mrf.mxu0 }
 0x240   : > { %v6893_v7 = vadd.f32 %v3009_v53, %v2821_v60 }
 0x242   : > { %v2666_v14 = vpop.f32.mrf.mxu2 }
 0x243   : > { %v2525_v46 = vpop.f32.mrf.mxu1  ;;  %v2667_v31 = vadd.f32 %v2666_v14, %v2522_v21  ;;  %v2808_v26 = vpop.f32.mrf.mxu3 }
 0x245   : > { %v2823_v43 = vadd.f32 %v2808_v26, %v2667_v31 }
 0x246   : > { %3804 = vmatmul.bf16.gmra.mxu1 %v3718_v61 }
 0x247   : > { %v3012_v38 = vpop.f32.mrf.mxu0 }
 0x248   : > { %v6897_v63 = vadd.f32 %v3012_v38, %v2822_v44 }
 0x24b   : > { %3975 = vmatmul.bf16.gmra.mxu2 %v5292_v23  ;;  %v2527_v28 = vpop.f32.mrf.mxu1 }
 0x24e   : > { %v2669_v45 = vpop.f32.mrf.mxu2 }
 0x24f   : > { %v2670_v16 = vadd.f32 %v2669_v45, %v2525_v46  ;;  %v2811_v40 = vpop.f32.mrf.mxu3  ;;  %v3014_v12 = vpop.f32.mrf.mxu0 }
 0x250   : > { %v6899_v5 = vadd.f32 %v3014_v12, %v2823_v43 }
 0x251   : > { %v2824_v29 = vadd.f32 %v2811_v40, %v2670_v16 }
 0x253   : > { %v3116_v6 = vpop.f32.mrf.mxu1 }
 0x254   : > { %v3141_v30 = vadd.f32 %v3116_v6, %v6861_v55 }
 0x256   : > { %v2671_v35 = vpop.f32.mrf.mxu2  ;;  %3809 = vmatmul.bf16.gmra.mxu1 %v3727_v17 }
 0x257   : > { %v2672_v36 = vadd.f32 %v2671_v35, %v2527_v28  ;;  %v2813_v49 = vpop.f32.mrf.mxu3  ;;  %v3017_v32 = vpop.f32.mrf.mxu0 }
 0x258   : > { %v3030_v9 = vadd.f32 %v3017_v32, %v2824_v29 }
 0x259   : > { %v2825_v15 = vadd.f32 %v2813_v49, %v2672_v36 }
 0x25b   : > { %3980 = vmatmul.bf16.gmra.mxu2 %v5293_v37  ;;  %v3118_v3 = vpop.f32.mrf.mxu1 }
 0x25c   : > { %v3142_v34 = vadd.f32 %v3118_v3, %v6870_v62 }
 0x25e   : > { %v3313_v22 = vpop.f32.mrf.mxu2 }
 0x25f   : > { %v3338_v19 = vadd.f32 %v3313_v22, %v3141_v30  ;;  %v3510_v41 = vpop.f32.mrf.mxu3  ;;  %v3019_v58 = vpop.f32.mrf.mxu0 }
 0x260   : > { %v6905_v55 = vadd.f32 %v3019_v58, %v2825_v15 }
 0x261   : > { %v3535_v60 = vadd.f32 %v3510_v41, %v3338_v19 }
 0x263   : > { %v3121_v51 = vpop.f32.mrf.mxu1 }
 0x264   : > { %v3143_v54 = vadd.f32 %v3121_v51, %v6875_v20 }
 0x266   : > { %v3315_v48 = vpop.f32.mrf.mxu2 }
 0x267   : > { %v3339_v57 = vadd.f32 %v3315_v48, %v3142_v34  ;;  %v3512_v13 = vpop.f32.mrf.mxu3  ;;  %v3639_v56 = vpop.f32.mrf.mxu0 }
 0x268   : > { %v6909_v10 = vadd.f32 %v3639_v56, %v3535_v60 }
 0x269   : > { %v3536_v39 = vadd.f32 %v3512_v13, %v3339_v57 }
 0x26b   : > { %3985 = vmatmul.bf16.gmra.mxu2 %v5294_v1  ;;  %v3123_v21 = vpop.f32.mrf.mxu1 }
 0x26c   : > { %v3144_v20 = vadd.f32 %v3123_v21, %v6882_v18 }
 0x26e   : > { %v3318_v62 = vpop.f32.mrf.mxu2 }
 0x26f   : > { %v3340_v11 = vadd.f32 %v3318_v62, %v3143_v54  ;;  %v3515_v50 = vpop.f32.mrf.mxu3  ;;  %v3641_v0 = vpop.f32.mrf.mxu0 }
 0x270   : > { %v6911_v33 = vadd.f32 %v3641_v0, %v3536_v39 }
 0x271   : > { %v3537_v46 = vadd.f32 %v3515_v50, %v3340_v11 }
 0x273   : > { %v3126_v44 = vpop.f32.mrf.mxu1 }
 0x274   : > { %v3145_v59 = vadd.f32 %v3126_v44, %v6886_v25 }
 0x276   : > { %v3320_v53 = vpop.f32.mrf.mxu2 }
 0x277   : > { %v3341_v52 = vadd.f32 %v3320_v53, %v3144_v20  ;;  %v3517_v27 = vpop.f32.mrf.mxu3  ;;  %v3644_v14 = vpop.f32.mrf.mxu0  ;;  %v6940_v53 = vld [vmem:[%s7049_s8] ss:$0 sm:$0xff] }
 0x278   : > { %v3666_v31 = vadd.f32 %v3644_v14, %v3537_v46 }
 0x279   : > { %v3538_v23 = vadd.f32 %v3517_v27, %v3341_v52 }
 0x27b   : > { %v3128_v26 = vpop.f32.mrf.mxu1 }
 0x27c   : > { %v3146_v28 = vadd.f32 %v3128_v26, %v6893_v7  ;;  %v6946_v26 = vld [vmem:[%s7047_s6] ss:$0 sm:$0xff] }
 0x27e   : > { %v3323_v61 = vpop.f32.mrf.mxu2 }
 0x27f   : > { %v3342_v2 = vadd.f32 %v3323_v61, %v3145_v59  ;;  %v3520_v43 = vpop.f32.mrf.mxu3  ;;  %v3646_v38 = vpop.f32.mrf.mxu0  ;;  %v6952_v61 = vld [vmem:[%s7050_s9] ss:$0 sm:$0xff] }
 0x280   : > { %v3667_v4 = vadd.f32 %v3646_v38, %v3538_v23 }
 0x281   : > { %v3539_v47 = vadd.f32 %v3520_v43, %v3342_v2 }
 0x283   : > { %v3131_v42 = vpop.f32.mrf.mxu1 }
 0x284   : > { %v3147_v18 = vadd.f32 %v3131_v42, %v6897_v63 }
 0x286   : > { %v3325_v45 = vpop.f32.mrf.mxu2 }
 0x287   : > { %v3343_v25 = vadd.f32 %v3325_v45, %v3146_v28  ;;  %v3522_v24 = vpop.f32.mrf.mxu3  ;;  %v3649_v16 = vpop.f32.mrf.mxu0 }
 0x288   : > { %v6917_v40 = vadd.f32 %v3649_v16, %v3539_v47 }
 0x289   : > { %v3540_v6 = vadd.f32 %v3522_v24, %v3343_v25 }
 0x28b   : > { %v3133_v29 = vpop.f32.mrf.mxu1 }
 0x28c   : > { %v3148_v7 = vadd.f32 %v3133_v29, %v6899_v5 }
 0x28e   : > { %v3328_v12 = vpop.f32.mrf.mxu2 }
 0x28f   : > { %v3344_v8 = vadd.f32 %v3328_v12, %v3147_v18  ;;  %v3525_v30 = vpop.f32.mrf.mxu3  ;;  %v3651_v35 = vpop.f32.mrf.mxu0 }
 0x290   : > { %v6919_v17 = vadd.f32 %v3651_v35, %v3540_v6 }
 0x291   : > { %v3541_v15 = vadd.f32 %v3525_v30, %v3344_v8 }
 0x293   : > { %v3136_v36 = vpop.f32.mrf.mxu1 }
 0x294   : > { %v3149_v49 = vadd.f32 %v3136_v36, %v3030_v9 }
 0x296   : > { %v3330_v63 = vpop.f32.mrf.mxu2 }
 0x297   : > { %v3345_v37 = vadd.f32 %v3330_v63, %v3148_v7  ;;  %v3654_v32 = vpop.f32.mrf.mxu0  ;;  %v3527_v34 = vpop.f32.mrf.mxu3 }
 0x298   : > { %v6922_v3 = vadd.f32 %v3654_v32, %v3541_v15 }
 0x299   : > { %v3542_v58 = vadd.f32 %v3527_v34, %v3345_v37 }
 0x29b   : > { %v3138_v22 = vpop.f32.mrf.mxu1 }
 0x29c   : > { %v3150_v48 = vadd.f32 %v3138_v22, %v6905_v55  ;;  %v6935_v55 = vld [vmem:[%s7046_s5] ss:$0 sm:$0xff] }
 0x29e   : > { %v3333_v19 = vpop.f32.mrf.mxu2 }
 0x29f   : > { %v3346_v41 = vadd.f32 %v3333_v19, %v3149_v49  ;;  %v3656_v51 = vpop.f32.mrf.mxu0  ;;  %v3530_v57 = vpop.f32.mrf.mxu3 }
 0x2a0   : > { %v6924_v54 = vadd.f32 %v3656_v51, %v3542_v58 }
 0x2a1   : > { %v3543_v9 = vadd.f32 %v3530_v57, %v3346_v41 }
 0x2a3   : > { %v3795_v1 = vpop.f32.mrf.mxu1 }
 0x2a4   : > { %v3817_v14 = vadd.f32 %v3795_v1, %v3666_v31 }
 0x2a6   : > { %v3335_v13 = vpop.f32.mrf.mxu2  ;;  %v3831_v28 = vmul.f32 %v6935_v55, %v3817_v14 }
 0x2a7   : > { %v3347_v5 = vadd.f32 %v3335_v13, %v3150_v48  ;;  %v3659_v60 = vpop.f32.mrf.mxu0  ;;  %v3532_v62 = vpop.f32.mrf.mxu3 }
 0x2a8   : > { %v6927_v56 = vadd.f32 %v3659_v60, %v3543_v9  ;;  %v3845_v8 = vadd.f32 %v6946_v26, %v3831_v28 }
 0x2a9   : > { %v3544_v11 = vadd.f32 %v3532_v62, %v3347_v5 }
 0x2ab   : > { %v3797_v39 = vpop.f32.mrf.mxu1 }
 0x2ac   : > { %v3818_v2 = vadd.f32 %v3797_v39, %v3667_v4 }
 0x2ae   : > { %v3966_v21 = vpop.f32.mrf.mxu2  ;;  %v3832_v25 = vmul.f32 %v6935_v55, %v3818_v2 }
 0x2af   : > { %v3661_v50 = vpop.f32.mrf.mxu0 }
 0x2b0   : > { %v6929_v0 = vadd.f32 %v3661_v50, %v3544_v11  ;;  %v3846_v30 = vadd.f32 %v6946_v26, %v3832_v25 }
 0x2b3   : > { %v3800_v52 = vpop.f32.mrf.mxu1 }
 0x2b4   : > { %v3819_v22 = vadd.f32 %v3800_v52, %v6917_v40 }
 0x2b6   : > { %v3968_v44 = vpop.f32.mrf.mxu2  ;;  %v3833_v48 = vmul.f32 %v6935_v55, %v3819_v22 }
 0x2b7   : > { %v3790_v20 = vpop.f32.mrf.mxu0  ;;  %v3996_v31 = vmul.f32 %v6940_v53, %v3968_v44 }
 0x2b8   : > { %v3815_v59 = vadd.f32 %v3790_v20, %v6909_v10  ;;  %v3995_v10 = vmul.f32 %v6940_v53, %v3966_v21  ;;  %v3847_v9 = vadd.f32 %v6946_v26, %v3833_v48 }
 0x2b9   : > { %v4010_v47 = vadd.f32 %v6952_v61, %v3996_v31 }
 0x2ba   : > { %v3829_v27 = vmul.f32 %v6935_v55, %v3815_v59  ;;  %v4009_v18 = vadd.f32 %v6952_v61, %v3995_v10 }
 0x2bb   : > { %v3802_v16 = vpop.f32.mrf.mxu1 }
 0x2bc   : > { %v3843_v38 = vadd.f32 %v6946_v26, %v3829_v27  ;;  %v3820_v58 = vadd.f32 %v3802_v16, %v6919_v17 }
 0x2be   : > { %v3971_v46 = vpop.f32.mrf.mxu2  ;;  %v4019_v24 = vadd.f32 %v4009_v18, %v3843_v38  ;;  %v3834_v57 = vmul.f32 %v6935_v55, %v3820_v58 }
 0x2bf   : > { %v3792_v43 = vpop.f32.mrf.mxu0  ;;  %v3997_v23 = vmul.f32 %v6940_v53, %v3971_v46 }
 0x2c0   : > { %v3816_v42 = vadd.f32 %v3792_v43, %v6911_v33  ;;  %v4029_v7 = vmax.f32 %v4019_v24, 0.0  ;;  %v3848_v40 = vadd.f32 %v6946_v26, %v3834_v57 }
 0x2c1   : > { %v4011_v4 = vadd.f32 %v6952_v61, %v3997_v23 }
 0x2c2   : > { %v3830_v45 = vmul.f32 %v6935_v55, %v3816_v42 }
 0x2c3   : > { %v4021_v35 = vadd.f32 %v4011_v4, %v3845_v8  ;;  %v3805_v41 = vpop.f32.mrf.mxu1 }
 0x2c4   : > { %v3844_v29 = vadd.f32 %v6946_v26, %v3830_v45  ;;  %v3821_v44 = vadd.f32 %v3805_v41, %v6922_v3 }
 0x2c5   : > { %v4031_v15 = vmax.f32 %v4021_v35, 0.0 }
 0x2c6   : > { %v3973_v12 = vpop.f32.mrf.mxu2  ;;  %v4020_v6 = vadd.f32 %v4010_v47, %v3844_v29  ;;  %v3835_v27 = vmul.f32 %v6935_v55, %v3821_v44 }
 0x2c7   : > { %v3998_v33 = vmul.f32 %v6940_v53, %v3973_v12 }
 0x2c8   : > { %v4030_v49 = vmax.f32 %v4020_v6, 0.0  ;;  %v3849_v43 = vadd.f32 %v6946_v26, %v3835_v27 }
 0x2c9   : > { %v4012_v36 = vadd.f32 %v6952_v61, %v3998_v33 }
 0x2ca   : > { %v5351_v37 = vpack.c.bf16 %v4030_v49, %v4029_v7 }
 0x2cb   : > { %v4022_v63 = vadd.f32 %v4012_v36, %v3846_v30  ;;  %v3807_v21 = vpop.f32.mrf.mxu1 }
 0x2cc   : > { %5352 = vst [vmem:[%s6970_s7] sm:$0xff] %v5351_v37   ;;  %v3822_v59 = vadd.f32 %v3807_v21, %v6924_v54 }
 0x2cd   : > { %v4032_v32 = vmax.f32 %v4022_v63, 0.0 }
 0x2ce   : > { %v3976_v34 = vpop.f32.mrf.mxu2  ;;  %v3836_v14 = vmul.f32 %v6935_v55, %v3822_v59 }
 0x2cf   : > { %v5356_v19 = vpack.c.bf16 %v4032_v32, %v4031_v15  ;;  %v3999_v51 = vmul.f32 %v6940_v53, %v3976_v34 }
 0x2d0   : > { %v3850_v3 = vadd.f32 %v6946_v26, %v3836_v14 }
 0x2d1   : > { %5383 = vst [vmem:[%s6970_s7 + $0x8] sm:$0xff] %v5356_v19   ;;  %v4013_v13 = vadd.f32 %v6952_v61, %v3999_v51 }
 0x2d3   : > { %v4023_v60 = vadd.f32 %v4013_v13, %v3847_v9  ;;  %v3810_v46 = vpop.f32.mrf.mxu1 }
 0x2d4   : > { %v3823_v25 = vadd.f32 %v3810_v46, %v6927_v56 }
 0x2d5   : > { %v4033_v11 = vmax.f32 %v4023_v60, 0.0 }
 0x2d6   : > { %v3978_v5 = vpop.f32.mrf.mxu2  ;;  %v3837_v16 = vmul.f32 %v6935_v55, %v3823_v25 }
 0x2d7   : > { %v4000_v1 = vmul.f32 %v6940_v53, %v3978_v5 }
 0x2d8   : > { %v3851_v33 = vadd.f32 %v6946_v26, %v3837_v16 }
 0x2d9   : > { %v4014_v17 = vadd.f32 %v6952_v61, %v4000_v1 }
 0x2db   : > { %v4024_v62 = vadd.f32 %v4014_v17, %v3848_v40  ;;  %v3812_v18 = vpop.f32.mrf.mxu1 }
 0x2dc   : > { %v3824_v24 = vadd.f32 %v3812_v18, %v6929_v0 }
 0x2dd   : > { %v4034_v50 = vmax.f32 %v4024_v62, 0.0 }
 0x2de   : > { %v3981_v39 = vpop.f32.mrf.mxu2  ;;  %v3838_v29 = vmul.f32 %v6935_v55, %v3824_v24 }
 0x2df   : > { %v5361_v20 = vpack.c.bf16 %v4034_v50, %v4033_v11  ;;  %v4001_v52 = vmul.f32 %v6940_v53, %v3981_v39 }
 0x2e0   : > { %v3852_v6 = vadd.f32 %v6946_v26, %v3838_v29 }
 0x2e1   : > { %5384 = vst [vmem:[%s6970_s7 + $0x10] sm:$0xff] %v5361_v20   ;;  %v4015_v10 = vadd.f32 %v6952_v61, %v4001_v52 }
 0x2e3   : > { %v4025_v54 = vadd.f32 %v4015_v10, %v3849_v43 }
 0x2e5   : > { %v4035_v42 = vmax.f32 %v4025_v54, 0.0 }
 0x2e6   : > { %v3983_v2 = vpop.f32.mrf.mxu2 }
 0x2e7   : > { %v4002_v23 = vmul.f32 %v6940_v53, %v3983_v2 }
 0x2e9   : > { %v4016_v38 = vadd.f32 %v6952_v61, %v4002_v23 }
 0x2eb   : > { %v4026_v31 = vadd.f32 %v4016_v38, %v3850_v3 }
 0x2ed   : > { %v4036_v28 = vmax.f32 %v4026_v31, 0.0 }
 0x2ee   : > { %v3986_v45 = vpop.f32.mrf.mxu2 }
 0x2ef   : > { %v5366_v4 = vpack.c.bf16 %v4036_v28, %v4035_v42  ;;  %v4003_v47 = vmul.f32 %v6940_v53, %v3986_v45 }
 0x2f1   : > { %5385 = vst [vmem:[%s6970_s7 + $0x18] sm:$0xff] %v5366_v4   ;;  %v4017_v12 = vadd.f32 %v6952_v61, %v4003_v47 }
 0x2f3   : > { %v4027_v0 = vadd.f32 %v4017_v12, %v3851_v33 }
 0x2f5   : > { %v4037_v35 = vmax.f32 %v4027_v0, 0.0 }
 0x2f6   : > { %v3988_v8 = vpop.f32.mrf.mxu2 }
 0x2f7   : > { %v4004_v56 = vmul.f32 %v6940_v53, %v3988_v8 }
 0x2f9   : > { %v4018_v30 = vadd.f32 %v6952_v61, %v4004_v56 }
 0x2fb   : > { %v4028_v55 = vadd.f32 %v4018_v30, %v3852_v6 }
 0x2fd   : > { %v4038_v36 = vmax.f32 %v4028_v55, 0.0 }
 0x2ff   : > { %v5371_v7 = vpack.c.bf16 %v4038_v36, %v4037_v35 }
 0x301   : > { %5386 = vst [vmem:[%s6970_s7 + $0x20] sm:$0xff] %v5371_v7  }
 0x302   : > { %5685 = shalt.err (!%p5682_p10)
}
 0x303   : > { %s5743_s28 = smov 64   ;;  %s5744_s27 = smov 4  }
 0x304   : > { %5455 = dma.vmem_to_hbm [thread:$0]  (%p5892_p7), %s4073_s11, 640, %s4075_s17, %s4060_s12, %s5743_s28, %s5743_s28, %s5744_s27  }
 0x305 PF: > { %s4089_s23 = sand.u32 1, %s5723_s13   ;;  %p7114_p12 = scmp.ge.s32.totalorder %s5735_s16, 2 }
 0x306   : > { %s4090_s7 = scalar_lea.sflag [#allocation5], %s4089_s23 }
 0x307   : > { %p5472_p13 = pnand %p7114_p12, %p5835_p6 }
 0x309   : > { %p5473_p0 = pneg %p5472_p13 }
 0x30b   : > { %5715 = dma.done.wait (%p5473_p0), %s4090_s7, 640  }
 0x30c   : > { %5717 = vsyncadd (%p5473_p0), %s4090_s7, 4294966656  ;;  %s7115_s16 = sld [smem:[#allocation17_spill]]  ;;  %s7118_s13 = smov %s5727_s14 }
 0x30d   : > { %s7116_s15 = sld [smem:[#allocation16_spill]] }
 0x30e   : > { %s7117_s29 = sld [smem:[#allocation18_spill]] }
 0x312   : > { %p25_p3 = scmp.ge.s32.totalorder %s7115_s16, 4  }
 0x313   : > { %s7119_s14 = smov %s7116_s15 }
 0x314   : > { %s7120_s15 = smov %s7117_s29  ;;  %27 = sbr.rel (!%p25_p3) target bundleno = 11 (0xb), region = 136 }
 0x319   :  { %4096 = vsyncpa [#allocation4], 1 }
 0x31a   :  { %4098 = vsyncpa [#allocation4 + $0x1], 1 }
 0x31b   :  { %4099 = vsyncpa [#allocation7], 1 }
 0x31c   :  { %4100 = vsyncpa [#allocation10], 1 }
 0x31d   :  { %4101 = vsyncpa [#allocation5], 1 }
 0x31e   :  { %4103 = vsyncpa [#allocation5 + $0x1], 1 }

</bundles_post_ra>
